<compile_context>
chip_gen: v6e
topology: v6e:2x2x1
jax: 0.10.0
libtpu: 0.0.40
codegen_flags: <defaults>
</compile_context>

<pallas_src>
import functools

import jax
import jax.numpy as jnp
from jax.experimental import pallas as pl
from jax.experimental.pallas import tpu as pltpu


_NEG = -1.0e30   # finite "minus infinity" for masked samples / accumulator init


def _vmem_capacity_bytes() -> int:
    """Physical VMEM of the local TPU generation (fallback 64 MiB = v7x, the
    most constrained case)."""
    try:
        cap = getattr(pltpu.get_tpu_info(), "vmem_capacity_bytes", None)
        if cap:
            return int(cap)
    except Exception:
        pass
    return 64 * 1024 * 1024


def _dual_loss_kernel(a_ref, c2_ref, zeta_ref, lse_ref, m_acc, s_acc, *,
                      n_total, tile_n, chunk, n_chunks, needs_mask):
    """One (m-tile, n-tile) grid step: fused score + online log-sum-exp over samples."""
    ni = pl.program_id(1)

    @pl.when(ni == 0)
    def _init():
        m_acc[...] = jnp.full(m_acc.shape, _NEG, dtype=jnp.float32)
        s_acc[...] = jnp.zeros(s_acc.shape, dtype=jnp.float32)

    # Per-m-tile terms, hoisted out of the chunk loop (single load / broadcast).
    a = a_ref[...][None, :, :]       # (1, TM, D)  A = theta/eps + (lam/eps)*xi
    c2 = c2_ref[...][None, :, :]     # (1, 1, D)   0.5*lam/eps, lane-broadcast
    base = ni * tile_n               # first global sample index of this n-tile

    def chunk_step(ci, carry):
        # Sub-chunk of the (big) zeta block: bounds the f32 working set.
        z = zeta_ref[pl.ds(ci * chunk, chunk), :, :].astype(jnp.float32)  # (C, TM, D)
        # Fused score, single lane reduce.  The per-xi constant b = c2*||xi||^2 is
        # applied in the wrapper epilogue (LSE(s - b) = LSE(s) - b), so here:
        #   s' = (<theta, z> + lam*<xi, z> - 0.5*lam*||z||^2) / eps = sum_d z*(A - c2*z)
        s = jnp.sum(z * (a - c2 * z), axis=-1)                            # (C, TM)
        if needs_mask:
            # cdiv grid: rows of the last n-block beyond the true n hold garbage.
            idx = base + ci * chunk + jax.lax.broadcasted_iota(jnp.int32, s.shape, 0)
            s = jnp.where(idx < n_total, s, _NEG)
        # Online (flash-style) log-sum-exp over the sample axis.
        m_prev = m_acc[...]
        m_new = jnp.maximum(m_prev, jnp.max(s, axis=0, keepdims=True))
        s_acc[...] = (jnp.exp(m_prev - m_new) * s_acc[...]
                      + jnp.sum(jnp.exp(s - m_new), axis=0, keepdims=True))
        m_acc[...] = m_new
        return carry

    jax.lax.fori_loop(0, n_chunks, chunk_step, 0, unroll=True)

    @pl.when(ni == pl.num_programs(1) - 1)
    def _finalize():
        lse_ref[...] = m_acc[...] + jnp.log(s_acc[...])


def dual_loss(xi, zeta, theta, lam, eps, rho, *, tile_m=None, tile_n=None):
    """J = rho*lam + eps * mean_xi logmeanexp_zeta((L(zeta) - lam*c(zeta, xi))/eps)."""
    m, d = xi.shape
    n, m_z, d_z = zeta.shape
    assert (m_z, d_z) == (m, d), "zeta must be (n_samples, m, d) matching xi (m, d)"

    lam = jnp.asarray(lam, jnp.float32)
    eps = jnp.asarray(eps, jnp.float32)
    rho = jnp.asarray(rho, jnp.float32)

    # ---- per-generation VMEM budget & tile selection -------------------------
    vmem_cap = _vmem_capacity_bytes()
    vmem_limit = int(min((vmem_cap * 3) // 4, 96 * 1024 * 1024))   # 48 MiB v7x / 96 MiB v5e,v6e
    tile_n_cap = 256 if vmem_cap >= 96 * 1024 * 1024 else 128

    # xi-batch tile: lane-dense 128 when m > 128 (also gives >= 2 "parallel"
    # m-tiles for the two v7x TensorCores); otherwise one full-m tile.
    if tile_m is None:
        tile_m = m if m <= 128 else 128
    else:
        tile_m = min(tile_m, m)
        if tile_m < m:
            tile_m = max(128, (tile_m // 128) * 128)   # (1, tile_m) output block stays lane-aligned

    # Sample tile: the zeta block (double-buffered by Pallas) targets ~1/6 of the
    # VMEM limit so its two buffers use ~1/3 of it, leaving room for the f32
    # sub-chunk temporaries and the other (tiny) operands.
    if tile_n is None:
        if n < 8:
            tile_n = n
        else:
            row_bytes = tile_m * d * zeta.dtype.itemsize
            budget_n = max(8, (vmem_limit // 6) // max(1, row_bytes))
            tile_n = max(8, min(tile_n_cap, budget_n, (n // 8) * 8))
    else:
        tile_n = max(1, min(tile_n, n))
    chunk = min(8, tile_n)
    tile_n = max(chunk, (tile_n // chunk) * chunk)
    n_chunks = tile_n // chunk
    needs_mask = (n % tile_n) != 0

    grid = (pl.cdiv(m, tile_m), pl.cdiv(n, tile_n))

    # ---- per-xi terms hoisted out of the sample loop (tiny O(m*d) wrapper work) --
    xi_f = xi.astype(jnp.float32)
    c2 = 0.5 * lam / eps
    a_mat = theta.astype(jnp.float32)[None, :] / eps + (lam / eps) * xi_f      # (m, d)
    c2_row = jnp.full((1, d), c2, dtype=jnp.float32)                            # (1, d)
    b_vec = c2 * jnp.sum(xi_f * xi_f, axis=-1)                                  # (m,)

    bytes_accessed = int(zeta.size * zeta.dtype.itemsize + a_mat.size * 4 + d * 4 + m * 4)
    cost = pl.CostEstimate(
        flops=int(4 * n * m * d + 12 * n * m),
        transcendentals=int(n * m + 2 * m),
        bytes_accessed=bytes_accessed,
    )

    kernel = functools.partial(
        _dual_loss_kernel, n_total=n, tile_n=tile_n, chunk=chunk,
        n_chunks=n_chunks, needs_mask=needs_mask)

    lse = pl.pallas_call(
        kernel,
        out_shape=jax.ShapeDtypeStruct((1, m), jnp.float32),
        grid=grid,
        in_specs=[
            pl.BlockSpec((tile_m, d), lambda mi, ni: (mi, 0)),               # A
            pl.BlockSpec((1, d), lambda mi, ni: (0, 0)),                     # c2 row
            pl.BlockSpec((tile_n, tile_m, d), lambda mi, ni: (ni, mi, 0)),   # zeta tile
        ],
        out_specs=pl.BlockSpec((1, tile_m), lambda mi, ni: (0, mi)),         # lane-dense per-xi LSE
        scratch_shapes=[
            pltpu.VMEM((1, tile_m), jnp.float32),   # running max
            pltpu.VMEM((1, tile_m), jnp.float32),   # running sum
        ],
        compiler_params=pltpu.CompilerParams(
            dimension_semantics=("parallel", "arbitrary"),
            vmem_limit_bytes=vmem_limit,
        ),
        cost_estimate=cost,
    )(a_mat, c2_row, zeta)

    # Tiny epilogue: undo the per-xi constant, log-mean over the true n, outer mean.
    lse_xi = lse[0] - b_vec
    return rho * lam + eps * (jnp.mean(lse_xi) - jnp.log(jnp.float32(n)))


def dual_loss_reference(xi, zeta, theta, lam, eps, rho):
    """Pure-JAX reference of the same formula (for a sanity check)."""
    ell = jnp.einsum("nmd,d->nm", zeta, theta)
    cost = 0.5 * jnp.sum((zeta - xi[None]) ** 2, axis=-1)
    s = (ell - lam * cost) / eps
    s_max = jnp.max(s, axis=0, keepdims=True)
    lme = jnp.log(jnp.mean(jnp.exp(s - s_max), axis=0)) + s_max[0]
    return rho * lam + eps * jnp.mean(lme)


if __name__ == "__main__":
    key = jax.random.PRNGKey(0)
    k_xi, k_theta, k_noise = jax.random.split(key, 3)

    m, d = 256, 128        # xi batch (2 lane-dense m-tiles), feature dim
    n_samples = 20         # NOT a multiple of 8 -> exercises cdiv grid + masking

    # Deterministic "module parameters" (rho_0, epsilon_0, _lam per __init__).
    rho_0 = jnp.float32(0.1)
    epsilon_0 = jnp.float32(0.01)
    lam_0 = jnp.float32(0.001) / rho_0          # _lam = 0.001 / rho_0

    # Deterministic primal-loss parameter theta.
    theta = 0.05 * jax.random.normal(k_theta, (d,), dtype=jnp.float32)

    # Inputs: xi batch and zeta samples drawn around xi (glue, outside the kernel).
    xi_f32 = jax.random.normal(k_xi, (m, d), dtype=jnp.float32)
    zeta_f32 = xi_f32[None, :, :] + 0.1 * jax.random.normal(
        k_noise, (n_samples, m, d), dtype=jnp.float32)

    # Keep the big tensors in bf16 through HBM/DMA; the kernel casts to f32 in vregs.
    xi = xi_f32.astype(jnp.bfloat16)
    zeta = zeta_f32.astype(jnp.bfloat16)

    # 1) Ragged sample count: partial last n-block, masked in-kernel.
    out = jax.block_until_ready(dual_loss(xi, zeta, theta, lam_0, epsilon_0, rho_0))
    ref = dual_loss_reference(xi.astype(jnp.float32), zeta.astype(jnp.float32),
                              theta, lam_0, epsilon_0, rho_0)
    assert jnp.allclose(out, ref, rtol=1e-4, atol=1e-4), (out, ref)

    # 2) Aligned sample count: exact blocks, no masking path.
    zeta16 = zeta[:16]
    out2 = jax.block_until_ready(dual_loss(xi, zeta16, theta, lam_0, epsilon_0, rho_0))
    ref2 = dual_loss_reference(xi.astype(jnp.float32), zeta16.astype(jnp.float32),
                               theta, lam_0, epsilon_0, rho_0)
    assert jnp.allclose(out2, ref2, rtol=1e-4, atol=1e-4), (out2, ref2)

    print("KERNEL_OK")
</pallas_src>

<mosaic_0001>
module attributes {stable_mosaic.version = 11 : i64} {
  func.func @_dual_loss_kernel(%arg0: i32, %arg1: i32, %arg2: memref<128x128xf32, #tpu.memory_space<vmem>>, %arg3: memref<1x128xf32, #tpu.memory_space<vmem>>, %arg4: memref<16x128x128xbf16, #tpu.memory_space<vmem>>, %arg5: memref<1x128xf32, #tpu.memory_space<vmem>>, %arg6: memref<1x128xf32, #tpu.memory_space<vmem>>, %arg7: memref<1x128xf32, #tpu.memory_space<vmem>>) attributes {dimension_semantics = [#tpu.dimension_semantics<parallel>, #tpu.dimension_semantics<arbitrary>], iteration_bounds = array<i64: 2, 2>, scalar_prefetch = 0 : i64, scratch_operands = 2 : i64, tpu.core_type = #tpu.core_type<tc>, window_params = [{transform_indices = @transform_0, window_bounds = array<i64: 128, 128>}, {pipeline_mode = #tpu.pipeline_mode<synchronous>, transform_indices = @transform_1, window_bounds = array<i64: 1, 128>}, {transform_indices = @transform_2, window_bounds = array<i64: 16, 128, 128>}, {transform_indices = @transform_3, window_bounds = array<i64: 1, 128>}]} {
    %c0_i32 = arith.constant 0 : i32
    %0 = arith.cmpi eq, %arg1, %c0_i32 : i32
    %1 = arith.extui %0 : i1 to i32
    %c0_i32_0 = arith.constant 0 : i32
    %2 = arith.cmpi ne, %1, %c0_i32_0 : i32
    scf.if %2 {
      %cst_38 = arith.constant -1.000000e+30 : f32
      %81 = vector.broadcast %cst_38 : f32 to vector<1x128xf32>
      %c0_39 = arith.constant 0 : index
      %c0_40 = arith.constant 0 : index
      %82 = vector.load %arg6[%c0_39, %c0_40] : memref<1x128xf32, #tpu.memory_space<vmem>>, vector<1x128xf32>
      tpu.vector_store %arg6[%c0_39, %c0_40], %81 {strides = array<i32>} : memref<1x128xf32, #tpu.memory_space<vmem>>, vector<1x128xf32>,
      %cst_41 = arith.constant 0.000000e+00 : f32
      %83 = vector.broadcast %cst_41 : f32 to vector<1x128xf32>
      %c0_42 = arith.constant 0 : index
      %c0_43 = arith.constant 0 : index
      %84 = vector.load %arg7[%c0_42, %c0_43] : memref<1x128xf32, #tpu.memory_space<vmem>>, vector<1x128xf32>
      tpu.vector_store %arg7[%c0_42, %c0_43], %83 {strides = array<i32>} : memref<1x128xf32, #tpu.memory_space<vmem>>, vector<1x128xf32>,
    } else {
    }
    %c0 = arith.constant 0 : index
    %c0_1 = arith.constant 0 : index
    %3 = vector.load %arg2[%c0, %c0_1] : memref<128x128xf32, #tpu.memory_space<vmem>>, vector<128x128xf32>
    %4 = vector.shape_cast %3 : vector<128x128xf32> to vector<1x128x128xf32>
    %c0_2 = arith.constant 0 : index
    %c0_3 = arith.constant 0 : index
    %5 = vector.load %arg3[%c0_2, %c0_3] : memref<1x128xf32, #tpu.memory_space<vmem>>, vector<1x128xf32>
    %6 = vector.shape_cast %5 : vector<1x128xf32> to vector<1x1x128xf32>
    %c16_i32 = arith.constant 16 : i32
    %7 = arith.muli %arg1, %c16_i32 : i32
    %c0_i32_4 = arith.constant 0 : i32
    %c8_i32 = arith.constant 8 : i32
    %8 = arith.muli %c0_i32_4, %c8_i32 : i32
    %9 = arith.index_cast %8 : i32 to index
    %c0_5 = arith.constant 0 : index
    %c0_6 = arith.constant 0 : index
    %10 = vector.load %arg4[%9, %c0_5, %c0_6] : memref<16x128x128xbf16, #tpu.memory_space<vmem>>, vector<8x128x128xbf16>
    %11 = arith.extf %10 : vector<8x128x128xbf16> to vector<8x128x128xf32>
    %12 = vector.broadcast %6 : vector<1x1x128xf32> to vector<8x128x128xf32>
    %13 = arith.mulf %12, %11 : vector<8x128x128xf32>
    %14 = vector.broadcast %4 : vector<1x128x128xf32> to vector<8x128x128xf32>
    %15 = arith.subf %14, %13 : vector<8x128x128xf32>
    %16 = arith.mulf %11, %15 : vector<8x128x128xf32>
    %cst = arith.constant dense<0.000000e+00> : vector<8x128xf32>
    %17 = vector.multi_reduction <add>, %16, %cst [2] : vector<8x128x128xf32> to vector<8x128xf32>
    %c8_i32_7 = arith.constant 8 : i32
    %18 = arith.muli %c0_i32_4, %c8_i32_7 : i32
    %19 = arith.addi %7, %18 : i32
    %20 = tpu.iota {dimensions = array<i32: 0>} : vector<8x128xi32>
    %21 = vector.broadcast %19 : i32 to vector<8x128xi32>
    %22 = arith.addi %21, %20 : vector<8x128xi32>
    %c20_i32 = arith.constant 20 : i32
    %23 = vector.broadcast %c20_i32 : i32 to vector<8x128xi32>
    %24 = arith.cmpi slt, %22, %23 : vector<8x128xi32>
    %cst_8 = arith.constant -1.000000e+30 : f32
    %25 = vector.broadcast %cst_8 : f32 to vector<8x128xf32>
    %26 = arith.select %24, %17, %25 : vector<8x128xi1>, vector<8x128xf32>
    %c0_9 = arith.constant 0 : index
    %c0_10 = arith.constant 0 : index
    %27 = vector.load %arg6[%c0_9, %c0_10] : memref<1x128xf32, #tpu.memory_space<vmem>>, vector<1x128xf32>
    %cst_11 = arith.constant dense<0xFF800000> : vector<128xf32>
    %28 = vector.multi_reduction <maximumf>, %26, %cst_11 [0] : vector<8x128xf32> to vector<128xf32>
    %29 = vector.shape_cast %28 : vector<128xf32> to vector<1x128xf32>
    %30 = arith.maximumf %27, %29 : vector<1x128xf32>
    %31 = arith.subf %27, %30 : vector<1x128xf32>
    %32 = math.exp %31 : vector<1x128xf32>
    %c0_12 = arith.constant 0 : index
    %c0_13 = arith.constant 0 : index
    %33 = vector.load %arg7[%c0_12, %c0_13] : memref<1x128xf32, #tpu.memory_space<vmem>>, vector<1x128xf32>
    %34 = arith.mulf %32, %33 : vector<1x128xf32>
    %35 = vector.broadcast %30 : vector<1x128xf32> to vector<8x128xf32>
    %36 = arith.subf %26, %35 : vector<8x128xf32>
    %37 = math.exp %36 : vector<8x128xf32>
    %cst_14 = arith.constant dense<0.000000e+00> : vector<128xf32>
    %38 = vector.multi_reduction <add>, %37, %cst_14 [0] : vector<8x128xf32> to vector<128xf32>
    %39 = vector.shape_cast %38 : vector<128xf32> to vector<1x128xf32>
    %40 = arith.addf %34, %39 : vector<1x128xf32>
    %c0_15 = arith.constant 0 : index
    %c0_16 = arith.constant 0 : index
    %41 = vector.load %arg7[%c0_15, %c0_16] : memref<1x128xf32, #tpu.memory_space<vmem>>, vector<1x128xf32>
    tpu.vector_store %arg7[%c0_15, %c0_16], %40 {strides = array<i32>} : memref<1x128xf32, #tpu.memory_space<vmem>>, vector<1x128xf32>,
    %c0_17 = arith.constant 0 : index
    %c0_18 = arith.constant 0 : index
    %42 = vector.load %arg6[%c0_17, %c0_18] : memref<1x128xf32, #tpu.memory_space<vmem>>, vector<1x128xf32>
    tpu.vector_store %arg6[%c0_17, %c0_18], %30 {strides = array<i32>} : memref<1x128xf32, #tpu.memory_space<vmem>>, vector<1x128xf32>,
    %c1_i32 = arith.constant 1 : i32
    %c8_i32_19 = arith.constant 8 : i32
    %43 = arith.muli %c1_i32, %c8_i32_19 : i32
    %44 = arith.index_cast %43 : i32 to index
    %c0_20 = arith.constant 0 : index
    %c0_21 = arith.constant 0 : index
    %45 = vector.load %arg4[%44, %c0_20, %c0_21] : memref<16x128x128xbf16, #tpu.memory_space<vmem>>, vector<8x128x128xbf16>
    %46 = arith.extf %45 : vector<8x128x128xbf16> to vector<8x128x128xf32>
    %47 = vector.broadcast %6 : vector<1x1x128xf32> to vector<8x128x128xf32>
    %48 = arith.mulf %47, %46 : vector<8x128x128xf32>
    %49 = vector.broadcast %4 : vector<1x128x128xf32> to vector<8x128x128xf32>
    %50 = arith.subf %49, %48 : vector<8x128x128xf32>
    %51 = arith.mulf %46, %50 : vector<8x128x128xf32>
    %cst_22 = arith.constant dense<0.000000e+00> : vector<8x128xf32>
    %52 = vector.multi_reduction <add>, %51, %cst_22 [2] : vector<8x128x128xf32> to vector<8x128xf32>
    %c8_i32_23 = arith.constant 8 : i32
    %53 = arith.muli %c1_i32, %c8_i32_23 : i32
    %54 = arith.addi %7, %53 : i32
    %55 = tpu.iota {dimensions = array<i32: 0>} : vector<8x128xi32>
    %56 = vector.broadcast %54 : i32 to vector<8x128xi32>
    %57 = arith.addi %56, %55 : vector<8x128xi32>
    %c20_i32_24 = arith.constant 20 : i32
    %58 = vector.broadcast %c20_i32_24 : i32 to vector<8x128xi32>
    %59 = arith.cmpi slt, %57, %58 : vector<8x128xi32>
    %cst_25 = arith.constant -1.000000e+30 : f32
    %60 = vector.broadcast %cst_25 : f32 to vector<8x128xf32>
    %61 = arith.select %59, %52, %60 : vector<8x128xi1>, vector<8x128xf32>
    %c0_26 = arith.constant 0 : index
    %c0_27 = arith.constant 0 : index
    %62 = vector.load %arg6[%c0_26, %c0_27] : memref<1x128xf32, #tpu.memory_space<vmem>>, vector<1x128xf32>
    %cst_28 = arith.constant dense<0xFF800000> : vector<128xf32>
    %63 = vector.multi_reduction <maximumf>, %61, %cst_28 [0] : vector<8x128xf32> to vector<128xf32>
    %64 = vector.shape_cast %63 : vector<128xf32> to vector<1x128xf32>
    %65 = arith.maximumf %62, %64 : vector<1x128xf32>
    %66 = arith.subf %62, %65 : vector<1x128xf32>
    %67 = math.exp %66 : vector<1x128xf32>
    %c0_29 = arith.constant 0 : index
    %c0_30 = arith.constant 0 : index
    %68 = vector.load %arg7[%c0_29, %c0_30] : memref<1x128xf32, #tpu.memory_space<vmem>>, vector<1x128xf32>
    %69 = arith.mulf %67, %68 : vector<1x128xf32>
    %70 = vector.broadcast %65 : vector<1x128xf32> to vector<8x128xf32>
    %71 = arith.subf %61, %70 : vector<8x128xf32>
    %72 = math.exp %71 : vector<8x128xf32>
    %cst_31 = arith.constant dense<0.000000e+00> : vector<128xf32>
    %73 = vector.multi_reduction <add>, %72, %cst_31 [0] : vector<8x128xf32> to vector<128xf32>
    %74 = vector.shape_cast %73 : vector<128xf32> to vector<1x128xf32>
    %75 = arith.addf %69, %74 : vector<1x128xf32>
    %c0_32 = arith.constant 0 : index
    %c0_33 = arith.constant 0 : index
    %76 = vector.load %arg7[%c0_32, %c0_33] : memref<1x128xf32, #tpu.memory_space<vmem>>, vector<1x128xf32>
    tpu.vector_store %arg7[%c0_32, %c0_33], %75 {strides = array<i32>} : memref<1x128xf32, #tpu.memory_space<vmem>>, vector<1x128xf32>,
    %c0_34 = arith.constant 0 : index
    %c0_35 = arith.constant 0 : index
    %77 = vector.load %arg6[%c0_34, %c0_35] : memref<1x128xf32, #tpu.memory_space<vmem>>, vector<1x128xf32>
    tpu.vector_store %arg6[%c0_34, %c0_35], %65 {strides = array<i32>} : memref<1x128xf32, #tpu.memory_space<vmem>>, vector<1x128xf32>,
    %c2_i32 = arith.constant 2 : i32
    %c1_i32_36 = arith.constant 1 : i32
    %78 = arith.cmpi eq, %arg1, %c1_i32_36 : i32
    %79 = arith.extui %78 : i1 to i32
    %c0_i32_37 = arith.constant 0 : i32
    %80 = arith.cmpi ne, %79, %c0_i32_37 : i32
    scf.if %80 {
      %c0_38 = arith.constant 0 : index
      %c0_39 = arith.constant 0 : index
      %81 = vector.load %arg6[%c0_38, %c0_39] : memref<1x128xf32, #tpu.memory_space<vmem>>, vector<1x128xf32>
      %c0_40 = arith.constant 0 : index
      %c0_41 = arith.constant 0 : index
      %82 = vector.load %arg7[%c0_40, %c0_41] : memref<1x128xf32, #tpu.memory_space<vmem>>, vector<1x128xf32>
      %83 = math.log %82 : vector<1x128xf32>
      %84 = arith.addf %81, %83 : vector<1x128xf32>
      %c0_42 = arith.constant 0 : index
      %c0_43 = arith.constant 0 : index
      %85 = vector.load %arg5[%c0_42, %c0_43] : memref<1x128xf32, #tpu.memory_space<vmem>>, vector<1x128xf32>
      tpu.vector_store %arg5[%c0_42, %c0_43], %84 {strides = array<i32>} : memref<1x128xf32, #tpu.memory_space<vmem>>, vector<1x128xf32>,
    } else {
    }
    return
  }
  func.func @transform_0(%arg0: i32, %arg1: i32) -> (i32, i32) {
    %c0_i32 = arith.constant 0 : i32
    %c0_i32_0 = arith.constant 0 : i32
    return %arg0, %c0_i32 : i32, i32
  }
  func.func @transform_1(%arg0: i32, %arg1: i32) -> (i32, i32) {
    %c0_i32 = arith.constant 0 : i32
    %c0_i32_0 = arith.constant 0 : i32
    %c0_i32_1 = arith.constant 0 : i32
    return %c0_i32, %c0_i32_0 : i32, i32
  }
  func.func @transform_2(%arg0: i32, %arg1: i32) -> (i32, i32, i32) {
    %c0_i32 = arith.constant 0 : i32
    %c0_i32_0 = arith.constant 0 : i32
    return %arg1, %arg0, %c0_i32 : i32, i32, i32
  }
  func.func @transform_3(%arg0: i32, %arg1: i32) -> (i32, i32) {
    %c0_i32 = arith.constant 0 : i32
    %c0_i32_0 = arith.constant 0 : i32
    return %c0_i32, %arg0 : i32, i32
  }
}

</mosaic_0001>

<bundles_post_ra>
// kernel: tpu_custom_call.1
= control target key start
LH: loop header
LB: loop body
LE: loop exit
PB: predicated region body
PF: predicated region fallthrough
CT: control target
= control target key end

     0   :  { %s7300_s0 = inlined_call_operand.hbm [shape: f32[256,128], index: 0, kind: input, shape index: {}]   ;;  %s7301_s1 = inlined_call_operand.hbm [shape: f32[1,128], index: 1, kind: input, shape index: {}]   ;;  %s7302_s2 = inlined_call_operand.hbm [shape: bf16[20,256,128], index: 2, kind: input, shape index: {}]   ;;  %s7303_s3 = inlined_call_operand.hbm [shape: f32[1,256], index: 3, kind: output, shape index: {}]  }
   0x1   :  { %7332 = sst [smem:[#allocation31_spill]] %s7300_s0 }
   0x2   :  { %7333 = sst [smem:[#allocation32_spill]] %s7301_s1 }
   0x3   :  { %7334 = sst [smem:[#allocation33_spill]] %s7303_s3 }
   0x4   :  { %8 = vsyncpa [#allocation5], 0 }
   0x5   :  { %10 = vsyncpa [#allocation5 + $0x1], 0 }
   0x6   :  { %11 = vsyncpa [#allocation8], 0 }
   0x7   :  { %12 = vsyncpa [#allocation6], 0 }
   0x8   :  { %14 = vsyncpa [#allocation6 + $0x1], 0  ;;  %s5092_s12 = smov 0   ;;  %s5094_s13 = smov 0  }
   0x9   :  { %s5096_s14 = smov 0   ;;  %s5098_s15 = smov 0  }
   0xa   :  { %s5100_s16 = smov 0   ;;  %s5102_s17 = smov 0  }
   0xb   :  { %s5104_s18 = smov 0   ;;  %s5106_s19 = smov 0  }
   0xc   :  { %s5108_s20 = smov 0   ;;  %s5110_s21 = smov 0  }
   0xd   :  { %s5112_s22 = smov 0  }
   0xe LB: > { %7335 = sst [smem:[#allocation17_spill]] %s5029_s15  ;;  %s5148_s23 = sadd.s32 4294967295, %s5057_s22   ;;  %s5057_s22 = sphi %s5112_s22, %s20_s22   ;;  %s5053_s21 = sphi %s5110_s21, %s7408_s21   ;;  %s5049_s20 = sphi %s5108_s20, %s7407_s20   ;;  %s5045_s19 = sphi %s5106_s19, %s7406_s19   ;;  %s5041_s18 = sphi %s5104_s18, %s7405_s18   ;;  %s5037_s17 = sphi %s5102_s17, %s7397_s17   ;;  %s5033_s16 = sphi %s5100_s16, %s7404_s16   ;;  %s5029_s15 = sphi %s5098_s15, %s7403_s15   ;;  %s5025_s14 = sphi %s5096_s14, %s7402_s14   ;;  %s5021_s13 = sphi %s5094_s13, %s7401_s13   ;;  %s5017_s12 = sphi %s5092_s12, %s7400_s12  }
   0xf   : > { %7336 = sst [smem:[#allocation18_spill]] %s5037_s17  ;;  %s3900_s24 = sadd.s32 4294967294, %s5057_s22  }
  0x10   : > { %s29_s25 = sadd.s32 1, %s5049_s20  ;;  %s32_s26 = sadd.s32 1, %s5053_s21 }
  0x11   : > { %p30_p0 = scmp.ge.s32.totalorder %s29_s25, 2  ;;  %s39_s27 = sadd.s32 1, %s5037_s17 }
  0x12   : > { %p46_p1 = scmp.ne.s32.totalorder %s5037_s17, %s5033_s16  ;;  %p47_p2 = scmp.eq.s32.totalorder %s5057_s22, 0 }
  0x13   : > { %s7410_s25 = smov (%p30_p0, %s29_s25), 0  ;;  %s7412_s26 = smov (!%p30_p0, %s32_s26), %s5053_s21 }
  0x14   : > { %7337 = sst [smem:[#allocation19_spill]] %s7410_s25  ;;  %p5165_p3 = por %p47_p2, %p46_p1 }
  0x15   : > { %p7304_p4 = scmp.ne.s32.totalorder %s5033_s16, %s5029_s15  ;;  %p34_p5 = scmp.ge.s32.totalorder %s7412_s26, 2 }
  0x16   : > { %p53_p6 = scmp.eq.s32.totalorder %s5148_s23, 0  ;;  %s83_s29 = ssub.s32 %s5049_s20, %s7410_s25 }
  0x17   : > { %s88_s30 = sadd.s32 1, %s5025_s14  ;;  %s7414_s26 = smov (%p34_p5, %s7412_s26), 0 }
  0x18   : > { %7339 = sst [smem:[#allocation20_spill]] %s7414_s26  ;;  %p5182_p7 = por %p53_p6, %p7304_p4 }
  0x19   : > { %p95_p8 = scmp.ne.s32.totalorder %s5025_s14, %s5021_s13  ;;  %s36_s5 = ssub.s32 %s5053_s21, %s7414_s26 }
  0x1a   : > { %s7340_s4 = scalar_select %p5182_p7, 1, 0 }
  0x1b   : > { %p101_p9 = scmp.ne.s32.totalorder %s5021_s13, %s5017_s12  ;;  %p37_p10 = scmp.eq.s32.totalorder %s36_s5, 0 }
  0x1c   : > { %s85_s6 = sor.u32 %s83_s29, %s36_s5  ;;  %p5194_p12 = por %p95_p8, %p47_p2 }
  0x1d   : > { %p86_p11 = scmp.eq.s32.totalorder %s85_s6, 0  ;;  %p5206_p13 = por %p101_p9, %p53_p6 }
  0x1e   : > { %s7341_s7 = scalar_select %p5194_p12, 1, 0 }
  0x1f   : > { %s5199_s8 = scalar_select %p37_p10, %s5037_s17, %s39_s27  }
  0x20   : > { %s5202_s9 = scalar_select %p86_p11, %s5025_s14, %s88_s30  }
  0x21   : > { %7342 = sst [smem:[#allocation21_spill]] %s5199_s8  ;;  %p125_p0 = scmp.eq.s32.totalorder %s5148_s23, 3 }
  0x22   : > { %7343 = sst [smem:[#allocation22_spill]] %s5202_s9  ;;  %p131_p5 = scmp.eq.s32.totalorder %s3900_s24, 3 }
  0x23   : > { %s7344_s10 = scalar_select %p5206_p13, 1, 0 }
  0x24   : > { %p3901_p4 = scmp.ge.s32.totalorder %s5057_s22, 1  ;;  %p5215_p7 = por %p125_p0, %p46_p1 }
  0x25   : > { %p138_p2 = scmp.lt.s32.totalorder %s5057_s22, 5  ;;  %p7346_p8 = scmp.ne.s32.totalorder %s5033_s16, %s5029_s15 }
  0x26   : > { %s7345_s11 = scalar_select %p5215_p7, 1, 0 }
  0x27   : > { %p5223_p12 = por %p131_p5, %p7346_p8  ;;  %p5227_p10 = pnand %p3901_p4, %p138_p2 }
  0x28   : > { %s5059_s29 = smov [#allocation7]  }
  0x29   : > { %s7347_s12 = scalar_select %p5223_p12, 1, 0 }
  0x2a   : > { %s151_s30 = sshll.u32 %s5059_s29, 4  ;;  %p4709_p9 = pneg %p5227_p10  ;;  %s152_s30 = int_to_ptr.vmem [resolvable:$true] %s151_s30 }
  0x2b   : > { %7348 = sst [smem:[#allocation23_spill]] %s7347_s12  ;;  %s4888_s24 = scalar_lea.vmem %s152_s30, 16 }
  0x2c   : > { %p4710_p1 = pnand %p4709_p9, %p53_p6  ;;  %p4889_p0 = scmp.ne.s32.totalorder %s152_s30, %s4888_s24 }
  0x2d   : > { %s4895_s5 = scalar_lea.vmem %s152_s30, 32  ;;  %p4896_p8 = scmp.lt.s32.totalorder %s152_s30, %s152_s30 }
  0x2e   : > { %p4879_p11 = pneg %p4710_p1  ;;  %p4897_p12 = scmp.lt.s32.totalorder %s4895_s5, %s4888_s24 }
  0x30   : > { %p4891_p7 = pnand %p4889_p0, %p4879_p11  ;;  %p4898_p4 = por %p4897_p12, %p4896_p8 }
  0x32   : > { %p4892_p5 = pneg %p4891_p7 }
  0x34   : > { %p4899_p2 = pnand %p4898_p4, %p4892_p5 }
  0x36   : > { %4902 = shalt.err (!%p4899_p2)
}
  0x37   : > { %s7350_s1 = sld [smem:[#allocation32_spill]]  ;;  %p3903_p13 = scmp.ge.s32.totalorder %s5057_s22, 4 }
  0x38   : > { %s162_s29 = sand.u32 (!%p3903_p13), 1, %s5057_s22   ;;  %s164_s25 = sand.u32 (!%p3903_p13), 1, %s5037_s17  }
  0x39   : > { %158 = sbr.rel (%p3903_p13) target bundleno = 101 (0x65), region = 20  ;;  %s3904_s8 = sshll.u32 (!%p3903_p13), %s164_s25, 7 }
  0x3a   : > { %s4058_s9 = sshll.u32 (!%p3903_p13), %s5053_s21, 11  ;;  %s7351_s0 = sld [smem:[#allocation31_spill]] (!%p3903_p13) }
  0x3b   : > { %s166_s15 = scalar_lea.vmem (!%p3903_p13), [#allocation4], %s3904_s8  ;;  %s5245_s26 = scalar_lea.sflag (!%p3903_p13), [#allocation5], %s162_s29 }
  0x3c   : > { %s173_s3 = sshll.u32 (!%p3903_p13), %s166_s15, 4  ;;  %s5060_s6 = smov (!%p3903_p13), [#allocation4]   ;;  %s174_s3 = int_to_ptr.vmem [resolvable:$true] %s173_s3 }
  0x3d   : > { %4712 = dma.hbm_to_vmem [thread:$0]  (!%p4710_p1), %s7350_s1, 16, %s152_s30, [#allocation8]  }
  0x3e   : > { %s4915_s30 = scalar_lea.vmem %s174_s3, 2048  ;;  %s4919_s1 = sshll.u32 %s5060_s6, 4  ;;  %s4920_s1 = int_to_ptr.vmem [resolvable:$false] %s4919_s1 }
  0x3f   : > { %p4916_p7 = scmp.ne.s32.totalorder %s174_s3, %s4915_s30  ;;  %s4921_s17 = scalar_lea.vmem %s4920_s1, 4096 }
  0x40   : > { %s172_s5 = scalar_lea.hbm %s7351_s0, %s4058_s9  ;;  %p4922_p9 = scmp.lt.s32.totalorder %s174_s3, %s4920_s1 }
  0x41   : > { %p4917_p12 = pnand %p4916_p7, %p5165_p3  ;;  %p4923_p1 = scmp.lt.s32.totalorder %s4921_s17, %s4915_s30 }
  0x43   : > { %p4918_p13 = pneg %p4917_p12  ;;  %p4924_p11 = por %p4923_p1, %p4922_p9 }
  0x45   : > { %p4925_p0 = pnand %p4924_p11, %p4918_p13 }
  0x47   : > { %4928 = shalt.err (!%p4925_p0)
}
  0x48   : > { %s5061_s25 = smov 128   ;;  %s5062_s15 = smov 8  }
  0x49   : > { %4702 = dma.hbm_to_vmem [thread:$0]  (%p5165_p3), %s172_s5, 2048, %s174_s3, %s5245_s26, %s5061_s25, %s5061_s25, %s5062_s15  }
  0x4a   : > { %p7352_p5 = scmp.ne.s32.totalorder %s7341_s7, 0 }
  0x4c   : > { %182 = sbr.rel (!%p7352_p5) target bundleno = 101 (0x65), region = 28 }
  0x51   : > { %s185_s8 = sand.u32 1, %s5025_s14   ;;  %s3908_s9 = sshll.u32 %s5049_s20, 4 }
  0x52   : > { %s3907_s1 = sshll.u32 %s185_s8, 10  ;;  %s3909_s17 = sshll.u32 %s5053_s21, 4 }
  0x53   : > { %s190_s12 = ssub.s32 20, %s3908_s9  ;;  %s187_s28 = scalar_lea.vmem [#allocation9], %s3907_s1 }
  0x54   : > { %p191_p8 = scmp.lt.s32.totalorder %s190_s12, 16 }
  0x56   : > { %s7416_s12 = smov (!%p191_p8, %s190_s12), 16 }
  0x57   : > { %s5257_s29 = sshll.u32 %s7416_s12, 10 }
  0x58   : > { %s196_s24 = ssub.s32 16384, %s5257_s29 }
  0x59   : > { %197 = vsyncadd %s5245_s26, %s196_s24  ;;  %p3912_p3 = scmp.ne.s32.totalorder %s5257_s29, 0  ;;  %s4060_s3 = sshll.u32 %s5049_s20, 9 }
  0x5a   : > { %s200_s7 = sadd.s32 %s4060_s3, %s3909_s17  ;;  %s208_s5 = sld [smem:[#allocation0]]  }
  0x5b   : > { %s3914_s30 = sshll.u32 %s200_s7, 6  ;;  %s216_s6 = sshll.u32 %s187_s28, 4  ;;  %s217_s6 = int_to_ptr.vmem [resolvable:$true] %s216_s6 }
  0x5c   : > { %s202_s8 = scalar_lea.hbm %s7302_s2, %s3914_s30  ;;  %s5063_s9 = smov 2048  }
  0x5d   : > { %223 = sst [smem:[#allocation12]] %s5063_s9  ;;  %s5064_s1 = smov 1024  }
  0x5e   : > { %225 = sst [smem:[#allocation12 + $0x1]] %s5064_s1  ;;  %s5065_s24 = smov 16  }
  0x5f   : > { %227 = sst [smem:[#allocation12 + $0x2]] %s5065_s24  ;;  %s5066_s17 = smov 64  }
  0x60   : > { %s3916_s12 = sshll.u32 %s208_s5, 26  ;;  %229 = sst [smem:[#allocation12 + $0x3]] %s5066_s17 }
  0x61   : > { %s3917_s0 = sadd.s32 134217728, %s3916_s12  ;;  %231 = sst [smem:[#allocation12 + $0x4]] %s5066_s17 }
  0x62   : > { %s5067_s28 = smov 4   ;;  %s5068_s3 = smov 131072  }
  0x63   : > { %233 = sst [smem:[#allocation12 + $0x5]] %s5067_s28 }
  0x64   : > { %235 = dma.general (%p3912_p3), %s202_s8, %s5257_s29, %s217_s6, %s5245_s26, %s5068_s3, [#allocation12], %s3917_s0, 0  }
  0x65 PF: > { %241 = sbr.rel (%p5227_p10) target bundleno = 888 (0x378), region = 32 }
  0x6a   : > { %s243_s7 = sand.u32 1, %s5148_s23   ;;  %s5274_s5 = sand.u32 1, %s5033_s16  }
  0x6b   : > { %s3920_s30 = sshll.u32 %s5274_s5, 7  ;;  %s244_s25 = scalar_lea.sflag [#allocation5], %s243_s7 }
  0x6c   : > { %s5277_s15 = scalar_lea.vmem [#allocation4], %s3920_s30  ;;  %p7353_p4 = scmp.ne.s32.totalorder %s7340_s4, 0 }
  0x6e   : > { %5000 = dma.done.wait (%p7353_p4), %s244_s25, 2048  }
  0x6f   : > { %5002 = vsyncadd (%p7353_p4), %s244_s25, 4294965248 }
  0x70   : > { %5004 = dma.done.wait (%p53_p6), [#allocation8], 16  }
  0x71   : > { %5006 = vsyncadd (%p53_p6), [#allocation8], 4294967280  ;;  %s258_s0 = sand.u32 1, %s5021_s13   ;;  %p7354_p10 = scmp.ne.s32.totalorder %s7344_s10, 0 }
  0x72   : > { %s3922_s27 = sshll.u32 %s258_s0, 10 }
  0x73   : > { %s5288_s26 = scalar_lea.vmem [#allocation9], %s3922_s27 }
  0x74   : > { %5008 = dma.done.wait (%p7354_p10), %s244_s25, 16384  }
  0x75   : > { %5010 = vsyncadd (%p7354_p10), %s244_s25, 4294950912  ;;  %s286_s4 = scalar_lea.vmem [#allocation10], %s5274_s5  ;;  %p3923_p2 = scmp.ne.s32.totalorder %s5041_s18, 0 }
  0x77   : > { %298 = sbr.rel (%p3923_p2) target bundleno = 126 (0x7e), region = 48 }
  0x7c   : > { %v5069_v0 = vmov -1e+30   ;;  %v5070_v1 = vmov 0.0  }
  0x7d   : > { %299 = vst [vmem:[#allocation2] sm:$0x1] %v5069_v0  ;;  %300 = vst [vmem:[#allocation3] sm:$0x1] %v5070_v1 }
  0x7e PF: > { %v5296_v2 = vld [vmem:[#allocation7] ss:$0 sm:$0xff]  ;;  %v4573_v3 = vld [vmem:[%s5288_s26 + $0x8] sm:$0xff]   ;;  %v4062_v5 = vld [vmem:[%s5288_s26] sm:$0xff]   ;;  %vm1365_vm0 = vcmask 130112   ;;  %vm1372_vm1 = vcmask 195712  }
  0x7f   : > { %v4067_v4 = vunpack.c.l.bf16 %v4573_v3  ;;  %v4068_v6 = vunpack.c.h.bf16 %v4573_v3  ;;  %v5301_v7 = vld [vmem:[%s5277_s15 + $0x10] sm:$0xff]  ;;  %v4063_v8 = vunpack.c.l.bf16 %v4062_v5  ;;  %v5304_v9 = vld [vmem:[%s5277_s15 + $0x18] sm:$0xff]  ;;  %v4064_v10 = vunpack.c.h.bf16 %v4062_v5  ;;  %v5309_v13 = vld [vmem:[%s5277_s15] sm:$0xff]  ;;  %s3924_s23 = sshll.u32 %s5041_s18, 4  ;;  %p4054_p6 = scmp.ne.s32.totalorder %s5041_s18, 1 }
  0x80   : > { %v4574_v11 = vld [vmem:[%s5288_s26 + $0x10] sm:$0xff]   ;;  %v5313_v15 = vld [vmem:[%s5277_s15 + $0x8] sm:$0xff]  ;;  %v4575_v18 = vld [vmem:[%s5288_s26 + $0x18] sm:$0xff]   ;;  %vm1379_vm2 = vcmask 261312   ;;  %vm1386_vm3 = vcmask 326912   ;;  %vm1393_vm4 = vcmask 392512  }
  0x81   : > { %v583_v12 = vmul.f32 %v4067_v4, %v5296_v2  ;;  %v584_v14 = vmul.f32 %v4068_v6, %v5296_v2  ;;  %v4072_v16 = vunpack.c.h.bf16 %v4574_v11  ;;  %v4071_v17 = vunpack.c.l.bf16 %v4574_v11  ;;  %v5324_v27 = vld [vmem:[%s5277_s15 + $0x28] sm:$0xff]  ;;  %v5329_v32 = vld [vmem:[%s5277_s15 + $0x20] sm:$0xff]  ;;  %v5335_v40 = vld [vmem:[%s5277_s15 + $0x38] sm:$0xff]  ;;  %s7165_s10 = sadd.s32 8, %s3924_s23 }
  0x82   : > { %v581_v19 = vmul.f32 %v4063_v8, %v5296_v2  ;;  %v582_v20 = vmul.f32 %v4064_v10, %v5296_v2  ;;  %v4076_v24 = vunpack.c.h.bf16 %v4575_v18  ;;  %v4075_v29 = vunpack.c.l.bf16 %v4575_v18  ;;  %v4576_v30 = vld [vmem:[%s5288_s26 + $0x20] sm:$0xff]   ;;  %v4577_v43 = vld [vmem:[%s5288_s26 + $0x28] sm:$0xff]   ;;  %v4578_v54 = vld [vmem:[%s5288_s26 + $0x30] sm:$0xff]  }
  0x83   : > { %v711_v21 = vsub.f32 %v5301_v7, %v583_v12  ;;  %v712_v22 = vsub.f32 %v5304_v9, %v584_v14  ;;  %v586_v23 = vmul.f32 %v4072_v16, %v5296_v2  ;;  %v585_v28 = vmul.f32 %v4071_v17, %v5296_v2  ;;  %v5340_v44 = vld [vmem:[%s5277_s15 + $0x30] sm:$0xff]  ;;  %v5346_v51 = vld [vmem:[%s5277_s15 + $0x48] sm:$0xff]  ;;  %v5351_v55 = vld [vmem:[%s5277_s15 + $0x40] sm:$0xff] }
  0x84   : > { %v709_v25 = vsub.f32 %v5309_v13, %v581_v19  ;;  %v710_v26 = vsub.f32 %v5313_v15, %v582_v20  ;;  %v588_v36 = vmul.f32 %v4076_v24, %v5296_v2  ;;  %v4080_v37 = vunpack.c.h.bf16 %v4576_v30  ;;  %v5357_v62 = vld [vmem:[%s5277_s15 + $0x58] sm:$0xff]  ;;  %v5362_v3 = vld [vmem:[%s5277_s15 + $0x50] sm:$0xff]  ;;  %v5368_v12 = vld [vmem:[%s5277_s15 + $0x68] sm:$0xff] }
  0x85   : > { %v839_v31 = vmul.f32 %v4067_v4, %v711_v21  ;;  %v840_v34 = vmul.f32 %v4068_v6, %v712_v22  ;;  %v714_v35 = vsub.f32 %v5324_v27, %v586_v23  ;;  %v713_v39 = vsub.f32 %v5329_v32, %v585_v28  ;;  %v4579_v1 = vld [vmem:[%s5288_s26 + $0x38] sm:$0xff]  }
  0x86   : > { %v837_v33 = vmul.f32 %v4063_v8, %v709_v25  ;;  %v838_v38 = vmul.f32 %v4064_v10, %v710_v26  ;;  %v587_v41 = vmul.f32 %v4075_v29, %v5296_v2  ;;  %v4079_v42 = vunpack.c.l.bf16 %v4576_v30  ;;  %v5373_v18 = vld [vmem:[%s5277_s15 + $0x60] sm:$0xff]  ;;  %v5379_v25 = vld [vmem:[%s5277_s15 + $0x78] sm:$0xff]  ;;  %v5384_v30 = vld [vmem:[%s5277_s15 + $0x70] sm:$0xff] }
  0x87   : > { %969 = vadd.xlane.f32.xlu1 %v839_v31  ;;  %v842_v45 = vmul.f32 %v4072_v16, %v714_v35  ;;  %v716_v46 = vsub.f32 %v5335_v40, %v588_v36  ;;  %v590_v47 = vmul.f32 %v4080_v37, %v5296_v2  ;;  %v4084_v48 = vunpack.c.h.bf16 %v4577_v43 }
  0x88   : > { %965 = vadd.xlane.f32.xlu0 %v837_v33  ;;  %v841_v49 = vmul.f32 %v4071_v17, %v713_v39  ;;  %v715_v50 = vsub.f32 %v5340_v44, %v587_v41  ;;  %v589_v52 = vmul.f32 %v4079_v42, %v5296_v2  ;;  %v4083_v53 = vunpack.c.l.bf16 %v4577_v43  ;;  %v4580_v17 = vld [vmem:[%s5288_s26 + $0x40] sm:$0xff]   ;;  %v4582_v41 = vld [vmem:[%s5288_s26 + $0x50] sm:$0xff]  }
  0x89   : > { %v844_v56 = vmul.f32 %v4076_v24, %v716_v46  ;;  %v718_v57 = vsub.f32 %v5346_v51, %v590_v47  ;;  %v592_v58 = vmul.f32 %v4084_v48, %v5296_v2  ;;  %v4088_v59 = vunpack.c.h.bf16 %v4578_v54 }
  0x8a   : > { %v843_v60 = vmul.f32 %v4075_v29, %v715_v50  ;;  %v717_v61 = vsub.f32 %v5351_v55, %v589_v52  ;;  %v591_v63 = vmul.f32 %v4083_v53, %v5296_v2  ;;  %v4087_v0 = vunpack.c.l.bf16 %v4578_v54  ;;  %v4581_v29 = vld [vmem:[%s5288_s26 + $0x48] sm:$0xff]   ;;  %v4583_v52 = vld [vmem:[%s5288_s26 + $0x58] sm:$0xff]  }
  0x8b   : > { %971 = vadd.xlane.f32.xlu1 %v840_v34  ;;  %v846_v4 = vmul.f32 %v4080_v37, %v718_v57  ;;  %v720_v5 = vsub.f32 %v5357_v62, %v592_v58  ;;  %v594_v6 = vmul.f32 %v4088_v59, %v5296_v2  ;;  %v4092_v8 = vunpack.c.h.bf16 %v4579_v1 }
  0x8c   : > { %967 = vadd.xlane.f32.xlu0 %v838_v38  ;;  %v845_v10 = vmul.f32 %v4079_v42, %v717_v61  ;;  %v719_v11 = vsub.f32 %v5362_v3, %v591_v63  ;;  %v593_v14 = vmul.f32 %v4087_v0, %v5296_v2  ;;  %v4091_v16 = vunpack.c.l.bf16 %v4579_v1  ;;  %v4584_v63 = vld [vmem:[%s5288_s26 + $0x60] sm:$0xff]  }
  0x8d   : > { %v848_v19 = vmul.f32 %v4084_v48, %v720_v5  ;;  %v722_v20 = vsub.f32 %v5368_v12, %v594_v6  ;;  %v596_v21 = vmul.f32 %v4092_v8, %v5296_v2  ;;  %v4096_v22 = vunpack.c.h.bf16 %v4580_v17 }
  0x8e   : > { %v847_v23 = vmul.f32 %v4083_v53, %v719_v11  ;;  %v721_v24 = vsub.f32 %v5373_v18, %v593_v14  ;;  %v595_v26 = vmul.f32 %v4091_v16, %v5296_v2  ;;  %v4095_v28 = vunpack.c.l.bf16 %v4580_v17  ;;  %v4585_v14 = vld [vmem:[%s5288_s26 + $0x68] sm:$0xff]  }
  0x8f   : > { %975 = vadd.xlane.f32.xlu1 %v842_v45  ;;  %v850_v31 = vmul.f32 %v4088_v59, %v722_v20  ;;  %v724_v33 = vsub.f32 %v5379_v25, %v596_v21  ;;  %v598_v34 = vmul.f32 %v4096_v22, %v5296_v2  ;;  %v4100_v35 = vunpack.c.h.bf16 %v4581_v29 }
  0x90   : > { %973 = vadd.xlane.f32.xlu0 %v841_v49  ;;  %v849_v36 = vmul.f32 %v4087_v0, %v721_v24  ;;  %v723_v37 = vsub.f32 %v5384_v30, %v595_v26  ;;  %v597_v38 = vmul.f32 %v4095_v28, %v5296_v2  ;;  %v4099_v39 = vunpack.c.l.bf16 %v4581_v29  ;;  %v4586_v26 = vld [vmem:[%s5288_s26 + $0x70] sm:$0xff]  }
  0x91   : > { %v852_v42 = vmul.f32 %v4092_v8, %v724_v33  ;;  %v726_v43 = vsub.f32 %v5313_v15, %v598_v34  ;;  %v600_v45 = vmul.f32 %v4100_v35, %v5296_v2  ;;  %v4104_v46 = vunpack.c.h.bf16 %v4582_v41 }
  0x92   : > { %v851_v47 = vmul.f32 %v4091_v16, %v723_v37  ;;  %v725_v48 = vsub.f32 %v5309_v13, %v597_v38  ;;  %v599_v49 = vmul.f32 %v4099_v39, %v5296_v2  ;;  %v4103_v50 = vunpack.c.l.bf16 %v4582_v41  ;;  %v4587_v38 = vld [vmem:[%s5288_s26 + $0x78] sm:$0xff]  }
  0x93   : > { %979 = vadd.xlane.f32.xlu1 %v844_v56  ;;  %v854_v53 = vmul.f32 %v4096_v22, %v726_v43  ;;  %v728_v54 = vsub.f32 %v5304_v9, %v600_v45  ;;  %v602_v56 = vmul.f32 %v4104_v46, %v5296_v2  ;;  %v4108_v57 = vunpack.c.h.bf16 %v4583_v52 }
  0x94   : > { %977 = vadd.xlane.f32.xlu0 %v843_v60  ;;  %v853_v58 = vmul.f32 %v4095_v28, %v725_v48  ;;  %v727_v59 = vsub.f32 %v5301_v7, %v599_v49  ;;  %v601_v60 = vmul.f32 %v4103_v50, %v5296_v2  ;;  %v4107_v61 = vunpack.c.l.bf16 %v4583_v52  ;;  %v4588_v49 = vld [vmem:[%s5288_s26 + $0x80] sm:$0xff]  }
  0x95   : > { %v856_v0 = vmul.f32 %v4100_v35, %v728_v54  ;;  %v730_v1 = vsub.f32 %v5324_v27, %v602_v56  ;;  %v4112_v5 = vunpack.c.h.bf16 %v4584_v63  ;;  %v4111_v11 = vunpack.c.l.bf16 %v4584_v63 }
  0x96   : > { %v855_v6 = vmul.f32 %v4099_v39, %v727_v59  ;;  %v729_v8 = vsub.f32 %v5329_v32, %v601_v60  ;;  %v4116_v20 = vunpack.c.h.bf16 %v4585_v14  ;;  %v4115_v24 = vunpack.c.l.bf16 %v4585_v14  ;;  %v4589_v60 = vld [vmem:[%s5288_s26 + $0x88] sm:$0xff]  }
  0x97   : > { %983 = vadd.xlane.f32.xlu1 %v846_v4  ;;  %v604_v4 = vmul.f32 %v4108_v57, %v5296_v2  ;;  %v858_v16 = vmul.f32 %v4104_v46, %v730_v1  ;;  %v4120_v33 = vunpack.c.h.bf16 %v4586_v26  ;;  %v4119_v37 = vunpack.c.l.bf16 %v4586_v26 }
  0x98   : > { %981 = vadd.xlane.f32.xlu0 %v845_v10  ;;  %v603_v10 = vmul.f32 %v4107_v61, %v5296_v2  ;;  %v857_v21 = vmul.f32 %v4103_v50, %v729_v8  ;;  %v4124_v43 = vunpack.c.h.bf16 %v4587_v38  ;;  %v4123_v48 = vunpack.c.l.bf16 %v4587_v38 }
  0x99   : > { %v732_v17 = vsub.f32 %v5335_v40, %v604_v4  ;;  %v4128_v54 = vunpack.c.h.bf16 %v4588_v49  ;;  %v4127_v59 = vunpack.c.l.bf16 %v4588_v49  ;;  %v4132_v1 = vunpack.c.h.bf16 %v4589_v60 }
  0x9a   : > { %v731_v22 = vsub.f32 %v5340_v44, %v603_v10  ;;  %v4131_v8 = vunpack.c.l.bf16 %v4589_v60  ;;  %v4590_v10 = vld [vmem:[%s5288_s26 + $0x90] sm:$0xff]   ;;  %vm1400_vm5 = vcmask 458112   ;;  %vm1407_vm6 = vcmask 523712  }
  0x9b   : > { %987 = vadd.xlane.f32.xlu1 %v848_v19  ;;  %v606_v19 = vmul.f32 %v4112_v5, %v5296_v2  ;;  %v860_v28 = vmul.f32 %v4108_v57, %v732_v17  ;;  %v4136_v17 = vunpack.c.h.bf16 %v4590_v10  ;;  %vm1414_vm7 = vcmask 589312  }
  0x9c   : > { %985 = vadd.xlane.f32.xlu0 %v847_v23  ;;  %v605_v23 = vmul.f32 %v4111_v11, %v5296_v2  ;;  %v859_v34 = vmul.f32 %v4107_v61, %v731_v22  ;;  %v4135_v22 = vunpack.c.l.bf16 %v4590_v10  ;;  %vm1421_vm8 = vcmask 654912  }
  0x9d   : > { %v734_v29 = vsub.f32 %v5346_v51, %v606_v19  ;;  %vm1428_vm9 = vcmask 720512   ;;  %vm7330_vm10 = vcmask 786112   ;;  %vm7329_vm11 = vcmask 851712  }
  0x9e   : > { %v733_v35 = vsub.f32 %v5351_v55, %v605_v23  ;;  %v4591_v23 = vld [vmem:[%s5288_s26 + $0x98] sm:$0xff]   ;;  %vm1449_vm12 = vcmask 917312   ;;  %vm1456_vm13 = vcmask 982912   ;;  %vm1463_vm14 = vcmask 1048512  }
  0x9f   : > { %991 = vadd.xlane.f32.xlu1 %v850_v31  ;;  %v608_v31 = vmul.f32 %v4116_v20, %v5296_v2  ;;  %v862_v39 = vmul.f32 %v4112_v5, %v734_v29  ;;  %v4140_v29 = vunpack.c.h.bf16 %v4591_v23  ;;  %vm7314_vm15 = vcmask 1041409  }
  0xa0   : > { %989 = vadd.xlane.f32.xlu0 %v849_v36  ;;  %v607_v36 = vmul.f32 %v4115_v24, %v5296_v2  ;;  %v861_v45 = vmul.f32 %v4111_v11, %v733_v35  ;;  %v4139_v35 = vunpack.c.l.bf16 %v4591_v23 }
  0xa1   : > { %v736_v41 = vsub.f32 %v5357_v62, %v608_v31 }
  0xa2   : > { %v735_v46 = vsub.f32 %v5362_v3, %v607_v36  ;;  %v4592_v36 = vld [vmem:[%s5288_s26 + $0xa0] sm:$0xff]  }
  0xa3   : > { %995 = vadd.xlane.f32.xlu1 %v852_v42  ;;  %v610_v42 = vmul.f32 %v4120_v33, %v5296_v2  ;;  %v864_v50 = vmul.f32 %v4116_v20, %v736_v41  ;;  %v4144_v41 = vunpack.c.h.bf16 %v4592_v36 }
  0xa4   : > { %993 = vadd.xlane.f32.xlu0 %v851_v47  ;;  %v609_v47 = vmul.f32 %v4119_v37, %v5296_v2  ;;  %v863_v56 = vmul.f32 %v4115_v24, %v735_v46  ;;  %v4143_v46 = vunpack.c.l.bf16 %v4592_v36 }
  0xa5   : > { %v738_v52 = vsub.f32 %v5368_v12, %v610_v42 }
  0xa6   : > { %v737_v57 = vsub.f32 %v5373_v18, %v609_v47  ;;  %v4593_v47 = vld [vmem:[%s5288_s26 + $0xa8] sm:$0xff]  }
  0xa7   : > { %999 = vadd.xlane.f32.xlu1 %v854_v53  ;;  %v612_v53 = vmul.f32 %v4124_v43, %v5296_v2  ;;  %v866_v61 = vmul.f32 %v4120_v33, %v738_v52  ;;  %v4148_v52 = vunpack.c.h.bf16 %v4593_v47 }
  0xa8   : > { %997 = vadd.xlane.f32.xlu0 %v853_v58  ;;  %v611_v58 = vmul.f32 %v4123_v48, %v5296_v2  ;;  %v865_v4 = vmul.f32 %v4119_v37, %v737_v57  ;;  %v4147_v57 = vunpack.c.l.bf16 %v4593_v47 }
  0xa9   : > { %v740_v63 = vsub.f32 %v5379_v25, %v612_v53 }
  0xaa   : > { %v739_v5 = vsub.f32 %v5384_v30, %v611_v58  ;;  %v4594_v58 = vld [vmem:[%s5288_s26 + $0xb0] sm:$0xff]  }
  0xab   : > { %1003 = vadd.xlane.f32.xlu1 %v856_v0  ;;  %v614_v0 = vmul.f32 %v4128_v54, %v5296_v2  ;;  %v868_v11 = vmul.f32 %v4124_v43, %v740_v63  ;;  %v4152_v63 = vunpack.c.h.bf16 %v4594_v58 }
  0xac   : > { %1001 = vadd.xlane.f32.xlu0 %v855_v6  ;;  %v613_v6 = vmul.f32 %v4127_v59, %v5296_v2  ;;  %v867_v19 = vmul.f32 %v4123_v48, %v739_v5  ;;  %v4151_v5 = vunpack.c.l.bf16 %v4594_v58 }
  0xad   : > { %v742_v14 = vsub.f32 %v5313_v15, %v614_v0 }
  0xae   : > { %v741_v20 = vsub.f32 %v5309_v13, %v613_v6  ;;  %v4595_v6 = vld [vmem:[%s5288_s26 + $0xb8] sm:$0xff]  }
  0xaf   : > { %1007 = vadd.xlane.f32.xlu1 %v858_v16  ;;  %v616_v16 = vmul.f32 %v4132_v1, %v5296_v2  ;;  %v870_v24 = vmul.f32 %v4128_v54, %v742_v14  ;;  %v4156_v14 = vunpack.c.h.bf16 %v4595_v6 }
  0xb0   : > { %1005 = vadd.xlane.f32.xlu0 %v857_v21  ;;  %v615_v21 = vmul.f32 %v4131_v8, %v5296_v2  ;;  %v869_v31 = vmul.f32 %v4127_v59, %v741_v20  ;;  %v4155_v20 = vunpack.c.l.bf16 %v4595_v6 }
  0xb1   : > { %v744_v26 = vsub.f32 %v5304_v9, %v616_v16 }
  0xb2   : > { %v743_v33 = vsub.f32 %v5301_v7, %v615_v21  ;;  %v4596_v21 = vld [vmem:[%s5288_s26 + $0xc0] sm:$0xff]  }
  0xb3   : > { %1011 = vadd.xlane.f32.xlu1 %v860_v28  ;;  %v618_v28 = vmul.f32 %v4136_v17, %v5296_v2  ;;  %v872_v37 = vmul.f32 %v4132_v1, %v744_v26  ;;  %v4160_v26 = vunpack.c.h.bf16 %v4596_v21 }
  0xb4   : > { %1009 = vadd.xlane.f32.xlu0 %v859_v34  ;;  %v617_v34 = vmul.f32 %v4135_v22, %v5296_v2  ;;  %v871_v42 = vmul.f32 %v4131_v8, %v743_v33  ;;  %v4159_v33 = vunpack.c.l.bf16 %v4596_v21 }
  0xb5   : > { %v746_v38 = vsub.f32 %v5324_v27, %v618_v28 }
  0xb6   : > { %v745_v43 = vsub.f32 %v5329_v32, %v617_v34  ;;  %v4597_v34 = vld [vmem:[%s5288_s26 + $0xc8] sm:$0xff]  }
  0xb7   : > { %1015 = vadd.xlane.f32.xlu1 %v862_v39  ;;  %v620_v39 = vmul.f32 %v4140_v29, %v5296_v2  ;;  %v874_v48 = vmul.f32 %v4136_v17, %v746_v38  ;;  %v4164_v38 = vunpack.c.h.bf16 %v4597_v34 }
  0xb8   : > { %1013 = vadd.xlane.f32.xlu0 %v861_v45  ;;  %v619_v45 = vmul.f32 %v4139_v35, %v5296_v2  ;;  %v873_v53 = vmul.f32 %v4135_v22, %v745_v43  ;;  %v4163_v43 = vunpack.c.l.bf16 %v4597_v34 }
  0xb9   : > { %v748_v49 = vsub.f32 %v5335_v40, %v620_v39 }
  0xba   : > { %v747_v54 = vsub.f32 %v5340_v44, %v619_v45  ;;  %v4598_v45 = vld [vmem:[%s5288_s26 + $0xd0] sm:$0xff]  }
  0xbb   : > { %1019 = vadd.xlane.f32.xlu1 %v864_v50  ;;  %v622_v50 = vmul.f32 %v4144_v41, %v5296_v2  ;;  %v876_v59 = vmul.f32 %v4140_v29, %v748_v49  ;;  %v4168_v49 = vunpack.c.h.bf16 %v4598_v45 }
  0xbc   : > { %1017 = vadd.xlane.f32.xlu0 %v863_v56  ;;  %v621_v56 = vmul.f32 %v4143_v46, %v5296_v2  ;;  %v875_v0 = vmul.f32 %v4139_v35, %v747_v54  ;;  %v4167_v54 = vunpack.c.l.bf16 %v4598_v45 }
  0xbd   : > { %v750_v60 = vsub.f32 %v5346_v51, %v622_v50 }
  0xbe   : > { %v749_v1 = vsub.f32 %v5351_v55, %v621_v56  ;;  %v4599_v56 = vld [vmem:[%s5288_s26 + $0xd8] sm:$0xff]  }
  0xbf   : > { %1023 = vadd.xlane.f32.xlu1 %v866_v61  ;;  %v624_v61 = vmul.f32 %v4148_v52, %v5296_v2  ;;  %v878_v8 = vmul.f32 %v4144_v41, %v750_v60  ;;  %v4172_v60 = vunpack.c.h.bf16 %v4599_v56 }
  0xc0   : > { %1021 = vadd.xlane.f32.xlu0 %v865_v4  ;;  %v623_v4 = vmul.f32 %v4147_v57, %v5296_v2  ;;  %v877_v16 = vmul.f32 %v4143_v46, %v749_v1  ;;  %v4171_v1 = vunpack.c.l.bf16 %v4599_v56 }
  0xc1   : > { %v752_v10 = vsub.f32 %v5357_v62, %v624_v61 }
  0xc2   : > { %v751_v17 = vsub.f32 %v5362_v3, %v623_v4  ;;  %v4600_v4 = vld [vmem:[%s5288_s26 + $0xe0] sm:$0xff]  }
  0xc3   : > { %1027 = vadd.xlane.f32.xlu1 %v868_v11  ;;  %v626_v11 = vmul.f32 %v4152_v63, %v5296_v2  ;;  %v880_v22 = vmul.f32 %v4148_v52, %v752_v10  ;;  %v4176_v10 = vunpack.c.h.bf16 %v4600_v4 }
  0xc4   : > { %1025 = vadd.xlane.f32.xlu0 %v867_v19  ;;  %v625_v19 = vmul.f32 %v4151_v5, %v5296_v2  ;;  %v879_v28 = vmul.f32 %v4147_v57, %v751_v17  ;;  %v4175_v17 = vunpack.c.l.bf16 %v4600_v4 }
  0xc5   : > { %v754_v23 = vsub.f32 %v5368_v12, %v626_v11 }
  0xc6   : > { %v753_v29 = vsub.f32 %v5373_v18, %v625_v19  ;;  %v4601_v19 = vld [vmem:[%s5288_s26 + $0xe8] sm:$0xff]  }
  0xc7   : > { %1031 = vadd.xlane.f32.xlu1 %v870_v24  ;;  %v628_v24 = vmul.f32 %v4156_v14, %v5296_v2  ;;  %v882_v35 = vmul.f32 %v4152_v63, %v754_v23  ;;  %v4180_v23 = vunpack.c.h.bf16 %v4601_v19 }
  0xc8   : > { %1029 = vadd.xlane.f32.xlu0 %v869_v31  ;;  %v627_v31 = vmul.f32 %v4155_v20, %v5296_v2  ;;  %v881_v39 = vmul.f32 %v4151_v5, %v753_v29  ;;  %v4179_v29 = vunpack.c.l.bf16 %v4601_v19 }
  0xc9   : > { %v756_v36 = vsub.f32 %v5379_v25, %v628_v24 }
  0xca   : > { %v755_v41 = vsub.f32 %v5384_v30, %v627_v31  ;;  %v4602_v31 = vld [vmem:[%s5288_s26 + $0xf0] sm:$0xff]  }
  0xcb   : > { %1035 = vadd.xlane.f32.xlu1 %v872_v37  ;;  %v630_v37 = vmul.f32 %v4160_v26, %v5296_v2  ;;  %v884_v46 = vmul.f32 %v4156_v14, %v756_v36  ;;  %v4184_v36 = vunpack.c.h.bf16 %v4602_v31 }
  0xcc   : > { %1033 = vadd.xlane.f32.xlu0 %v871_v42  ;;  %v629_v42 = vmul.f32 %v4159_v33, %v5296_v2  ;;  %v883_v50 = vmul.f32 %v4155_v20, %v755_v41  ;;  %v4183_v41 = vunpack.c.l.bf16 %v4602_v31 }
  0xcd   : > { %v758_v47 = vsub.f32 %v5313_v15, %v630_v37 }
  0xce   : > { %v757_v52 = vsub.f32 %v5309_v13, %v629_v42  ;;  %v4603_v42 = vld [vmem:[%s5288_s26 + $0xf8] sm:$0xff]  }
  0xcf   : > { %1039 = vadd.xlane.f32.xlu1 %v874_v48  ;;  %v632_v48 = vmul.f32 %v4164_v38, %v5296_v2  ;;  %v886_v57 = vmul.f32 %v4160_v26, %v758_v47  ;;  %v4188_v47 = vunpack.c.h.bf16 %v4603_v42 }
  0xd0   : > { %1037 = vadd.xlane.f32.xlu0 %v873_v53  ;;  %v631_v53 = vmul.f32 %v4163_v43, %v5296_v2  ;;  %v885_v61 = vmul.f32 %v4159_v33, %v757_v52  ;;  %v4187_v52 = vunpack.c.l.bf16 %v4603_v42 }
  0xd1   : > { %v760_v58 = vsub.f32 %v5304_v9, %v632_v48 }
  0xd2   : > { %v759_v63 = vsub.f32 %v5301_v7, %v631_v53  ;;  %v4604_v53 = vld [vmem:[%s5288_s26 + $0x100] sm:$0xff]  }
  0xd3   : > { %1043 = vadd.xlane.f32.xlu1 %v876_v59  ;;  %v634_v59 = vmul.f32 %v4168_v49, %v5296_v2  ;;  %v888_v5 = vmul.f32 %v4164_v38, %v760_v58  ;;  %v4192_v58 = vunpack.c.h.bf16 %v4604_v53 }
  0xd4   : > { %1041 = vadd.xlane.f32.xlu0 %v875_v0  ;;  %v633_v0 = vmul.f32 %v4167_v54, %v5296_v2  ;;  %v887_v11 = vmul.f32 %v4163_v43, %v759_v63  ;;  %v4191_v63 = vunpack.c.l.bf16 %v4604_v53 }
  0xd5   : > { %v762_v6 = vsub.f32 %v5324_v27, %v634_v59 }
  0xd6   : > { %v761_v14 = vsub.f32 %v5329_v32, %v633_v0  ;;  %v4605_v0 = vld [vmem:[%s5288_s26 + $0x108] sm:$0xff]  }
  0xd7   : > { %1047 = vadd.xlane.f32.xlu1 %v878_v8  ;;  %v636_v8 = vmul.f32 %v4172_v60, %v5296_v2  ;;  %v890_v20 = vmul.f32 %v4168_v49, %v762_v6  ;;  %v4196_v6 = vunpack.c.h.bf16 %v4605_v0 }
  0xd8   : > { %1045 = vadd.xlane.f32.xlu0 %v877_v16  ;;  %v635_v16 = vmul.f32 %v4171_v1, %v5296_v2  ;;  %v889_v24 = vmul.f32 %v4167_v54, %v761_v14  ;;  %v645_v14 = vmul.f32 %v4191_v63, %v5296_v2 }
  0xd9   : > { %v764_v21 = vsub.f32 %v5335_v40, %v636_v8  ;;  %v4606_v8 = vld [vmem:[%s5288_s26 + $0x110] sm:$0xff]  }
  0xda   : > { %v763_v26 = vsub.f32 %v5340_v44, %v635_v16  ;;  %v4195_v16 = vunpack.c.l.bf16 %v4605_v0  ;;  %v5545_v0 = vld [vmem:[%s5288_s26 + $0x130] sm:$0xff]  }
  0xdb   : > { %1051 = vadd.xlane.f32.xlu1 %v880_v22  ;;  %v638_v22 = vmul.f32 %v4176_v10, %v5296_v2  ;;  %v892_v33 = vmul.f32 %v4172_v60, %v764_v21  ;;  %v648_v21 = vmul.f32 %v4196_v6, %v5296_v2 }
  0xdc   : > { %1049 = vadd.xlane.f32.xlu0 %v879_v28  ;;  %v637_v28 = vmul.f32 %v4175_v17, %v5296_v2  ;;  %v891_v37 = vmul.f32 %v4171_v1, %v763_v26  ;;  %v4199_v26 = vunpack.c.l.bf16 %v4606_v8 }
  0xdd   : > { %v766_v34 = vsub.f32 %v5346_v51, %v638_v22 }
  0xde   : > { %v765_v38 = vsub.f32 %v5351_v55, %v637_v28  ;;  %v4607_v28 = vld [vmem:[%s5288_s26 + $0x118] sm:$0xff]  }
  0xdf   : > { %1055 = vadd.xlane.f32.xlu1 %v882_v35  ;;  %v640_v35 = vmul.f32 %v4180_v23, %v5296_v2  ;;  %v894_v43 = vmul.f32 %v4176_v10, %v766_v34  ;;  %v776_v34 = vsub.f32 %v5304_v9, %v648_v21  ;;  %v4215_v21 = vunpack.c.l.bf16 %v5545_v0 }
  0xe0   : > { %1053 = vadd.xlane.f32.xlu0 %v881_v39  ;;  %v639_v39 = vmul.f32 %v4179_v29, %v5296_v2  ;;  %v893_v48 = vmul.f32 %v4175_v17, %v765_v38  ;;  %v4200_v17 = vunpack.c.h.bf16 %v4606_v8  ;;  %v649_v38 = vmul.f32 %v4199_v26, %v5296_v2 }
  0xe1   : > { %v768_v45 = vsub.f32 %v5357_v62, %v640_v35  ;;  %v4204_v35 = vunpack.c.h.bf16 %v4607_v28 }
  0xe2   : > { %v767_v49 = vsub.f32 %v5362_v3, %v639_v39  ;;  %v650_v31 = vmul.f32 %v4200_v17, %v5296_v2  ;;  %v4203_v39 = vunpack.c.l.bf16 %v4607_v28 }
  0xe3   : > { %1059 = vadd.xlane.f32.xlu1 %v884_v46  ;;  %v642_v46 = vmul.f32 %v4184_v36, %v5296_v2  ;;  %v896_v54 = vmul.f32 %v4180_v23, %v768_v45  ;;  %v773_v23 = vsub.f32 %v5309_v13, %v645_v14  ;;  %v5525_v45 = vld [vmem:[%s5288_s26 + $0x128] sm:$0xff]   ;;  %v4216_v14 = vunpack.c.h.bf16 %v5545_v0 }
  0xe4   : > { %1057 = vadd.xlane.f32.xlu0 %v883_v50  ;;  %v641_v50 = vmul.f32 %v4183_v41, %v5296_v2  ;;  %v895_v59 = vmul.f32 %v4179_v29, %v767_v49  ;;  %v1221_v29 = vlaneseq }
  0xe5   : > { %v770_v56 = vsub.f32 %v5368_v12, %v642_v46  ;;  %v904_v46 = vmul.f32 %v4196_v6, %v776_v34 }
  0xe6   : > { %v769_v60 = vsub.f32 %v5373_v18, %v641_v50  ;;  %v5521_v42 = vand.u32 127, %v1221_v29  ;;  %v5529_v50 = vshrl.u32 %v1221_v29, 7 }
  0xe7   : > { %1063 = vadd.xlane.f32.xlu1 %v886_v57  ;;  %v644_v57 = vmul.f32 %v4188_v47, %v5296_v2  ;;  %v898_v1 = vmul.f32 %v4184_v36, %v770_v56  ;;  %v901_v36 = vmul.f32 %v4191_v63, %v773_v23  ;;  %v4211_v63 = vunpack.c.l.bf16 %v5525_v45 }
  0xe8   : > { %1061 = vadd.xlane.f32.xlu0 %v885_v61  ;;  %v643_v61 = vmul.f32 %v4187_v52, %v5296_v2  ;;  %v897_v10 = vmul.f32 %v4183_v41, %v769_v60  ;;  %v4608_v41 = vld [vmem:[%s5288_s26 + $0x120] sm:$0xff]   ;;  %7355 = vst [vmem:[#allocation24_spill] sm:$0xff] %v5529_v50  ;;  %v1367_v53 = vadd.s32 4294967280, %v5521_v42  ;;  %v5540_v60 = vsub.s32 %v5521_v42, %v5529_v50 }
  0xe9   : > { %v772_v4 = vsub.f32 %v5379_v25, %v644_v57  ;;  %v4208_v9 = vunpack.c.h.bf16 %v4608_v41  ;;  %v1388_v6 = vadd.s32 4294967256, %v5521_v42 }
  0xeb   : > { %1067 = vadd.xlane.f32.xlu1 %v888_v5  ;;  %v646_v5 = vmul.f32 %v4192_v58, %v5296_v2  ;;  %v900_v19 = vmul.f32 %v4188_v47, %v772_v4  ;;  %v652_v47 = vmul.f32 %v4204_v35, %v5296_v2 }
  0xec   : > { %1065 = vadd.xlane.f32.xlu0 %v887_v11  ;;  %v771_v11 = vsub.f32 %v5384_v30, %v643_v61 }
  0xed   : > { %v780_v57 = vsub.f32 %v5335_v40, %v652_v47  ;;  %v1360_v40 = vadd.s32 4294967288, %v5521_v42  ;;  %v1409_v47 = vadd.s32 4294967232, %v5521_v42 }
  0xee   : > { %v899_v22 = vmul.f32 %v4187_v52, %v771_v11  ;;  %v651_v52 = vmul.f32 %v4203_v39, %v5296_v2 }
  0xef   : > { %1071 = vadd.xlane.f32.xlu1 %v890_v20  ;;  %v774_v20 = vsub.f32 %v5313_v15, %v646_v5  ;;  %v908_v8 = vmul.f32 %v4204_v35, %v780_v57 }
  0xf0   : > { %1069 = vadd.xlane.f32.xlu0 %v889_v24  ;;  %v647_v24 = vmul.f32 %v4195_v16, %v5296_v2  ;;  %v779_v61 = vsub.f32 %v5340_v44, %v651_v52  ;;  %v1381_v44 = vadd.s32 4294967264, %v5521_v42 }
  0xf2   : > { %v5575_v28 = vsub.s32 %v1381_v44, %v5529_v50  ;;  %v1430_v44 = vadd.s32 4294967208, %v5521_v42 }
  0xf3   : > { %1075 = vadd.xlane.f32.xlu1 %v892_v33  ;;  %v902_v33 = vmul.f32 %v4192_v58, %v774_v20  ;;  %v654_v58 = vmul.f32 %v4208_v9, %v5296_v2  ;;  %v1402_v20 = vadd.s32 4294967240, %v5521_v42 }
  0xf4   : > { %1073 = vadd.xlane.f32.xlu0 %v891_v37  ;;  %v775_v37 = vsub.f32 %v5301_v7, %v647_v24  ;;  %v777_v7 = vsub.f32 %v5329_v32, %v649_v38  ;;  %v5567_v24 = vsub.s32 %v1360_v40, %v5529_v50  ;;  %v657_v38 = vmul.f32 %v4215_v21, %v5296_v2 }
  0xf5   : > { %v5647_v0 = vsub.s32 %v1430_v44, %v5529_v50 }
  0xf6   : > { %v903_v49 = vmul.f32 %v4195_v16, %v775_v37  ;;  %v905_v32 = vmul.f32 %v4199_v26, %v777_v7  ;;  %v5572_v26 = vsub.s32 %v1388_v6, %v5529_v50  ;;  %v5586_v37 = vsub.s32 %v1402_v20, %v5529_v50 }
  0xf7   : > { %1079 = vadd.xlane.f32.xlu1 %v894_v43  ;;  %v778_v43 = vsub.f32 %v5324_v27, %v650_v31  ;;  %v4212_v27 = vunpack.c.h.bf16 %v5525_v45  ;;  %v5621_v6 = vsub.s32 %v1409_v47, %v5529_v50  ;;  %v5667_v47 = vld [vmem:[%s5288_s26 + $0x158] sm:$0xff]  }
  0xf8   : > { %1077 = vadd.xlane.f32.xlu0 %v893_v48  ;;  %v4207_v48 = vunpack.c.l.bf16 %v4608_v41 }
  0xf9   : > { %v906_v56 = vmul.f32 %v4200_v17, %v778_v43  ;;  %v656_v4 = vmul.f32 %v4212_v27, %v5296_v2  ;;  %v907_v17 = vmul.f32 %v4203_v39, %v779_v61 }
  0xfb   : > { %1083 = vadd.xlane.f32.xlu1 %v896_v54  ;;  %v1374_v54 = vadd.s32 4294967272, %v5521_v42 }
  0xfc   : > { %1081 = vadd.xlane.f32.xlu0 %v895_v59  ;;  %v653_v59 = vmul.f32 %v4207_v48, %v5296_v2 }
  0xfd   : > { %v5553_v5 = vsub.s32 %v1374_v54, %v5529_v50 }
  0xfe   : > { %v781_v11 = vsub.f32 %v5351_v55, %v653_v59  ;;  %v1395_v55 = vadd.s32 4294967248, %v5521_v42 }
  0xff   : > { %1087 = vadd.xlane.f32.xlu1 %v898_v1  ;;  %v5548_v1 = vsub.s32 %v1367_v53, %v5529_v50 }
 0x100   : > { %1085 = vadd.xlane.f32.xlu0 %v897_v10  ;;  %v782_v10 = vsub.f32 %v5346_v51, %v654_v58  ;;  %v784_v51 = vsub.f32 %v5357_v62, %v656_v4  ;;  %v909_v31 = vmul.f32 %v4207_v48, %v781_v11  ;;  %v5582_v62 = vld [vmem:[%s5288_s26 + $0x140] sm:$0xff]   ;;  %v5593_v45 = vsub.s32 %v1395_v55, %v5529_v50 }
 0x101   : > { %v785_v58 = vsub.f32 %v5373_v18, %v657_v38 }
 0x102   : > { %v910_v29 = vmul.f32 %v4208_v9, %v782_v10  ;;  %v912_v43 = vmul.f32 %v4212_v27, %v784_v51  ;;  %v4223_v27 = vunpack.c.l.bf16 %v5582_v62 }
 0x103   : > { %1091 = vadd.xlane.f32.xlu1 %v900_v19  ;;  %v655_v19 = vmul.f32 %v4211_v63, %v5296_v2 }
 0x104   : > { %1089 = vadd.xlane.f32.xlu0 %v899_v22  ;;  %v5564_v22 = vld [vmem:[%s5288_s26 + $0x138] sm:$0xff]  }
 0x105   : > { %v4220_v34 = vunpack.c.h.bf16 %v5564_v22  ;;  %v4219_v39 = vunpack.c.l.bf16 %v5564_v22  ;;  %v1444_v22 = vadd.s32 4294967192, %v5521_v42 }
 0x107   : > { %1095 = vadd.xlane.f32.xlu1 %v902_v33  ;;  %v658_v33 = vmul.f32 %v4216_v14, %v5296_v2  ;;  %v660_v53 = vmul.f32 %v4220_v34, %v5296_v2  ;;  %v659_v59 = vmul.f32 %v4219_v39, %v5296_v2 }
 0x108   : > { %1093 = vadd.xlane.f32.xlu0 %v901_v36  ;;  %v783_v36 = vsub.f32 %v5362_v3, %v655_v19 }
 0x109   : > { %v786_v52 = vsub.f32 %v5368_v12, %v658_v33  ;;  %v788_v11 = vsub.f32 %v5379_v25, %v660_v53  ;;  %v787_v51 = vsub.f32 %v5384_v30, %v659_v59  ;;  %v1437_v53 = vadd.s32 4294967200, %v5521_v42 }
 0x10a   : > { %v911_v57 = vmul.f32 %v4211_v63, %v783_v36  ;;  %v5653_v36 = vld [vmem:[#allocation7] ss:$0 sm:$0xff]  ;;  %v4236_v59 = vunpack.c.h.bf16 %v5667_v47 }
 0x10b   : > { %1099 = vadd.xlane.f32.xlu1 %v904_v46  ;;  %v1416_v46 = vadd.s32 4294967224, %v5521_v42  ;;  %v914_v10 = vmul.f32 %v4216_v14, %v786_v52 }
 0x10c   : > { %1097 = vadd.xlane.f32.xlu0 %v903_v49  ;;  %v4224_v49 = vunpack.c.h.bf16 %v5582_v62 }
 0x10d   : > { %v5618_v4 = vsub.s32 %v1416_v46, %v5529_v50 }
 0x10f   : > { %1103 = vadd.xlane.f32.xlu1 %v906_v56 }
 0x110   : > { %1101 = vadd.xlane.f32.xlu0 %v905_v32  ;;  %v970_v16 = vpop.xlane.xlu1 %969  ;;  %v5613_v32 = vld [vmem:[%s5288_s26 + $0x148] sm:$0xff]  }
 0x111   : > { %v966_v23 = vpop.xlane.xlu0 %965  ;;  %v1371_v7 = vrot.slane %v970_v16, %v5548_v1  ;;  %v661_v16 = vmul.f32 %v4223_v27, %v5296_v2  ;;  %v4227_v55 = vunpack.c.l.bf16 %v5613_v32 }
 0x112   : > { %v1359_v3 = vrot.slane %v966_v23, %v5540_v60  ;;  %v913_v23 = vmul.f32 %v4215_v21, %v785_v58  ;;  %v916_v21 = vmul.f32 %v4220_v34, %v788_v11  ;;  %v1458_v11 = vadd.s32 4294967176, %v5521_v42 }
 0x113   : > { %1107 = vadd.xlane.f32.xlu1 %v908_v8  ;;  %v662_v8 = vmul.f32 %v4224_v49, %v5296_v2 }
 0x114   : > { %1105 = vadd.xlane.f32.xlu0 %v907_v17  ;;  %v972_v35 = vpop.xlane.xlu1 %971  ;;  %v4228_v17 = vunpack.c.h.bf16 %v5613_v32  ;;  %v5737_v32 = vsub.s32 %v1458_v11, %v5529_v50  ;;  %v5775_v11 = vld [vmem:[%s5277_s15 + $0x40] sm:$0xff] }
 0x115   : > { %v968_v41 = vpop.xlane.xlu0 %967  ;;  %v1378_v9 = vrot.slane %v972_v35, %v5553_v5  ;;  %v790_v30 = vsub.f32 %v5313_v15, %v662_v8  ;;  %v789_v35 = vsub.f32 %v5309_v13, %v661_v16  ;;  %v915_v15 = vmul.f32 %v4219_v39, %v787_v51 }
 0x116   : > { %v1364_v48 = vrot.slane %v968_v41, %v5567_v24  ;;  %v664_v38 = vmul.f32 %v5653_v36, %v4228_v17  ;;  %v663_v13 = vmul.f32 %v5653_v36, %v4227_v55  ;;  %7356 = vst [vmem:[#allocation25_spill] sm:$0xff] %v5737_v32 }
 0x117   : > { %1111 = vadd.xlane.f32.xlu1 %v910_v29  ;;  %v5640_v29 = vld [vmem:[%s5288_s26 + $0x150] sm:$0xff]   ;;  %v918_v52 = vmul.f32 %v4224_v49, %v790_v30 }
 0x118   : > { %v1366_v54 = vsel %vm1365_vm0, %v1364_v48, %v1359_v3  ;;  %1109 = vadd.xlane.f32.xlu0 %v909_v31  ;;  %v976_v56 = vpop.xlane.xlu1 %975  ;;  %v1423_v31 = vadd.s32 4294967216, %v5521_v42  ;;  %v4232_v41 = vunpack.c.h.bf16 %v5640_v29  ;;  %v4231_v34 = vunpack.c.l.bf16 %v5640_v29 }
 0x119   : > { %v1373_v12 = vsel %vm1372_vm1, %v1371_v7, %v1366_v54  ;;  %v1392_v61 = vrot.slane %v976_v56, %v5572_v26  ;;  %v974_v40 = vpop.xlane.xlu0 %973  ;;  %v917_v54 = vmul.f32 %v4223_v27, %v789_v35  ;;  %v5680_v56 = vld [vmem:[%s5277_s15 + $0x18] sm:$0xff] }
 0x11a   : > { %v1380_v18 = vsel %vm1379_vm2, %v1378_v9, %v1373_v12  ;;  %v1385_v63 = vrot.slane %v974_v40, %v5575_v28  ;;  %v5672_v7 = vsub.s32 %v1423_v31, %v5529_v50  ;;  %v666_v58 = vmul.f32 %v5653_v36, %v4232_v41  ;;  %v5688_v12 = vld [vmem:[%s5288_s26 + $0x160] sm:$0xff]  }
 0x11b   : > { %1115 = vadd.xlane.f32.xlu1 %v912_v43  ;;  %v665_v40 = vmul.f32 %v5653_v36, %v4231_v34  ;;  %v4239_v31 = vunpack.c.l.bf16 %v5688_v12 }
 0x11c   : > { %v1387_v19 = vsel %vm1386_vm3, %v1385_v63, %v1380_v18  ;;  %1113 = vadd.xlane.f32.xlu0 %v911_v57  ;;  %v980_v20 = vpop.xlane.xlu1 %979  ;;  %v792_v57 = vsub.f32 %v5680_v56, %v664_v38  ;;  %v4235_v18 = vunpack.c.l.bf16 %v5667_v47  ;;  %v5732_v38 = vld [vmem:[%s5288_s26 + $0x168] sm:$0xff]  }
 0x11d   : > { %v1406_v14 = vrot.slane %v980_v20, %v5586_v37  ;;  %v1394_v25 = vsel %vm1393_vm4, %v1392_v61, %v1387_v19  ;;  %v978_v2 = vpop.xlane.xlu0 %977  ;;  %v5692_v61 = vld [vmem:[%s5277_s15 + $0x10] sm:$0xff]  ;;  %v5707_v19 = vsub.s32 %v1437_v53, %v5529_v50  ;;  %v1451_v20 = vadd.s32 4294967184, %v5521_v42 }
 0x11e   : > { %v1399_v33 = vrot.slane %v978_v2, %v5593_v45  ;;  %v791_v27 = vsub.f32 %v5692_v61, %v663_v13  ;;  %v920_v51 = vmul.f32 %v4228_v17, %v792_v57  ;;  %v668_v2 = vmul.f32 %v5653_v36, %v4236_v59 }
 0x11f   : > { %1119 = vadd.xlane.f32.xlu1 %v914_v10  ;;  %v5702_v10 = vsub.s32 %v1444_v22, %v5529_v50  ;;  %v667_v35 = vmul.f32 %v5653_v36, %v4235_v18  ;;  %v5741_v13 = vsub.s32 %v1451_v20, %v5529_v50 }
 0x120   : > { %v1401_v43 = vsel %vm1400_vm5, %v1399_v33, %v1394_v25  ;;  %1117 = vadd.xlane.f32.xlu0 %v913_v23  ;;  %v984_v46 = vpop.xlane.xlu1 %983  ;;  %v4240_v23 = vunpack.c.h.bf16 %v5688_v12  ;;  %v919_v30 = vmul.f32 %v4227_v55, %v791_v27 }
 0x121   : > { %v1420_v3 = vrot.slane %v984_v46, %v5618_v4  ;;  %v1408_v9 = vsel %vm1407_vm6, %v1406_v14, %v1401_v43  ;;  %v982_v48 = vpop.xlane.xlu0 %981  ;;  %v5714_v14 = vld [vmem:[%s5277_s15 + $0x28] sm:$0xff]  ;;  %7357 = vst [vmem:[#allocation26_spill] sm:$0xff] %v5741_v13 }
 0x122   : > { %v1413_v39 = vrot.slane %v982_v48, %v5621_v6  ;;  %v794_v25 = vsub.f32 %v5714_v14, %v666_v58  ;;  %v5749_v48 = vld [vmem:[%s5277_s15 + $0x38] sm:$0xff]  ;;  %v5758_v58 = vld [vmem:[%s5277_s15 + $0x30] sm:$0xff] }
 0x123   : > { %1123 = vadd.xlane.f32.xlu1 %v916_v21  ;;  %v5725_v21 = vld [vmem:[%s5277_s15 + $0x20] sm:$0xff]  ;;  %v796_v22 = vsub.f32 %v5749_v48, %v668_v2 }
 0x124   : > { %v1415_v62 = vsel %vm1414_vm7, %v1413_v39, %v1408_v9  ;;  %1121 = vadd.xlane.f32.xlu0 %v915_v15  ;;  %v988_v49 = vpop.xlane.xlu1 %987  ;;  %v793_v17 = vsub.f32 %v5725_v21, %v665_v40  ;;  %v922_v9 = vmul.f32 %v4232_v41, %v794_v25  ;;  %v669_v39 = vmul.f32 %v5653_v36, %v4239_v31 }
 0x125   : > { %v1434_v63 = vrot.slane %v988_v49, %v5647_v0  ;;  %v1422_v44 = vsel %vm1421_vm8, %v1420_v3, %v1415_v62  ;;  %v986_v8 = vpop.xlane.xlu0 %985  ;;  %v670_v3 = vmul.f32 %v5653_v36, %v4240_v23  ;;  %v795_v41 = vsub.f32 %v5758_v58, %v667_v35  ;;  %v5763_v49 = vld [vmem:[%s5288_s26 + $0x170] sm:$0xff]  }
 0x126   : > { %v1427_v16 = vrot.slane %v986_v8, %v5672_v7  ;;  %v921_v57 = vmul.f32 %v4231_v34, %v793_v17  ;;  %v4243_v62 = vunpack.c.l.bf16 %v5732_v38  ;;  %v924_v8 = vmul.f32 %v4236_v59, %v796_v22 }
 0x127   : > { %1127 = vadd.xlane.f32.xlu1 %v918_v52  ;;  %v4244_v52 = vunpack.c.h.bf16 %v5732_v38  ;;  %v4247_v59 = vunpack.c.l.bf16 %v5763_v49 }
 0x128   : > { %v1429_v33 = vsel %vm1428_vm9, %v1427_v16, %v1422_v44  ;;  %1125 = vadd.xlane.f32.xlu0 %v917_v54  ;;  %v992_v42 = vpop.xlane.xlu1 %991  ;;  %v5769_v44 = vld [vmem:[%s5277_s15 + $0x48] sm:$0xff]  ;;  %v797_v16 = vsub.f32 %v5775_v11, %v669_v39 }
 0x129   : > { %v1448_v43 = vrot.slane %v992_v42, %v5702_v10  ;;  %v1436_v46 = vsel %vm7330_vm10, %v1434_v63, %v1429_v33  ;;  %v990_v15 = vpop.xlane.xlu0 %989  ;;  %v798_v34 = vsub.f32 %v5769_v44, %v670_v3  ;;  %v672_v20 = vmul.f32 %v5653_v36, %v4244_v52 }
 0x12a   : > { %v1441_v55 = vrot.slane %v990_v15, %v5707_v19  ;;  %v923_v33 = vmul.f32 %v4235_v18, %v795_v41  ;;  %v671_v42 = vmul.f32 %v5653_v36, %v4243_v62  ;;  %v925_v18 = vmul.f32 %v4239_v31, %v797_v16 }
 0x12b   : > { %1131 = vadd.xlane.f32.xlu1 %v920_v51  ;;  %v4248_v51 = vunpack.c.h.bf16 %v5763_v49  ;;  %v926_v47 = vmul.f32 %v4240_v23, %v798_v34  ;;  %v673_v23 = vmul.f32 %v5653_v36, %v4247_v59 }
 0x12c   : > { %v1443_v53 = vsel %vm7329_vm11, %v1441_v55, %v1436_v46  ;;  %1129 = vadd.xlane.f32.xlu0 %v919_v30  ;;  %v996_v54 = vpop.xlane.xlu1 %995  ;;  %v5786_v30 = vld [vmem:[%s5288_s26 + $0x178] sm:$0xff]  }
 0x12d   : > { %v1462_v27 = vrot.slane %v996_v54, %v5737_v32  ;;  %v1450_v40 = vsel %vm1449_vm12, %v1448_v43, %v1443_v53  ;;  %v994_v63 = vpop.xlane.xlu0 %993  ;;  %v5796_v46 = vld [vmem:[%s5277_s15 + $0x58] sm:$0xff]  ;;  %v674_v55 = vmul.f32 %v5653_v36, %v4248_v51  ;;  %v4252_v3 = vunpack.c.h.bf16 %v5786_v30  ;;  %v5806_v53 = vld [vmem:[%s5277_s15 + $0x50] sm:$0xff] }
 0x12e   : > { %v1455_v29 = vrot.slane %v994_v63, %v5741_v13  ;;  %v800_v15 = vsub.f32 %v5796_v46, %v672_v20  ;;  %v799_v12 = vsub.f32 %v5806_v53, %v671_v42  ;;  %v4251_v31 = vunpack.c.l.bf16 %v5786_v30 }
 0x12f   : > { %1135 = vadd.xlane.f32.xlu1 %v922_v9  ;;  %v5802_v9 = vld [vmem:[%s5288_s26 + $0x180] sm:$0xff]  }
 0x130   : > { %v1457_v25 = vsel %vm1456_vm13, %v1455_v29, %v1450_v40  ;;  %1133 = vadd.xlane.f32.xlu0 %v921_v57  ;;  %v1000_v2 = vpop.xlane.xlu1 %999  ;;  %v4256_v49 = vunpack.c.h.bf16 %v5802_v9  ;;  %v5815_v40 = vld [vmem:[%s5277_s15 + $0x68] sm:$0xff]  ;;  %v676_v29 = vmul.f32 %v5653_v36, %v4252_v3  ;;  %v4255_v34 = vunpack.c.l.bf16 %v5802_v9 }
 0x131   : > { %v5789_v17 = vsel %vm1463_vm14, %v1462_v27, %v1457_v25  ;;  %v1472_v35 = vrot.slane %v1000_v2, %v5567_v24  ;;  %v998_v38 = vpop.xlane.xlu0 %997  ;;  %v928_v27 = vmul.f32 %v4244_v52, %v800_v15  ;;  %v802_v63 = vsub.f32 %v5815_v40, %v674_v55  ;;  %v5822_v25 = vld [vmem:[%s5277_s15 + $0x60] sm:$0xff] }
 0x132   : > { %v1468_v43 = vrot.slane %v998_v38, %v5540_v60  ;;  %v927_v20 = vmul.f32 %v4243_v62, %v799_v12  ;;  %v801_v2 = vsub.f32 %v5822_v25, %v673_v23  ;;  %v675_v52 = vmul.f32 %v5653_v36, %v4251_v31  ;;  %v5841_v12 = vld [vmem:[%s5277_s15 + $0x70] sm:$0xff] }
 0x133   : > { %1139 = vadd.xlane.f32.xlu1 %v924_v8  ;;  %v930_v62 = vmul.f32 %v4248_v51, %v802_v63  ;;  %v677_v15 = vmul.f32 %v5653_v36, %v4255_v34 }
 0x134   : > { %v1473_v22 = vsel %vm1365_vm0, %v1472_v35, %v1468_v43  ;;  %1137 = vadd.xlane.f32.xlu0 %v923_v33  ;;  %v1004_v39 = vpop.xlane.xlu1 %1003  ;;  %v5827_v33 = vld [vmem:[%s5288_s26 + $0x188] sm:$0xff]   ;;  %v678_v43 = vmul.f32 %v5653_v36, %v4256_v49  ;;  %v803_v23 = vsub.f32 %v5841_v12, %v675_v52 }
 0x135   : > { %v1482_v54 = vrot.slane %v1004_v39, %v5553_v5  ;;  %v1002_v57 = vpop.xlane.xlu0 %1001  ;;  %v4260_v55 = vunpack.c.h.bf16 %v5827_v33  ;;  %v929_v39 = vmul.f32 %v4247_v59, %v801_v2  ;;  %v4259_v51 = vunpack.c.l.bf16 %v5827_v33 }
 0x136   : > { %v1477_v41 = vrot.slane %v1002_v57, %v5548_v1 }
 0x137   : > { %1143 = vadd.xlane.f32.xlu1 %v926_v47  ;;  %v5834_v47 = vld [vmem:[%s5277_s15 + $0x78] sm:$0xff]  ;;  %v680_v2 = vmul.f32 %v5653_v36, %v4260_v55 }
 0x138   : > { %v1478_v8 = vsel %vm1372_vm1, %v1477_v41, %v1473_v22  ;;  %1141 = vadd.xlane.f32.xlu0 %v925_v18  ;;  %v1008_v16 = vpop.xlane.xlu1 %1007  ;;  %v804_v18 = vsub.f32 %v5834_v47, %v676_v29  ;;  %v5852_v29 = vld [vmem:[%s5277_s15 + $0x8] sm:$0xff] }
 0x139   : > { %v1492_v42 = vrot.slane %v1008_v16, %v5572_v26  ;;  %v1483_v30 = vsel %vm1379_vm2, %v1482_v54, %v1478_v8  ;;  %v1006_v35 = vpop.xlane.xlu0 %1005  ;;  %v5846_v54 = vld [vmem:[%s5288_s26 + $0x190] sm:$0xff]   ;;  %v806_v59 = vsub.f32 %v5852_v29, %v678_v43  ;;  %v5856_v16 = vld [vmem:[%s5277_s15] sm:$0xff] }
 0x13a   : > { %v1487_v38 = vrot.slane %v1006_v35, %v5575_v28  ;;  %v932_v8 = vmul.f32 %v4252_v3, %v804_v18  ;;  %v4264_v52 = vunpack.c.h.bf16 %v5846_v54  ;;  %v679_v35 = vmul.f32 %v5653_v36, %v4259_v51  ;;  %v5865_v43 = vld [vmem:[%s5288_s26 + $0x198] sm:$0xff]  }
 0x13b   : > { %1147 = vadd.xlane.f32.xlu1 %v928_v27 }
 0x13c   : > { %v1488_v9 = vsel %vm1386_vm3, %v1487_v38, %v1483_v30  ;;  %1145 = vadd.xlane.f32.xlu0 %v927_v20  ;;  %v1012_v22 = vpop.xlane.xlu1 %1011  ;;  %v805_v20 = vsub.f32 %v5856_v16, %v677_v15  ;;  %v931_v30 = vmul.f32 %v4251_v31, %v803_v23  ;;  %v4263_v38 = vunpack.c.l.bf16 %v5846_v54 }
 0x13d   : > { %v1502_v57 = vrot.slane %v1012_v22, %v5586_v37  ;;  %v1493_v41 = vsel %vm1393_vm4, %v1492_v42, %v1488_v9  ;;  %v1010_v27 = vpop.xlane.xlu0 %1009  ;;  %v934_v9 = vmul.f32 %v4256_v49, %v806_v59  ;;  %v682_v31 = vmul.f32 %v5653_v36, %v4264_v52 }
 0x13e   : > { %v1497_v63 = vrot.slane %v1010_v27, %v5593_v45  ;;  %v933_v22 = vmul.f32 %v4255_v34, %v805_v20  ;;  %v4268_v23 = vunpack.c.h.bf16 %v5865_v43  ;;  %v4267_v49 = vunpack.c.l.bf16 %v5865_v43 }
 0x13f   : > { %1151 = vadd.xlane.f32.xlu1 %v930_v62 }
 0x140   : > { %v1498_v33 = vsel %vm1400_vm5, %v1497_v63, %v1493_v41  ;;  %1149 = vadd.xlane.f32.xlu0 %v929_v39  ;;  %v1016_v42 = vpop.xlane.xlu1 %1015  ;;  %v808_v39 = vsub.f32 %v5680_v56, %v680_v2  ;;  %v5874_v41 = vld [vmem:[%s5288_s26 + $0x1a0] sm:$0xff]   ;;  %v681_v63 = vmul.f32 %v5653_v36, %v4263_v38 }
 0x141   : > { %v1512_v3 = vrot.slane %v1016_v42, %v5618_v4  ;;  %v1503_v62 = vsel %vm1407_vm6, %v1502_v57, %v1498_v33  ;;  %v1014_v18 = vpop.xlane.xlu0 %1013  ;;  %v807_v57 = vsub.f32 %v5692_v61, %v679_v35  ;;  %v4272_v2 = vunpack.c.h.bf16 %v5874_v41 }
 0x142   : > { %v1507_v15 = vrot.slane %v1014_v18, %v5621_v6  ;;  %v936_v33 = vmul.f32 %v4260_v55, %v808_v39  ;;  %v810_v42 = vsub.f32 %v5714_v14, %v682_v31  ;;  %v4271_v35 = vunpack.c.l.bf16 %v5874_v41 }
 0x143   : > { %1155 = vadd.xlane.f32.xlu1 %v932_v8  ;;  %v935_v18 = vmul.f32 %v4259_v51, %v807_v57  ;;  %v686_v41 = vmul.f32 %v5653_v36, %v4272_v2 }
 0x144   : > { %v1508_v54 = vsel %vm1414_vm7, %v1507_v15, %v1503_v62  ;;  %1153 = vadd.xlane.f32.xlu0 %v931_v30  ;;  %v1020_v27 = vpop.xlane.xlu1 %1019  ;;  %v684_v30 = vmul.f32 %v5653_v36, %v4268_v23  ;;  %v683_v15 = vmul.f32 %v5653_v36, %v4267_v49 }
 0x145   : > { %v1522_v34 = vrot.slane %v1020_v27, %v5647_v0  ;;  %v1513_v59 = vsel %vm1421_vm8, %v1512_v3, %v1508_v54  ;;  %v1018_v8 = vpop.xlane.xlu0 %1017  ;;  %v809_v3 = vsub.f32 %v5725_v21, %v681_v63  ;;  %v5891_v54 = vld [vmem:[%s5288_s26 + $0x1a8] sm:$0xff]   ;;  %v685_v27 = vmul.f32 %v5653_v36, %v4271_v35 }
 0x146   : > { %v1517_v20 = vrot.slane %v1018_v8, %v5672_v7  ;;  %v812_v51 = vsub.f32 %v5749_v48, %v684_v30  ;;  %v4276_v57 = vunpack.c.h.bf16 %v5891_v54 }
 0x147   : > { %1159 = vadd.xlane.f32.xlu1 %v934_v9  ;;  %v937_v8 = vmul.f32 %v4263_v38, %v809_v3  ;;  %v813_v38 = vsub.f32 %v5775_v11, %v685_v27 }
 0x148   : > { %v1518_v43 = vsel %vm1428_vm9, %v1517_v20, %v1513_v59  ;;  %1157 = vadd.xlane.f32.xlu0 %v933_v22  ;;  %v1024_v62 = vpop.xlane.xlu1 %1023  ;;  %v938_v22 = vmul.f32 %v4264_v52, %v810_v42  ;;  %v4275_v20 = vunpack.c.l.bf16 %v5891_v54  ;;  %v688_v3 = vmul.f32 %v5653_v36, %v4276_v57 }
 0x149   : > { %v1532_v9 = vrot.slane %v1024_v62, %v5702_v10  ;;  %v1523_v55 = vsel %vm7330_vm10, %v1522_v34, %v1518_v43  ;;  %v1022_v39 = vpop.xlane.xlu0 %1021  ;;  %v811_v34 = vsub.f32 %v5758_v58, %v683_v15  ;;  %v5904_v43 = vld [vmem:[%s5288_s26 + $0x1b0] sm:$0xff]   ;;  %v814_v62 = vsub.f32 %v5769_v44, %v686_v41 }
 0x14a   : > { %v1527_v31 = vrot.slane %v1022_v39, %v5707_v19  ;;  %v4280_v15 = vunpack.c.h.bf16 %v5904_v43  ;;  %v687_v39 = vmul.f32 %v5653_v36, %v4275_v20 }
 0x14b   : > { %1163 = vadd.xlane.f32.xlu1 %v936_v33 }
 0x14c   : > { %v1528_v63 = vsel %vm7329_vm11, %v1527_v31, %v1523_v55  ;;  %1161 = vadd.xlane.f32.xlu0 %v935_v18  ;;  %v1028_v59 = vpop.xlane.xlu1 %1027  ;;  %v940_v18 = vmul.f32 %v4268_v23, %v812_v51  ;;  %v4279_v31 = vunpack.c.l.bf16 %v5904_v43 }
 0x14d   : > { %v1542_v33 = vrot.slane %v1028_v59, %v5737_v32  ;;  %v1533_v52 = vsel %vm1449_vm12, %v1532_v9, %v1528_v63  ;;  %v1026_v42 = vpop.xlane.xlu0 %1025  ;;  %v939_v9 = vmul.f32 %v4267_v49, %v811_v34  ;;  %v5917_v63 = vld [vmem:[%s5288_s26 + $0x1b8] sm:$0xff]   ;;  %v942_v59 = vmul.f32 %v4272_v2, %v814_v62 }
 0x14e   : > { %v1537_v30 = vrot.slane %v1026_v42, %v5741_v13  ;;  %v941_v49 = vmul.f32 %v4271_v35, %v813_v38  ;;  %v690_v34 = vmul.f32 %v5653_v36, %v4280_v15  ;;  %v4284_v43 = vunpack.c.h.bf16 %v5917_v63 }
 0x14f   : > { %1167 = vadd.xlane.f32.xlu1 %v938_v22  ;;  %v4283_v2 = vunpack.c.l.bf16 %v5917_v63 }
 0x150   : > { %v1538_v54 = vsel %vm1456_vm13, %v1537_v30, %v1533_v52  ;;  %1165 = vadd.xlane.f32.xlu0 %v937_v8  ;;  %v1032_v55 = vpop.xlane.xlu1 %1031  ;;  %v816_v8 = vsub.f32 %v5796_v46, %v688_v3  ;;  %v5930_v52 = vld [vmem:[%s5288_s26 + $0x1c0] sm:$0xff]   ;;  %v689_v30 = vmul.f32 %v5653_v36, %v4279_v31 }
 0x151   : > { %v1543_v23 = vsel %vm1463_vm14, %v1542_v33, %v1538_v54  ;;  %v1551_v41 = vrot.slane %v1032_v55, %v5567_v24  ;;  %v1030_v22 = vpop.xlane.xlu0 %1029  ;;  %v4288_v38 = vunpack.c.h.bf16 %v5930_v52  ;;  %v818_v54 = vsub.f32 %v5815_v40, %v690_v34 }
 0x152   : > { %v5923_v51 = vsel %vm7314_vm15, %v1543_v23, %v5789_v17  ;;  %v1547_v27 = vrot.slane %v1030_v22, %v5540_v60  ;;  %v815_v17 = vsub.f32 %v5806_v53, %v687_v39  ;;  %v944_v3 = vmul.f32 %v4276_v57, %v816_v8 }
 0x153   : > { %1171 = vadd.xlane.f32.xlu1 %v940_v18  ;;  %v692_v55 = vmul.f32 %v5653_v36, %v4284_v43  ;;  %v691_v22 = vmul.f32 %v5653_v36, %v4283_v2  ;;  %vm7315_vm15 = vcmask 1042434  }
 0x154   : > { %v1552_v33 = vsel %vm1365_vm0, %v1551_v41, %v1547_v27  ;;  %1169 = vadd.xlane.f32.xlu0 %v939_v9  ;;  %v1036_v42 = vpop.xlane.xlu1 %1035  ;;  %v4287_v9 = vunpack.c.l.bf16 %v5930_v52  ;;  %v943_v23 = vmul.f32 %v4275_v20, %v815_v17  ;;  %v817_v41 = vsub.f32 %v5822_v25, %v689_v30  ;;  %v5946_v27 = vld [vmem:[%s5288_s26 + $0x1c8] sm:$0xff]  }
 0x155   : > { %v1561_v35 = vrot.slane %v1036_v42, %v5553_v5  ;;  %v1034_v62 = vpop.xlane.xlu0 %1033  ;;  %v694_v52 = vmul.f32 %v5653_v36, %v4288_v38  ;;  %v820_v20 = vsub.f32 %v5834_v47, %v692_v55  ;;  %v4292_v42 = vunpack.c.h.bf16 %v5946_v27 }
 0x156   : > { %v1556_v18 = vrot.slane %v1034_v62, %v5548_v1  ;;  %v945_v62 = vmul.f32 %v4279_v31, %v817_v41 }
 0x157   : > { %1175 = vadd.xlane.f32.xlu1 %v942_v59  ;;  %v696_v41 = vmul.f32 %v5653_v36, %v4292_v42 }
 0x158   : > { %v1557_v39 = vsel %vm1372_vm1, %v1556_v18, %v1552_v33  ;;  %1173 = vadd.xlane.f32.xlu0 %v941_v49  ;;  %v1040_v63 = vpop.xlane.xlu1 %1039  ;;  %v946_v49 = vmul.f32 %v4280_v15, %v818_v54  ;;  %v693_v33 = vmul.f32 %v5653_v36, %v4287_v9  ;;  %v4291_v18 = vunpack.c.l.bf16 %v5946_v27 }
 0x159   : > { %v1571_v59 = vrot.slane %v1040_v63, %v5572_v26  ;;  %v1562_v57 = vsel %vm1379_vm2, %v1561_v35, %v1557_v39  ;;  %v1038_v8 = vpop.xlane.xlu0 %1037  ;;  %v819_v35 = vsub.f32 %v5841_v12, %v691_v22  ;;  %v5959_v39 = vld [vmem:[%s5288_s26 + $0x1d0] sm:$0xff]   ;;  %v822_v63 = vsub.f32 %v5852_v29, %v694_v52 }
 0x15a   : > { %v1566_v34 = vrot.slane %v1038_v8, %v5575_v28  ;;  %v821_v31 = vsub.f32 %v5856_v16, %v693_v33  ;;  %v4296_v22 = vunpack.c.h.bf16 %v5959_v39 }
 0x15b   : > { %1179 = vadd.xlane.f32.xlu1 %v944_v3  ;;  %v947_v8 = vmul.f32 %v4283_v2, %v819_v35  ;;  %v950_v33 = vmul.f32 %v4288_v38, %v822_v63 }
 0x15c   : > { %v1567_v17 = vsel %vm1386_vm3, %v1566_v34, %v1562_v57  ;;  %1177 = vadd.xlane.f32.xlu0 %v943_v23  ;;  %v1044_v30 = vpop.xlane.xlu1 %1043  ;;  %v948_v23 = vmul.f32 %v4284_v43, %v820_v20  ;;  %v4295_v34 = vunpack.c.l.bf16 %v5959_v39  ;;  %v698_v2 = vmul.f32 %v5653_v36, %v4296_v22 }
 0x15d   : > { %v1581_v3 = vrot.slane %v1044_v30, %v5586_v37  ;;  %v1572_v15 = vsel %vm1393_vm4, %v1571_v59, %v1567_v17  ;;  %v1042_v54 = vpop.xlane.xlu0 %1041  ;;  %v695_v59 = vmul.f32 %v5653_v36, %v4291_v18  ;;  %v5972_v17 = vld [vmem:[%s5288_s26 + $0x1d8] sm:$0xff]   ;;  %v949_v30 = vmul.f32 %v4287_v9, %v821_v31 }
 0x15e   : > { %v1576_v55 = vrot.slane %v1042_v54, %v5593_v45  ;;  %v4300_v35 = vunpack.c.h.bf16 %v5972_v17  ;;  %v4299_v38 = vunpack.c.l.bf16 %v5972_v17 }
 0x15f   : > { %1183 = vadd.xlane.f32.xlu1 %v946_v49 }
 0x160   : > { %v1577_v27 = vsel %vm1400_vm5, %v1576_v55, %v1572_v15  ;;  %1181 = vadd.xlane.f32.xlu0 %v945_v62  ;;  %v1048_v57 = vpop.xlane.xlu1 %1047  ;;  %v824_v62 = vsub.f32 %v5680_v56, %v696_v41  ;;  %v5981_v15 = vld [vmem:[%s5288_s26 + $0x1e0] sm:$0xff]   ;;  %v697_v55 = vmul.f32 %v5653_v36, %v4295_v34 }
 0x161   : > { %v1591_v43 = vrot.slane %v1048_v57, %v5618_v4  ;;  %v1582_v52 = vsel %vm1407_vm6, %v1581_v3, %v1577_v27  ;;  %v1046_v49 = vpop.xlane.xlu0 %1045  ;;  %v823_v3 = vsub.f32 %v5692_v61, %v695_v59  ;;  %v4304_v41 = vunpack.c.h.bf16 %v5981_v15 }
 0x162   : > { %v1586_v20 = vrot.slane %v1046_v49, %v5621_v6  ;;  %v952_v27 = vmul.f32 %v4292_v42, %v824_v62  ;;  %v826_v57 = vsub.f32 %v5714_v14, %v698_v2  ;;  %v4303_v59 = vunpack.c.l.bf16 %v5981_v15 }
 0x163   : > { %1187 = vadd.xlane.f32.xlu1 %v948_v23  ;;  %v951_v49 = vmul.f32 %v4291_v18, %v823_v3  ;;  %v702_v15 = vmul.f32 %v5653_v36, %v4304_v41 }
 0x164   : > { %v1587_v39 = vsel %vm1414_vm7, %v1586_v20, %v1582_v52  ;;  %1185 = vadd.xlane.f32.xlu0 %v947_v8  ;;  %v1052_v54 = vpop.xlane.xlu1 %1051  ;;  %v700_v8 = vmul.f32 %v5653_v36, %v4300_v35  ;;  %v699_v20 = vmul.f32 %v5653_v36, %v4299_v38 }
 0x165   : > { %v1601_v9 = vrot.slane %v1052_v54, %v5647_v0  ;;  %v1592_v63 = vsel %vm1421_vm8, %v1591_v43, %v1587_v39  ;;  %v1050_v23 = vpop.xlane.xlu0 %1049  ;;  %v825_v43 = vsub.f32 %v5725_v21, %v697_v55  ;;  %v5998_v39 = vld [vmem:[%s5288_s26 + $0x1e8] sm:$0xff]   ;;  %v701_v54 = vmul.f32 %v5653_v36, %v4303_v59 }
 0x166   : > { %v1596_v31 = vrot.slane %v1050_v23, %v5672_v7  ;;  %v828_v18 = vsub.f32 %v5749_v48, %v700_v8  ;;  %v4308_v3 = vunpack.c.h.bf16 %v5998_v39 }
 0x167   : > { %1191 = vadd.xlane.f32.xlu1 %v950_v33  ;;  %v953_v23 = vmul.f32 %v4295_v34, %v825_v43  ;;  %v829_v34 = vsub.f32 %v5775_v11, %v701_v54 }
 0x168   : > { %v1597_v17 = vsel %vm1428_vm9, %v1596_v31, %v1592_v63  ;;  %1189 = vadd.xlane.f32.xlu0 %v949_v30  ;;  %v1056_v52 = vpop.xlane.xlu1 %1055  ;;  %v954_v30 = vmul.f32 %v4296_v22, %v826_v57  ;;  %v4307_v31 = vunpack.c.l.bf16 %v5998_v39  ;;  %v704_v43 = vmul.f32 %v5653_v36, %v4308_v3 }
 0x169   : > { %v1611_v33 = vrot.slane %v1056_v52, %v5702_v10  ;;  %v1602_v42 = vsel %vm7330_vm10, %v1601_v9, %v1597_v17  ;;  %v1054_v62 = vpop.xlane.xlu0 %1053  ;;  %v827_v9 = vsub.f32 %v5758_v58, %v699_v20  ;;  %v6011_v17 = vld [vmem:[%s5288_s26 + $0x1f0] sm:$0xff]   ;;  %v830_v52 = vsub.f32 %v5769_v44, %v702_v15 }
 0x16a   : > { %v1606_v2 = vrot.slane %v1054_v62, %v5707_v19  ;;  %v4312_v20 = vunpack.c.h.bf16 %v6011_v17  ;;  %v703_v62 = vmul.f32 %v5653_v36, %v4307_v31 }
 0x16b   : > { %1195 = vadd.xlane.f32.xlu1 %v952_v27 }
 0x16c   : > { %v1607_v55 = vsel %vm7329_vm11, %v1606_v2, %v1602_v42  ;;  %1193 = vadd.xlane.f32.xlu0 %v951_v49  ;;  %v1060_v63 = vpop.xlane.xlu1 %1059  ;;  %v956_v49 = vmul.f32 %v4300_v35, %v828_v18  ;;  %v4311_v2 = vunpack.c.l.bf16 %v6011_v17 }
 0x16d   : > { %v1621_v27 = vrot.slane %v1060_v63, %v5737_v32  ;;  %v1612_v22 = vsel %vm1449_vm12, %v1611_v33, %v1607_v55  ;;  %v1058_v57 = vpop.xlane.xlu0 %1057  ;;  %v955_v33 = vmul.f32 %v4299_v38, %v827_v9  ;;  %v6024_v55 = vld [vmem:[%s5288_s26 + $0x1f8] sm:$0xff]   ;;  %v958_v63 = vmul.f32 %v4304_v41, %v830_v52 }
 0x16e   : > { %v1616_v8 = vrot.slane %v1058_v57, %v5741_v13  ;;  %v957_v38 = vmul.f32 %v4303_v59, %v829_v34  ;;  %v706_v9 = vmul.f32 %v5653_v36, %v4312_v20  ;;  %v4316_v17 = vunpack.c.h.bf16 %v6024_v55 }
 0x16f   : > { %1199 = vadd.xlane.f32.xlu1 %v954_v30  ;;  %v4315_v41 = vunpack.c.l.bf16 %v6024_v55 }
 0x170   : > { %v1617_v39 = vsel %vm1456_vm13, %v1616_v8, %v1612_v22  ;;  %1197 = vadd.xlane.f32.xlu0 %v953_v23  ;;  %v1064_v42 = vpop.xlane.xlu1 %1063  ;;  %v832_v23 = vsub.f32 %v5796_v46, %v704_v43  ;;  %v6037_v22 = vld [vmem:[%s5288_s26 + $0x200] sm:$0xff]   ;;  %v705_v8 = vmul.f32 %v5653_v36, %v4311_v2 }
 0x171   : > { %v1622_v35 = vsel %vm1463_vm14, %v1621_v27, %v1617_v39  ;;  %v1630_v15 = vrot.slane %v1064_v42, %v5567_v24  ;;  %v1062_v30 = vpop.xlane.xlu0 %1061  ;;  %v4320_v34 = vunpack.c.h.bf16 %v6037_v22  ;;  %v834_v39 = vsub.f32 %v5815_v40, %v706_v9 }
 0x172   : > { %v6030_v18 = vsel %vm7315_vm15, %v1622_v35, %v5923_v51  ;;  %v1626_v54 = vrot.slane %v1062_v30, %v5540_v60  ;;  %v831_v51 = vsub.f32 %v5806_v53, %v703_v62  ;;  %v960_v43 = vmul.f32 %v4308_v3, %v832_v23 }
 0x173   : > { %1203 = vadd.xlane.f32.xlu1 %v956_v49  ;;  %v708_v42 = vmul.f32 %v5653_v36, %v4316_v17  ;;  %v707_v30 = vmul.f32 %v5653_v36, %v4315_v41  ;;  %vm7316_vm15 = vcmask 1043459  }
 0x174   : > { %v1631_v27 = vsel %vm1365_vm0, %v1630_v15, %v1626_v54  ;;  %1201 = vadd.xlane.f32.xlu0 %v955_v33  ;;  %v1068_v57 = vpop.xlane.xlu1 %1067  ;;  %v4319_v33 = vunpack.c.l.bf16 %v6037_v22  ;;  %v959_v35 = vmul.f32 %v4307_v31, %v831_v51  ;;  %v833_v15 = vsub.f32 %v5822_v25, %v705_v8  ;;  %v6053_v54 = vld [vmem:[%s5288_s26 + $0x208] sm:$0xff]  }
 0x175   : > { %v1640_v59 = vrot.slane %v1068_v57, %v5553_v5  ;;  %v1066_v52 = vpop.xlane.xlu0 %1065  ;;  %v2323_v22 = vmul.f32 %v5653_v36, %v4320_v34  ;;  %v836_v31 = vsub.f32 %v5834_v47, %v708_v42  ;;  %v4324_v57 = vunpack.c.h.bf16 %v6053_v54 }
 0x176   : > { %v1635_v49 = vrot.slane %v1066_v52, %v5548_v1  ;;  %v961_v52 = vmul.f32 %v4311_v2, %v833_v15 }
 0x177   : > { %1207 = vadd.xlane.f32.xlu1 %v958_v63  ;;  %v2325_v2 = vmul.f32 %v5653_v36, %v4324_v57 }
 0x178   : > { %v1636_v62 = vsel %vm1372_vm1, %v1635_v49, %v1631_v27  ;;  %1205 = vadd.xlane.f32.xlu0 %v957_v38  ;;  %v1072_v55 = vpop.xlane.xlu1 %1071  ;;  %v962_v38 = vmul.f32 %v4312_v20, %v834_v39  ;;  %v2322_v27 = vmul.f32 %v5653_v36, %v4319_v33  ;;  %v4323_v49 = vunpack.c.l.bf16 %v6053_v54 }
 0x179   : > { %v1650_v63 = vrot.slane %v1072_v55, %v5572_v26  ;;  %v1641_v3 = vsel %vm1379_vm2, %v1640_v59, %v1636_v62  ;;  %v1070_v23 = vpop.xlane.xlu0 %1069  ;;  %v835_v59 = vsub.f32 %v5841_v12, %v707_v30  ;;  %v6066_v62 = vld [vmem:[%s5288_s26 + $0x210] sm:$0xff]   ;;  %v2451_v55 = vsub.f32 %v5852_v29, %v2323_v22  ;;  %v6076_v30 = vld [vmem:[%s5288_s26 + $0x218] sm:$0xff]  }
 0x17a   : > { %v1645_v9 = vrot.slane %v1070_v23, %v5575_v28  ;;  %v4328_v15 = vunpack.c.h.bf16 %v6066_v62  ;;  %v4327_v22 = vunpack.c.l.bf16 %v6066_v62 }
 0x17b   : > { %1211 = vadd.xlane.f32.xlu1 %v960_v43  ;;  %v963_v23 = vmul.f32 %v4315_v41, %v835_v59  ;;  %v4331_v41 = vunpack.c.l.bf16 %v6076_v30  ;;  %v6089_v59 = vld [vmem:[%s5288_s26 + $0x220] sm:$0xff]  }
 0x17c   : > { %v1646_v51 = vsel %vm1386_vm3, %v1645_v9, %v1641_v3  ;;  %1209 = vadd.xlane.f32.xlu0 %v959_v35  ;;  %v1076_v8 = vpop.xlane.xlu1 %1075  ;;  %v964_v35 = vmul.f32 %v4316_v17, %v836_v31  ;;  %v2450_v3 = vsub.f32 %v5856_v16, %v2322_v27  ;;  %v2324_v9 = vmul.f32 %v5653_v36, %v4323_v49 }
 0x17d   : > { %v1660_v20 = vrot.slane %v1076_v8, %v5586_v37  ;;  %v1651_v43 = vsel %vm1393_vm4, %v1650_v63, %v1646_v51  ;;  %v1074_v39 = vpop.xlane.xlu0 %1073  ;;  %v4332_v51 = vunpack.c.h.bf16 %v6076_v30  ;;  %v2579_v8 = vmul.f32 %v4320_v34, %v2451_v55 }
 0x17e   : > { %v1655_v42 = vrot.slane %v1074_v39, %v5593_v45  ;;  %v4336_v30 = vunpack.c.h.bf16 %v6089_v59 }
 0x17f   : > { %1215 = vadd.xlane.f32.xlu1 %v962_v38 }
 0x180   : > { %v1656_v54 = vsel %vm1400_vm5, %v1655_v42, %v1651_v43  ;;  %1213 = vadd.xlane.f32.xlu0 %v961_v52  ;;  %v1080_v63 = vpop.xlane.xlu1 %1079  ;;  %v2453_v43 = vsub.f32 %v5680_v56, %v2325_v2  ;;  %v2327_v52 = vmul.f32 %v5653_v36, %v4328_v15  ;;  %v2452_v42 = vsub.f32 %v5692_v61, %v2324_v9 }
 0x181   : > { %v1670_v17 = vrot.slane %v1080_v63, %v5618_v4  ;;  %v1661_v38 = vsel %vm1407_vm6, %v1660_v20, %v1656_v54  ;;  %v1078_v31 = vpop.xlane.xlu0 %1077  ;;  %v2578_v20 = vmul.f32 %v4319_v33, %v2450_v3  ;;  %v2326_v54 = vmul.f32 %v5653_v36, %v4327_v22 }
 0x182   : > { %v1665_v27 = vrot.slane %v1078_v31, %v5621_v6  ;;  %v2329_v2 = vmul.f32 %v5653_v36, %v4332_v51  ;;  %v2581_v63 = vmul.f32 %v4324_v57, %v2453_v43  ;;  %v2455_v33 = vsub.f32 %v5714_v14, %v2327_v52  ;;  %v6105_v31 = vld [vmem:[%s5288_s26 + $0x228] sm:$0xff]  }
 0x183   : > { %1219 = vadd.xlane.f32.xlu1 %v964_v35  ;;  %v2328_v61 = vmul.f32 %v5653_v36, %v4331_v41  ;;  %v4335_v3 = vunpack.c.l.bf16 %v6089_v59  ;;  %v2331_v52 = vmul.f32 %v5653_v36, %v4336_v30 }
 0x184   : > { %v1666_v62 = vsel %vm1414_vm7, %v1665_v27, %v1661_v38  ;;  %1217 = vadd.xlane.f32.xlu0 %v963_v23  ;;  %v1084_v39 = vpop.xlane.xlu1 %1083  ;;  %v2454_v38 = vsub.f32 %v5725_v21, %v2326_v54  ;;  %v2457_v43 = vsub.f32 %v5749_v48, %v2329_v2  ;;  %v2583_v59 = vmul.f32 %v4328_v15, %v2455_v33 }
 0x185   : > { %v1680_v35 = vrot.slane %v1084_v39, %v5647_v0  ;;  %v1671_v56 = vsel %vm1421_vm8, %v1670_v17, %v1666_v62  ;;  %v1082_v34 = vpop.xlane.xlu0 %1081  ;;  %v2580_v17 = vmul.f32 %v4323_v49, %v2452_v42  ;;  %v2456_v49 = vsub.f32 %v5758_v58, %v2328_v61  ;;  %v6128_v61 = vld [vmem:[%s5288_s26 + $0x238] sm:$0xff]  }
 0x186   : > { %v1675_v55 = vrot.slane %v1082_v34, %v5672_v7  ;;  %v2330_v21 = vmul.f32 %v5653_v36, %v4335_v3  ;;  %v4340_v62 = vunpack.c.h.bf16 %v6105_v31  ;;  %v2582_v42 = vmul.f32 %v4327_v22, %v2454_v38 }
 0x187   : > { %2708 = vadd.xlane.f32.xlu1 %v2579_v8  ;;  %v4339_v54 = vunpack.c.l.bf16 %v6105_v31  ;;  %v2585_v34 = vmul.f32 %v4332_v51, %v2457_v43  ;;  %v2584_v2 = vmul.f32 %v4331_v41, %v2456_v49 }
 0x188   : > { %v1676_v23 = vsel %vm1428_vm9, %v1675_v55, %v1671_v56  ;;  %2706 = vadd.xlane.f32.xlu0 %v2578_v20  ;;  %v1088_v9 = vpop.xlane.xlu1 %1087  ;;  %v2459_v55 = vsub.f32 %v5769_v44, %v2331_v52  ;;  %v2333_v22 = vmul.f32 %v5653_v36, %v4340_v62 }
 0x189   : > { %v1690_v27 = vrot.slane %v1088_v9, %v5702_v10  ;;  %v1681_v57 = vsel %vm7330_vm10, %v1680_v35, %v1676_v23  ;;  %v1086_v8 = vpop.xlane.xlu0 %1085  ;;  %v6118_v35 = vld [vmem:[%s5288_s26 + $0x230] sm:$0xff]  }
 0x18a   : > { %v1685_v14 = vrot.slane %v1086_v8, %v5707_v19  ;;  %v4344_v33 = vunpack.c.h.bf16 %v6118_v35  ;;  %v4343_v51 = vunpack.c.l.bf16 %v6118_v35  ;;  %v2587_v31 = vmul.f32 %v4336_v30, %v2459_v55 }
 0x18b   : > { %2712 = vadd.xlane.f32.xlu1 %v2581_v63  ;;  %v2458_v63 = vsub.f32 %v5775_v11, %v2330_v21  ;;  %v6146_v21 = vld [vmem:[#allocation7] ss:$0 sm:$0xff] }
 0x18c   : > { %v1686_v39 = vsel %vm7329_vm11, %v1685_v14, %v1681_v57  ;;  %2710 = vadd.xlane.f32.xlu0 %v2580_v17  ;;  %v1092_v20 = vpop.xlane.xlu1 %1091  ;;  %v2332_v17 = vmul.f32 %v5653_v36, %v4339_v54  ;;  %v2461_v57 = vsub.f32 %v5796_v46, %v2333_v22  ;;  %v2335_v8 = vmul.f32 %v5653_v36, %v4344_v33  ;;  %v6150_v46 = vld [vmem:[%s5288_s26 + $0x240] sm:$0xff]  }
 0x18d   : > { %v1700_v48 = vrot.slane %v1092_v20, %v5737_v32  ;;  %v1691_v15 = vsel %vm1449_vm12, %v1690_v27, %v1686_v39  ;;  %v1090_v56 = vpop.xlane.xlu0 %1089  ;;  %v4348_v27 = vunpack.c.h.bf16 %v6128_v61  ;;  %v4347_v14 = vunpack.c.l.bf16 %v6128_v61 }
 0x18e   : > { %v1695_v58 = vrot.slane %v1090_v56, %v5741_v13  ;;  %v2586_v49 = vmul.f32 %v4335_v3, %v2458_v63  ;;  %v2460_v30 = vsub.f32 %v5806_v53, %v2332_v17  ;;  %v2334_v39 = vmul.f32 %v6146_v21, %v4343_v51 }
 0x18f   : > { %2716 = vadd.xlane.f32.xlu1 %v2583_v59  ;;  %v2589_v35 = vmul.f32 %v4340_v62, %v2461_v57  ;;  %v2463_v3 = vsub.f32 %v5815_v40, %v2335_v8  ;;  %v2336_v53 = vmul.f32 %v6146_v21, %v4347_v14  ;;  %v4351_v55 = vunpack.c.l.bf16 %v6150_v46 }
 0x190   : > { %v1696_v23 = vsel %vm1456_vm13, %v1695_v58, %v1691_v15  ;;  %2714 = vadd.xlane.f32.xlu0 %v2582_v42  ;;  %v1096_v9 = vpop.xlane.xlu1 %1095  ;;  %v2337_v42 = vmul.f32 %v6146_v21, %v4348_v27  ;;  %v2588_v58 = vmul.f32 %v4339_v54, %v2460_v30  ;;  %v6184_v30 = vld [vmem:[%s5288_s26 + $0x258] sm:$0xff]  }
 0x191   : > { %v1701_v44 = vsel %vm1463_vm14, %v1700_v48, %v1696_v23  ;;  %v1709_v41 = vrot.slane %v1096_v9, %v5567_v24  ;;  %v1094_v11 = vpop.xlane.xlu0 %1093  ;;  %v4352_v48 = vunpack.c.h.bf16 %v6150_v46  ;;  %v2591_v23 = vmul.f32 %v4344_v33, %v2463_v3 }
 0x192   : > { %v1705_v38 = vrot.slane %v1094_v11, %v5540_v60  ;;  %v6142_v43 = vsel %vm7316_vm15, %v1701_v44, %v6030_v18  ;;  %v2465_v61 = vsub.f32 %v5834_v47, %v2337_v42  ;;  %v2464_v54 = vsub.f32 %v5841_v12, %v2336_v53  ;;  %v6195_v53 = vld [vmem:[%s5277_s15 + $0x18] sm:$0xff] }
 0x193   : > { %2720 = vadd.xlane.f32.xlu1 %v2585_v34  ;;  %v2462_v34 = vsub.f32 %v5822_v25, %v2334_v39  ;;  %v2339_v25 = vmul.f32 %v6146_v21, %v4352_v48  ;;  %v2338_v11 = vmul.f32 %v6146_v21, %v4351_v55  ;;  %vm7317_vm15 = vcmask 1044484  }
 0x194   : > { %v1710_v52 = vsel %vm1365_vm0, %v1709_v41, %v1705_v38  ;;  %2718 = vadd.xlane.f32.xlu0 %v2584_v2  ;;  %v1100_v59 = vpop.xlane.xlu1 %1099  ;;  %v6162_v2 = vld [vmem:[%s5288_s26 + $0x248] sm:$0xff]   ;;  %v2593_v8 = vmul.f32 %v4348_v27, %v2465_v61 }
 0x195   : > { %v1719_v36 = vrot.slane %v1100_v59, %v5553_v5  ;;  %v1098_v20 = vpop.xlane.xlu0 %1097  ;;  %v4356_v9 = vunpack.c.h.bf16 %v6162_v2  ;;  %v2590_v41 = vmul.f32 %v4343_v51, %v2462_v34  ;;  %v4355_v38 = vunpack.c.l.bf16 %v6162_v2 }
 0x196   : > { %v1714_v18 = vrot.slane %v1098_v20, %v5548_v1  ;;  %v2467_v59 = vsub.f32 %v5852_v29, %v2339_v25 }
 0x197   : > { %2724 = vadd.xlane.f32.xlu1 %v2587_v31  ;;  %v6175_v31 = vld [vmem:[%s5288_s26 + $0x250] sm:$0xff]   ;;  %v2341_v51 = vmul.f32 %v6146_v21, %v4356_v9  ;;  %v2340_v27 = vmul.f32 %v6146_v21, %v4355_v38 }
 0x198   : > { %v1715_v15 = vsel %vm1372_vm1, %v1714_v18, %v1710_v52  ;;  %2722 = vadd.xlane.f32.xlu0 %v2586_v49  ;;  %v1104_v56 = vpop.xlane.xlu1 %1103  ;;  %v2592_v52 = vmul.f32 %v4347_v14, %v2464_v54  ;;  %v4360_v49 = vunpack.c.h.bf16 %v6175_v31  ;;  %v4359_v14 = vunpack.c.l.bf16 %v6175_v31 }
 0x199   : > { %v1729_v63 = vrot.slane %v1104_v56, %v5572_v26  ;;  %v1720_v40 = vsel %vm1379_vm2, %v1719_v36, %v1715_v15  ;;  %v1102_v62 = vpop.xlane.xlu0 %1101  ;;  %v2466_v36 = vsub.f32 %v5856_v16, %v2338_v11  ;;  %v2595_v3 = vmul.f32 %v4352_v48, %v2467_v59 }
 0x19a   : > { %v1724_v22 = vrot.slane %v1102_v62, %v5575_v28  ;;  %v2469_v16 = vsub.f32 %v6195_v53, %v2341_v51  ;;  %v2343_v15 = vmul.f32 %v6146_v21, %v4360_v49  ;;  %v4363_v56 = vunpack.c.l.bf16 %v6184_v30 }
 0x19b   : > { %2728 = vadd.xlane.f32.xlu1 %v2589_v35  ;;  %v4364_v35 = vunpack.c.h.bf16 %v6184_v30  ;;  %v2342_v62 = vmul.f32 %v6146_v21, %v4359_v14 }
 0x19c   : > { %v1725_v17 = vsel %vm1386_vm3, %v1724_v22, %v1720_v40  ;;  %2726 = vadd.xlane.f32.xlu0 %v2588_v58  ;;  %v1108_v44 = vpop.xlane.xlu1 %1107  ;;  %v6201_v58 = vld [vmem:[%s5288_s26 + $0x260] sm:$0xff]   ;;  %v6205_v40 = vld [vmem:[%s5277_s15 + $0x10] sm:$0xff]  ;;  %v2344_v11 = vmul.f32 %v6146_v21, %v4363_v56 }
 0x19d   : > { %v1739_v47 = vrot.slane %v1108_v44, %v5586_v37  ;;  %v1730_v12 = vsel %vm1393_vm4, %v1729_v63, %v1725_v17  ;;  %v1106_v33 = vpop.xlane.xlu0 %1105  ;;  %v2594_v63 = vmul.f32 %v4351_v55, %v2466_v36  ;;  %v2468_v48 = vsub.f32 %v6205_v40, %v2340_v27  ;;  %v6215_v44 = vld [vmem:[%s5277_s15 + $0x28] sm:$0xff]  ;;  %v6237_v27 = vld [vmem:[%s5277_s15 + $0x30] sm:$0xff] }
 0x19e   : > { %v1734_v57 = vrot.slane %v1106_v33, %v5593_v45  ;;  %v2345_v25 = vmul.f32 %v6146_v21, %v4364_v35  ;;  %v4368_v17 = vunpack.c.h.bf16 %v6201_v58  ;;  %v2597_v55 = vmul.f32 %v4356_v9, %v2469_v16  ;;  %7358 = vst [vmem:[#allocation27_spill] sm:$0xff] %v6215_v44  ;;  %v6221_v33 = vld [vmem:[%s5277_s15 + $0x20] sm:$0xff]  ;;  %v6226_v9 = vld [vmem:[%s5288_s26 + $0x268] sm:$0xff]   ;;  %7359 = vst [vmem:[#allocation28_spill] sm:$0xff] %v6237_v27 }
 0x19f   : > { %2732 = vadd.xlane.f32.xlu1 %v2591_v23 }
 0x1a0   : > { %v1735_v39 = vsel %vm1400_vm5, %v1734_v57, %v1730_v12  ;;  %2730 = vadd.xlane.f32.xlu0 %v2590_v41  ;;  %v1112_v46 = vpop.xlane.xlu1 %1111  ;;  %v2471_v41 = vsub.f32 %v6215_v44, %v2343_v15  ;;  %v2596_v12 = vmul.f32 %v4355_v38, %v2468_v48  ;;  %v2470_v57 = vsub.f32 %v6221_v33, %v2342_v62  ;;  %v6251_v62 = vld [vmem:[%s5277_s15 + $0x48] sm:$0xff] }
 0x1a1   : > { %v1749_v29 = vrot.slane %v1112_v46, %v5618_v4  ;;  %v1740_v20 = vsel %vm1407_vm6, %v1739_v47, %v1735_v39  ;;  %v1110_v18 = vpop.xlane.xlu0 %1109  ;;  %v6232_v39 = vld [vmem:[%s5277_s15 + $0x38] sm:$0xff]  ;;  %v2347_v46 = vmul.f32 %v6146_v21, %v4368_v17  ;;  %v4371_v15 = vunpack.c.l.bf16 %v6226_v9 }
 0x1a2   : > { %v1744_v42 = vrot.slane %v1110_v18, %v5621_v6  ;;  %v2473_v38 = vsub.f32 %v6232_v39, %v2345_v25  ;;  %v2599_v36 = vmul.f32 %v4360_v49, %v2471_v41  ;;  %v6261_v41 = vld [vmem:[%s5277_s15 + $0x40] sm:$0xff] }
 0x1a3   : > { %2736 = vadd.xlane.f32.xlu1 %v2593_v8  ;;  %v4367_v8 = vunpack.c.l.bf16 %v6201_v58  ;;  %v6245_v58 = vld [vmem:[%s5288_s26 + $0x270] sm:$0xff]  }
 0x1a4   : > { %v1745_v34 = vsel %vm1414_vm7, %v1744_v42, %v1740_v20  ;;  %2734 = vadd.xlane.f32.xlu0 %v2592_v52  ;;  %v1116_v2 = vpop.xlane.xlu1 %1115  ;;  %v4372_v20 = vunpack.c.h.bf16 %v6226_v9  ;;  %v2601_v48 = vmul.f32 %v4364_v35, %v2473_v38 }
 0x1a5   : > { %v1759_v22 = vrot.slane %v1116_v2, %v5647_v0  ;;  %v1750_v61 = vsel %vm1421_vm8, %v1749_v29, %v1745_v34  ;;  %v1114_v23 = vpop.xlane.xlu0 %1113  ;;  %v2472_v29 = vsub.f32 %v6237_v27, %v2344_v11  ;;  %v2346_v16 = vmul.f32 %v6146_v21, %v4367_v8 }
 0x1a6   : > { %v1754_v54 = vrot.slane %v1114_v23, %v5672_v7  ;;  %v4376_v23 = vunpack.c.h.bf16 %v6245_v58  ;;  %v2348_v11 = vmul.f32 %v6146_v21, %v4371_v15 }
 0x1a7   : > { %2740 = vadd.xlane.f32.xlu1 %v2595_v3  ;;  %v2598_v3 = vmul.f32 %v4359_v14, %v2470_v57  ;;  %v2600_v14 = vmul.f32 %v4363_v56, %v2472_v29  ;;  %v2474_v35 = vsub.f32 %v6261_v41, %v2346_v16  ;;  %v4375_v56 = vunpack.c.l.bf16 %v6245_v58  ;;  %v6287_v16 = vld [vmem:[%s5288_s26 + $0x280] sm:$0xff]  }
 0x1a8   : > { %v1755_v31 = vsel %vm1428_vm9, %v1754_v54, %v1750_v61  ;;  %2738 = vadd.xlane.f32.xlu0 %v2594_v63  ;;  %v1120_v47 = vpop.xlane.xlu1 %1119  ;;  %v2349_v61 = vmul.f32 %v6146_v21, %v4372_v20  ;;  %v6257_v54 = vld [vmem:[%s5288_s26 + $0x278] sm:$0xff]  }
 0x1a9   : > { %v1769_v52 = vrot.slane %v1120_v47, %v5702_v10  ;;  %v1760_v59 = vsel %vm7330_vm10, %v1759_v22, %v1755_v31  ;;  %v1118_v51 = vpop.xlane.xlu0 %1117  ;;  %v2475_v22 = vsub.f32 %v6251_v62, %v2347_v46  ;;  %v4379_v38 = vunpack.c.l.bf16 %v6257_v54 }
 0x1aa   : > { %v1764_v30 = vrot.slane %v1118_v51, %v5707_v19  ;;  %v2602_v29 = vmul.f32 %v4367_v8, %v2474_v35  ;;  %v6293_v8 = vld [vmem:[%s5277_s15 + $0x68] sm:$0xff] }
 0x1ab   : > { %2744 = vadd.xlane.f32.xlu1 %v2597_v55  ;;  %v2603_v9 = vmul.f32 %v4368_v17, %v2475_v22  ;;  %v4384_v22 = vunpack.c.h.bf16 %v6287_v16  ;;  %v6305_v35 = vld [vmem:[%s5288_s26 + $0x288] sm:$0xff]  }
 0x1ac   : > { %v1765_v18 = vsel %vm7329_vm11, %v1764_v30, %v1760_v59  ;;  %2742 = vadd.xlane.f32.xlu0 %v2596_v12  ;;  %v1124_v42 = vpop.xlane.xlu1 %1123  ;;  %v6271_v59 = vld [vmem:[%s5277_s15 + $0x58] sm:$0xff]  ;;  %v2351_v30 = vmul.f32 %v6146_v21, %v4376_v23 }
 0x1ad   : > { %v1779_v49 = vrot.slane %v1124_v42, %v5737_v32  ;;  %v1770_v34 = vsel %vm1449_vm12, %v1769_v52, %v1765_v18  ;;  %v1122_v2 = vpop.xlane.xlu0 %1121  ;;  %v4380_v52 = vunpack.c.h.bf16 %v6257_v54  ;;  %v2477_v51 = vsub.f32 %v6271_v59, %v2349_v61  ;;  %v6282_v18 = vld [vmem:[%s5277_s15 + $0x50] sm:$0xff] }
 0x1ae   : > { %v1774_v63 = vrot.slane %v1122_v2, %v5741_v13  ;;  %v2476_v42 = vsub.f32 %v6282_v18, %v2348_v11 }
 0x1af   : > { %2748 = vadd.xlane.f32.xlu1 %v2599_v36  ;;  %v2605_v2 = vmul.f32 %v4372_v20, %v2477_v51  ;;  %v4383_v20 = vunpack.c.l.bf16 %v6287_v16  ;;  %v6315_v51 = vld [vmem:[%s5277_s15 + $0x70] sm:$0xff] }
 0x1b0   : > { %v1775_v25 = vsel %vm1456_vm13, %v1774_v63, %v1770_v34  ;;  %2746 = vadd.xlane.f32.xlu0 %v2598_v3  ;;  %v1128_v55 = vpop.xlane.xlu1 %1127  ;;  %v2350_v3 = vmul.f32 %v6146_v21, %v4375_v56  ;;  %v2353_v34 = vmul.f32 %v6146_v21, %v4380_v52  ;;  %v2479_v63 = vsub.f32 %v6293_v8, %v2351_v30 }
 0x1b1   : > { %v1780_v31 = vsel %vm1463_vm14, %v1779_v49, %v1775_v25  ;;  %v1788_v47 = vrot.slane %v1128_v55, %v5567_v24  ;;  %v1126_v12 = vpop.xlane.xlu0 %1125  ;;  %v2604_v54 = vmul.f32 %v4371_v15, %v2476_v42  ;;  %v6300_v25 = vld [vmem:[%s5277_s15 + $0x60] sm:$0xff]  ;;  %v2354_v16 = vmul.f32 %v6146_v21, %v4383_v20 }
 0x1b2   : > { %v1784_v57 = vrot.slane %v1126_v12, %v5540_v60  ;;  %v6278_v46 = vsel %vm7317_vm15, %v1780_v31, %v6142_v43  ;;  %v2478_v55 = vsub.f32 %v6300_v25, %v2350_v3  ;;  %vm7328_vm15 = vcmask 1045509  }
 0x1b3   : > { %2752 = vadd.xlane.f32.xlu1 %v2601_v48  ;;  %v2352_v48 = vmul.f32 %v6146_v21, %v4379_v38 }
 0x1b4   : > { %v1789_v36 = vsel %vm1365_vm0, %v1788_v47, %v1784_v57  ;;  %2750 = vadd.xlane.f32.xlu0 %v2600_v14  ;;  %v1132_v17 = vpop.xlane.xlu1 %1131  ;;  %v6311_v57 = vld [vmem:[%s5277_s15 + $0x78] sm:$0xff]  ;;  %v2606_v3 = vmul.f32 %v4375_v56, %v2478_v55 }
 0x1b5   : > { %v1798_v58 = vrot.slane %v1132_v17, %v5553_v5  ;;  %v1130_v49 = vpop.xlane.xlu0 %1129  ;;  %v2481_v15 = vsub.f32 %v6311_v57, %v2353_v34  ;;  %v2480_v30 = vsub.f32 %v6315_v51, %v2352_v48  ;;  %v4388_v17 = vunpack.c.h.bf16 %v6305_v35  ;;  %v6336_v55 = vld [vmem:[%s5288_s26 + $0x298] sm:$0xff]  }
 0x1b6   : > { %v1793_v43 = vrot.slane %v1130_v49, %v5548_v1 }
 0x1b7   : > { %2756 = vadd.xlane.f32.xlu1 %v2603_v9  ;;  %v2607_v9 = vmul.f32 %v4376_v23, %v2479_v63  ;;  %v6324_v23 = vld [vmem:[%s5288_s26 + $0x290] sm:$0xff]   ;;  %v2609_v63 = vmul.f32 %v4380_v52, %v2481_v15  ;;  %v2608_v48 = vmul.f32 %v4379_v38, %v2480_v30 }
 0x1b8   : > { %v1794_v14 = vsel %vm1372_vm1, %v1793_v43, %v1789_v36  ;;  %2754 = vadd.xlane.f32.xlu0 %v2602_v29  ;;  %v1136_v61 = vpop.xlane.xlu1 %1135  ;;  %v2355_v36 = vmul.f32 %v6146_v21, %v4384_v22 }
 0x1b9   : > { %v1808_v11 = vrot.slane %v1136_v61, %v5572_v26  ;;  %v1799_v31 = vsel %vm1379_vm2, %v1798_v58, %v1794_v14  ;;  %v1134_v47 = vpop.xlane.xlu0 %1133  ;;  %v4387_v58 = vunpack.c.l.bf16 %v6305_v35  ;;  %v6330_v14 = vld [vmem:[%s5277_s15 + $0x8] sm:$0xff]  ;;  %v2357_v61 = vmul.f32 %v6146_v21, %v4388_v17 }
 0x1ba   : > { %v1803_v12 = vrot.slane %v1134_v47, %v5575_v28  ;;  %v2483_v56 = vsub.f32 %v6330_v14, %v2355_v36  ;;  %v4391_v47 = vunpack.c.l.bf16 %v6324_v23  ;;  %v4396_v36 = vunpack.c.h.bf16 %v6336_v55 }
 0x1bb   : > { %2760 = vadd.xlane.f32.xlu1 %v2605_v2  ;;  %v2356_v38 = vmul.f32 %v6146_v21, %v4387_v58 }
 0x1bc   : > { %v1804_v29 = vsel %vm1386_vm3, %v1803_v12, %v1799_v31  ;;  %2758 = vadd.xlane.f32.xlu0 %v2604_v54  ;;  %v1140_v42 = vpop.xlane.xlu1 %1139  ;;  %v4392_v54 = vunpack.c.h.bf16 %v6324_v23  ;;  %v6340_v31 = vld [vmem:[%s5277_s15] sm:$0xff] }
 0x1bd   : > { %v1818_v49 = vrot.slane %v1140_v42, %v5586_v37  ;;  %v1809_v43 = vsel %vm1393_vm4, %v1808_v11, %v1804_v29  ;;  %v1138_v34 = vpop.xlane.xlu0 %1137  ;;  %v2482_v52 = vsub.f32 %v6340_v31, %v2354_v16  ;;  %v2611_v29 = vmul.f32 %v4384_v22, %v2483_v56 }
 0x1be   : > { %v1813_v2 = vrot.slane %v1138_v34, %v5593_v45  ;;  %v2485_v42 = vsub.f32 %v6195_v53, %v2357_v61  ;;  %v4395_v16 = vunpack.c.l.bf16 %v6336_v55  ;;  %v2361_v55 = vmul.f32 %v6146_v21, %v4396_v36 }
 0x1bf   : > { %2764 = vadd.xlane.f32.xlu1 %v2607_v9 }
 0x1c0   : > { %v1814_v35 = vsel %vm1400_vm5, %v1813_v2, %v1809_v43  ;;  %2762 = vadd.xlane.f32.xlu0 %v2606_v3  ;;  %v1144_v11 = vpop.xlane.xlu1 %1143  ;;  %v2359_v3 = vmul.f32 %v6146_v21, %v4392_v54  ;;  %v6353_v43 = vld [vmem:[%s5288_s26 + $0x2a0] sm:$0xff]   ;;  %v2484_v2 = vsub.f32 %v6205_v40, %v2356_v38 }
 0x1c1   : > { %v1828_v12 = vrot.slane %v1144_v11, %v5618_v4  ;;  %v1819_v15 = vsel %vm1407_vm6, %v1818_v49, %v1814_v35  ;;  %v1142_v9 = vpop.xlane.xlu0 %1141  ;;  %v2610_v49 = vmul.f32 %v4383_v20, %v2482_v52  ;;  %v2358_v35 = vmul.f32 %v6146_v21, %v4391_v47 }
 0x1c2   : > { %v1823_v30 = vrot.slane %v1142_v9, %v5621_v6  ;;  %v4400_v11 = vunpack.c.h.bf16 %v6353_v43  ;;  %v2487_v20 = vsub.f32 %v6215_v44, %v2359_v3  ;;  %v2360_v52 = vmul.f32 %v6146_v21, %v4395_v16 }
 0x1c3   : > { %2768 = vadd.xlane.f32.xlu1 %v2609_v63  ;;  %v2612_v9 = vmul.f32 %v4387_v58, %v2484_v2  ;;  %v2489_v3 = vsub.f32 %v6232_v39, %v2361_v55 }
 0x1c4   : > { %v1824_v23 = vsel %vm1414_vm7, %v1823_v30, %v1819_v15  ;;  %2766 = vadd.xlane.f32.xlu0 %v2608_v48  ;;  %v1148_v34 = vpop.xlane.xlu1 %1147  ;;  %v2613_v48 = vmul.f32 %v4388_v17, %v2485_v42  ;;  %v4399_v30 = vunpack.c.l.bf16 %v6353_v43  ;;  %v2488_v58 = vsub.f32 %v6237_v27, %v2360_v52 }
 0x1c5   : > { %v1838_v63 = vrot.slane %v1148_v34, %v5647_v0  ;;  %v1829_v22 = vsel %vm1421_vm8, %v1828_v12, %v1824_v23  ;;  %v1146_v56 = vpop.xlane.xlu0 %1145  ;;  %v2486_v12 = vsub.f32 %v6221_v33, %v2358_v35  ;;  %v4657_v23 = vld [vmem:[%s5288_s26 + $0x2a8] sm:$0xff]  }
 0x1c6   : > { %v1833_v61 = vrot.slane %v1146_v56, %v5672_v7  ;;  %v4404_v2 = vunpack.c.h.bf16 %v4657_v23  ;;  %v2616_v52 = vmul.f32 %v4395_v16, %v2488_v58 }
 0x1c7   : > { %2772 = vadd.xlane.f32.xlu1 %v2611_v29  ;;  %v2614_v56 = vmul.f32 %v4391_v47, %v2486_v12 }
 0x1c8   : > { %v1834_v38 = vsel %vm1428_vm9, %v1833_v61, %v1829_v22  ;;  %2770 = vadd.xlane.f32.xlu0 %v2610_v49  ;;  %v1152_v15 = vpop.xlane.xlu1 %1151  ;;  %v2363_v22 = vmul.f32 %v6146_v21, %v4400_v11  ;;  %v2615_v49 = vmul.f32 %v4392_v54, %v2487_v20  ;;  %v2362_v61 = vmul.f32 %v6146_v21, %v4399_v30 }
 0x1c9   : > { %v1848_v34 = vrot.slane %v1152_v15, %v5702_v10  ;;  %v1839_v29 = vsel %vm7330_vm10, %v1838_v63, %v1834_v38  ;;  %v1150_v17 = vpop.xlane.xlu0 %1149  ;;  %v4403_v63 = vunpack.c.l.bf16 %v4657_v23  ;;  %v4658_v38 = vld [vmem:[%s5288_s26 + $0x2b0] sm:$0xff]  }
 0x1ca   : > { %v1843_v42 = vrot.slane %v1150_v17, %v5707_v19  ;;  %v2491_v20 = vsub.f32 %v6251_v62, %v2363_v22  ;;  %v4408_v47 = vunpack.c.h.bf16 %v4658_v38 }
 0x1cb   : > { %2776 = vadd.xlane.f32.xlu1 %v2613_v48  ;;  %v2617_v48 = vmul.f32 %v4396_v36, %v2489_v3  ;;  %v4659_v36 = vld [vmem:[%s5288_s26 + $0x2b8] sm:$0xff]  }
 0x1cc   : > { %v1844_v43 = vsel %vm7329_vm11, %v1843_v42, %v1839_v29  ;;  %2774 = vadd.xlane.f32.xlu0 %v2612_v9  ;;  %v1156_v35 = vpop.xlane.xlu1 %1155  ;;  %v2365_v9 = vmul.f32 %v6146_v21, %v4404_v2  ;;  %v2364_v29 = vmul.f32 %v6146_v21, %v4403_v63  ;;  %v4407_v42 = vunpack.c.l.bf16 %v4658_v38 }
 0x1cd   : > { %v1858_v15 = vrot.slane %v1156_v35, %v5737_v32  ;;  %v1849_v55 = vsel %vm1449_vm12, %v1848_v34, %v1844_v43  ;;  %v1154_v17 = vpop.xlane.xlu0 %1153  ;;  %v2490_v34 = vsub.f32 %v6261_v41, %v2362_v61  ;;  %v2619_v16 = vmul.f32 %v4400_v11, %v2491_v20 }
 0x1ce   : > { %v1853_v54 = vrot.slane %v1154_v17, %v5741_v13  ;;  %v2367_v58 = vmul.f32 %v6146_v21, %v4408_v47  ;;  %v4412_v43 = vunpack.c.h.bf16 %v4659_v36  ;;  %v2492_v38 = vsub.f32 %v6282_v18, %v2364_v29 }
 0x1cf   : > { %2780 = vadd.xlane.f32.xlu1 %v2615_v49  ;;  %v2493_v49 = vsub.f32 %v6271_v59, %v2365_v9  ;;  %v2618_v61 = vmul.f32 %v4399_v30, %v2490_v34  ;;  %v4411_v11 = vunpack.c.l.bf16 %v4659_v36 }
 0x1d0   : > { %v1854_v12 = vsel %vm1456_vm13, %v1853_v54, %v1849_v55  ;;  %2778 = vadd.xlane.f32.xlu0 %v2614_v56  ;;  %v6384_v23 = vpop.xlane.xlu1 %1159  ;;  %v4660_v55 = vld [vmem:[%s5288_s26 + $0x2c0] sm:$0xff]   ;;  %v2495_v54 = vsub.f32 %v6293_v8, %v2367_v58  ;;  %v2620_v30 = vmul.f32 %v4403_v63, %v2492_v38  ;;  %v4662_v58 = vld [vmem:[%s5288_s26 + $0x2d0] sm:$0xff]  }
 0x1d1   : > { %v1859_v3 = vsel %vm1463_vm14, %v1858_v15, %v1854_v12  ;;  %v6390_v22 = vpop.xlane.xlu0 %1157  ;;  %v2366_v15 = vmul.f32 %v6146_v21, %v4407_v42  ;;  %v2621_v59 = vmul.f32 %v4404_v2, %v2493_v49  ;;  %v4415_v9 = vunpack.c.l.bf16 %v4660_v55  ;;  %v4661_v12 = vld [vmem:[%s5288_s26 + $0x2c8] sm:$0xff]  }
 0x1d2   : > { %v6396_v35 = vsel %vm7328_vm15, %v1859_v3, %v6278_v46  ;;  %v2369_v46 = vmul.f32 %v6146_v21, %v4412_v43  ;;  %v2623_v2 = vmul.f32 %v4408_v47, %v2495_v54  ;;  %v4420_v36 = vunpack.c.h.bf16 %v4661_v12 }
 0x1d3   : > { %2784 = vadd.xlane.f32.xlu1 %v2617_v48  ;;  %7360 = vst [vmem:[#allocation29_spill] sm:$0xff] %v6396_v35  ;;  %v4416_v48 = vunpack.c.h.bf16 %v4660_v55  ;;  %v2494_v18 = vsub.f32 %v6300_v25, %v2366_v15  ;;  %v4419_v49 = vunpack.c.l.bf16 %v4661_v12  ;;  %v4424_v15 = vunpack.c.h.bf16 %v4662_v58 }
 0x1d4   : > { %2782 = vadd.xlane.f32.xlu0 %v2616_v52  ;;  %v6398_v56 = vpop.xlane.xlu1 %1163  ;;  %v2368_v52 = vmul.f32 %v6146_v21, %v4411_v11  ;;  %v2497_v8 = vsub.f32 %v6311_v57, %v2369_v46  ;;  %v2373_v38 = vmul.f32 %v6146_v21, %v4420_v36  ;;  %v4423_v54 = vunpack.c.l.bf16 %v4662_v58  ;;  %v4663_v46 = vld [vmem:[%s5288_s26 + $0x2d8] sm:$0xff]   ;;  %v6445_v58 = vld [vmem:[%s5288_s26 + $0x300] sm:$0xff]  }
 0x1d5   : > { %v6403_v17 = vpop.xlane.xlu0 %1161  ;;  %v2371_v29 = vmul.f32 %v6146_v21, %v4416_v48  ;;  %v2622_v63 = vmul.f32 %v4407_v42, %v2494_v18  ;;  %v4428_v12 = vunpack.c.h.bf16 %v4663_v46  ;;  %vm2028_vm15 = vcmask 1046534  }
 0x1d6   : > { %v2496_v25 = vsub.f32 %v6315_v51, %v2368_v52  ;;  %v2625_v47 = vmul.f32 %v4412_v43, %v2497_v8  ;;  %v2501_v18 = vsub.f32 %v6195_v53, %v2373_v38  ;;  %v2375_v52 = vmul.f32 %v6146_v21, %v4424_v15 }
 0x1d7   : > { %2788 = vadd.xlane.f32.xlu1 %v2619_v16  ;;  %v2370_v16 = vmul.f32 %v6146_v21, %v4415_v9  ;;  %v2499_v57 = vsub.f32 %v6330_v14, %v2371_v29  ;;  %v2377_v38 = vmul.f32 %v6146_v21, %v4428_v12 }
 0x1d8   : > { %2786 = vadd.xlane.f32.xlu0 %v2618_v61  ;;  %v6407_v20 = vpop.xlane.xlu1 %1167  ;;  %v2624_v42 = vmul.f32 %v4411_v11, %v2496_v25  ;;  %v4427_v25 = vunpack.c.l.bf16 %v4663_v46 }
 0x1d9   : > { %v6412_v34 = vpop.xlane.xlu0 %1165  ;;  %v2498_v51 = vsub.f32 %v6340_v31, %v2370_v16  ;;  %v2627_v43 = vmul.f32 %v4416_v48, %v2499_v57  ;;  %v2503_v57 = vsub.f32 %v6215_v44, %v2375_v52  ;;  %v4447_v52 = vunpack.c.l.bf16 %v6445_v58 }
 0x1db   : > { %2792 = vadd.xlane.f32.xlu1 %v2621_v59  ;;  %v2372_v59 = vmul.f32 %v6146_v21, %v4419_v49  ;;  %v2626_v8 = vmul.f32 %v4415_v9, %v2498_v51 }
 0x1dc   : > { %2790 = vadd.xlane.f32.xlu0 %v2620_v30  ;;  %v6416_v3 = vpop.xlane.xlu1 %1171 }
 0x1dd   : > { %v6421_v61 = vpop.xlane.xlu0 %1169  ;;  %v2500_v29 = vsub.f32 %v6205_v40, %v2372_v59  ;;  %v2376_v59 = vmul.f32 %v6146_v21, %v4427_v25 }
 0x1df   : > { %2796 = vadd.xlane.f32.xlu1 %v2623_v2  ;;  %v6435_v2 = vld [vmem:[%s5288_s26 + $0x2e0] sm:$0xff]  }
 0x1e0   : > { %2794 = vadd.xlane.f32.xlu0 %v2622_v63  ;;  %v6425_v55 = vpop.xlane.xlu1 %1175  ;;  %v2374_v63 = vmul.f32 %v6146_v21, %v4423_v54  ;;  %v4432_v48 = vunpack.c.h.bf16 %v6435_v2  ;;  %v4431_v46 = vunpack.c.l.bf16 %v6435_v2  ;;  %v2504_v2 = vsub.f32 %v6237_v27, %v2376_v59 }
 0x1e1   : > { %v6430_v30 = vpop.xlane.xlu0 %1173 }
 0x1e2   : > { %v2502_v51 = vsub.f32 %v6221_v33, %v2374_v63  ;;  %v2378_v44 = vmul.f32 %v6146_v21, %v4431_v46 }
 0x1e3   : > { %2800 = vadd.xlane.f32.xlu1 %v2625_v47  ;;  %v2629_v47 = vmul.f32 %v4420_v36, %v2501_v18  ;;  %v6458_v36 = vld [vmem:[%s5288_s26 + $0x340] sm:$0xff]   ;;  %v2379_v18 = vmul.f32 %v6146_v21, %v4432_v48 }
 0x1e4   : > { %2798 = vadd.xlane.f32.xlu0 %v2624_v42  ;;  %v6437_v11 = vpop.xlane.xlu1 %1179  ;;  %v2628_v42 = vmul.f32 %v4419_v49, %v2500_v29  ;;  %v2505_v49 = vsub.f32 %v6232_v39, %v2377_v38  ;;  %v2630_v63 = vmul.f32 %v4423_v54, %v2502_v51  ;;  %v4479_v50 = vunpack.c.l.bf16 %v6458_v36 }
 0x1e5   : > { %v6441_v16 = vpop.xlane.xlu0 %1177  ;;  %v1863_v39 = vrot.slane %v6390_v22, %v5540_v60  ;;  %v2507_v54 = vsub.f32 %v6251_v62, %v2379_v18  ;;  %v2506_v51 = vsub.f32 %v6261_v41, %v2378_v44  ;;  %v4480_v27 = vunpack.c.h.bf16 %v6458_v36  ;;  %v6493_v44 = vld [vmem:[%s5288_s26 + $0x380] sm:$0xff]  }
 0x1e7   : > { %2804 = vadd.xlane.f32.xlu1 %v2627_v43  ;;  %v4448_v43 = vunpack.c.h.bf16 %v6445_v58  ;;  %v2386_v58 = vmul.f32 %v6146_v21, %v4447_v52 }
 0x1e8   : > { %2802 = vadd.xlane.f32.xlu0 %v2626_v8  ;;  %v6449_v9 = vpop.xlane.xlu1 %1183  ;;  %v2631_v8 = vmul.f32 %v4424_v15, %v2503_v57  ;;  %v1867_v15 = vrot.slane %v6384_v23, %v5567_v24  ;;  %v2633_v57 = vmul.f32 %v4428_v12, %v2505_v49  ;;  %v2402_v23 = vmul.f32 %v6146_v21, %v4479_v50 }
 0x1e9   : > { %7361 = vst [vmem:[#allocation30_spill] sm:$0xff] %v6449_v9  ;;  %v6454_v35 = vpop.xlane.xlu0 %1181  ;;  %v2387_v13 = vmul.f32 %v6146_v21, %v4448_v43  ;;  %v6472_v9 = vld [vmem:[%s5288_s26 + $0x308] sm:$0xff]   ;;  %v1877_v12 = vrot.slane %v6398_v56, %v5553_v5  ;;  %v2634_v56 = vmul.f32 %v4431_v46, %v2506_v51  ;;  %v1892_v51 = vrot.slane %v6421_v61, %v5593_v45 }
 0x1ea   : > { %v4451_v59 = vunpack.c.l.bf16 %v6472_v9  ;;  %v4452_v18 = vunpack.c.h.bf16 %v6472_v9 }
 0x1eb   : > { %2808 = vadd.xlane.f32.xlu1 %v2629_v47  ;;  %v1872_v47 = vrot.slane %v6403_v17, %v5548_v1  ;;  %v2515_v62 = vsub.f32 %v6330_v14, %v2387_v13  ;;  %v1868_v17 = vsel %vm1365_vm0, %v1867_v15, %v1863_v39  ;;  %v1882_v13 = vrot.slane %v6412_v34, %v5575_v28 }
 0x1ec   : > { %2806 = vadd.xlane.f32.xlu0 %v2628_v42  ;;  %v6463_v29 = vpop.xlane.xlu1 %1187  ;;  %v2632_v42 = vmul.f32 %v4427_v25, %v2504_v2  ;;  %v2514_v25 = vsub.f32 %v6340_v31, %v2386_v58  ;;  %v2389_v39 = vmul.f32 %v6146_v21, %v4452_v18  ;;  %v4511_v34 = vunpack.c.l.bf16 %v6493_v44  ;;  %v6506_v58 = vld [vmem:[%s5288_s26 + $0x348] sm:$0xff]  }
 0x1ed   : > { %v6468_v32 = vpop.xlane.xlu0 %1185  ;;  %v1873_v41 = vsel %vm1372_vm1, %v1872_v47, %v1868_v17  ;;  %v2643_v15 = vmul.f32 %v4448_v43, %v2515_v62  ;;  %v1887_v47 = vrot.slane %v6407_v20, %v5572_v26 }
 0x1ee   : > { %v2418_v61 = vmul.f32 %v6146_v21, %v4511_v34 }
 0x1ef   : > { %2812 = vadd.xlane.f32.xlu1 %v2631_v8  ;;  %v2635_v8 = vmul.f32 %v4432_v48, %v2507_v54  ;;  %v2530_v48 = vsub.f32 %v6340_v31, %v2402_v23  ;;  %v2403_v54 = vmul.f32 %v6146_v21, %v4480_v27 }
 0x1f0   : > { %2810 = vadd.xlane.f32.xlu0 %v2630_v63  ;;  %v1192_v38 = vpop.xlane.xlu1 %1191  ;;  %v2388_v63 = vmul.f32 %v6146_v21, %v4451_v59 }
 0x1f1   : > { %v1190_v22 = vpop.xlane.xlu0 %1189  ;;  %v1946_v9 = vrot.slane %v1192_v38, %v5567_v24  ;;  %v2642_v38 = vmul.f32 %v4447_v52, %v2514_v25  ;;  %v2658_v17 = vmul.f32 %v4479_v50, %v2530_v48 }
 0x1f2   : > { %v1942_v36 = vrot.slane %v1190_v22, %v5540_v60  ;;  %v2516_v52 = vsub.f32 %v6205_v40, %v2388_v63  ;;  %v1902_v63 = vrot.slane %v6430_v30, %v5621_v6  ;;  %v2546_v30 = vsub.f32 %v6340_v31, %v2418_v61 }
 0x1f3   : > { %2816 = vadd.xlane.f32.xlu1 %v2633_v57  ;;  %v1878_v57 = vsel %vm1379_vm2, %v1877_v12, %v1873_v41  ;;  %v4483_v12 = vunpack.c.l.bf16 %v6506_v58  ;;  %v2517_v41 = vsub.f32 %v6195_v53, %v2389_v39  ;;  %v4484_v61 = vunpack.c.h.bf16 %v6506_v58 }
 0x1f4   : > { %2814 = vadd.xlane.f32.xlu0 %v2632_v42  ;;  %v1196_v49 = vpop.xlane.xlu1 %1195  ;;  %v6513_v42 = vld [vmem:[%s5288_s26 + $0x310] sm:$0xff]   ;;  %v1883_v43 = vsel %vm1386_vm3, %v1882_v13, %v1878_v57  ;;  %v1947_v23 = vsel %vm1365_vm0, %v1946_v9, %v1942_v36  ;;  %v2531_v13 = vsub.f32 %v6330_v14, %v2403_v54  ;;  %v6528_v36 = vld [vmem:[%s5288_s26 + $0x388] sm:$0xff]  }
 0x1f5   : > { %v1194_v2 = vpop.xlane.xlu0 %1193  ;;  %v1956_v22 = vrot.slane %v1196_v49, %v5553_v5  ;;  %v4455_v9 = vunpack.c.l.bf16 %v6513_v42  ;;  %v1888_v50 = vsel %vm1393_vm4, %v1887_v47, %v1883_v43  ;;  %v2644_v47 = vmul.f32 %v4451_v59, %v2516_v52 }
 0x1f6   : > { %v1951_v46 = vrot.slane %v1194_v2, %v5548_v1  ;;  %v1893_v48 = vsel %vm1400_vm5, %v1892_v51, %v1888_v50  ;;  %v2404_v57 = vmul.f32 %v6146_v21, %v4483_v12  ;;  %v2645_v43 = vmul.f32 %v4452_v18, %v2517_v41 }
 0x1f7   : > { %2820 = vadd.xlane.f32.xlu1 %v2635_v8  ;;  %v1897_v8 = vrot.slane %v6416_v3, %v5586_v37  ;;  %v2659_v51 = vmul.f32 %v4480_v27, %v2531_v13  ;;  %v1912_v27 = vrot.slane %v6441_v16, %v5672_v7  ;;  %v2674_v50 = vmul.f32 %v4511_v34, %v2546_v30 }
 0x1f8   : > { %v1952_v20 = vsel %vm1372_vm1, %v1951_v46, %v1947_v23  ;;  %2818 = vadd.xlane.f32.xlu0 %v2634_v56  ;;  %v1200_v62 = vpop.xlane.xlu1 %1199  ;;  %v4512_v56 = vunpack.c.h.bf16 %v6493_v44  ;;  %v4515_v44 = vunpack.c.l.bf16 %v6528_v36  ;;  %v2390_v23 = vmul.f32 %v6146_v21, %v4455_v9 }
 0x1f9   : > { %v1198_v25 = vpop.xlane.xlu0 %1197  ;;  %v1966_v2 = vrot.slane %v1200_v62, %v5572_v26  ;;  %v1957_v39 = vsel %vm1379_vm2, %v1956_v22, %v1952_v20  ;;  %v1898_v22 = vsel %vm1407_vm6, %v1897_v8, %v1893_v48  ;;  %v6551_v20 = vld [vmem:[%s5288_s26 + $0x3c0] sm:$0xff]   ;;  %v2532_v41 = vsub.f32 %v6205_v40, %v2404_v57 }
 0x1fa   : > { %v1961_v49 = vrot.slane %v1198_v25, %v5575_v28  ;;  %v2419_v59 = vmul.f32 %v6146_v21, %v4512_v56  ;;  %v1903_v62 = vsel %vm1414_vm7, %v1902_v63, %v1898_v22  ;;  %v2420_v13 = vmul.f32 %v6146_v21, %v4515_v44 }
 0x1fb   : > { %2836 = vadd.xlane.f32.xlu1 %v2643_v15  ;;  %v1907_v15 = vrot.slane %v6425_v55, %v5618_v4  ;;  %v2518_v16 = vsub.f32 %v6221_v33, %v2390_v23  ;;  %v4543_v48 = vunpack.c.l.bf16 %v6551_v20  ;;  %v1922_v34 = vrot.slane %v6454_v35, %v5707_v19 }
 0x1fc   : > { %v1962_v54 = vsel %vm1386_vm3, %v1961_v49, %v1957_v39  ;;  %2834 = vadd.xlane.f32.xlu0 %v2642_v38  ;;  %v1204_v3 = vpop.xlane.xlu1 %1203  ;;  %v4544_v49 = vunpack.c.h.bf16 %v6551_v20  ;;  %v2547_v39 = vsub.f32 %v6330_v14, %v2419_v59  ;;  %v2548_v30 = vsub.f32 %v6205_v40, %v2420_v13  ;;  %v6644_v20 = vld [vmem:[%s5288_s26 + $0x390] sm:$0xff]  }
 0x1fd   : > { %v1202_v46 = vpop.xlane.xlu0 %1201  ;;  %v1976_v18 = vrot.slane %v1204_v3, %v5586_v37  ;;  %v1967_v52 = vsel %vm1393_vm4, %v1966_v2, %v1962_v54  ;;  %v1908_v63 = vsel %vm1421_vm8, %v1907_v15, %v1903_v62  ;;  %v6571_v54 = vld [vmem:[%s5288_s26 + $0x350] sm:$0xff]   ;;  %v2405_v23 = vmul.f32 %v6146_v21, %v4484_v61 }
 0x1fe   : > { %v1971_v38 = vrot.slane %v1202_v46, %v5593_v45  ;;  %v1913_v58 = vsel %vm1428_vm9, %v1912_v27, %v1908_v63  ;;  %v2660_v46 = vmul.f32 %v4483_v12, %v2532_v41  ;;  %v2646_v22 = vmul.f32 %v4455_v9, %v2518_v16  ;;  %v6599_v41 = vld [vmem:[%s5288_s26 + $0x3c8] sm:$0xff]  }
 0x1ff   : > { %2866 = vadd.xlane.f32.xlu1 %v2658_v17  ;;  %v1917_v17 = vrot.slane %v6437_v11, %v5647_v0  ;;  %v2435_v35 = vmul.f32 %v6146_v21, %v4544_v49  ;;  %v2675_v27 = vmul.f32 %v4512_v56, %v2547_v39  ;;  %v2676_v16 = vmul.f32 %v4515_v44, %v2548_v30 }
 0x200   : > { %v1972_v55 = vsel %vm1400_vm5, %v1971_v38, %v1967_v52  ;;  %2838 = vadd.xlane.f32.xlu0 %v2644_v47  ;;  %v1208_v25 = vpop.xlane.xlu1 %1207  ;;  %v4487_v38 = vunpack.c.l.bf16 %v6571_v54  ;;  %v2533_v56 = vsub.f32 %v6195_v53, %v2405_v23  ;;  %v1223_v39 = vstv %s3924_s23  ;;  %v7365_v23 = vld [vmem:[#allocation24_spill] sm:$0xff] }
 0x201   : > { %v1206_v8 = vpop.xlane.xlu0 %1205  ;;  %v1986_v3 = vrot.slane %v1208_v25, %v5618_v4  ;;  %v1977_v47 = vsel %vm1407_vm6, %v1976_v18, %v1972_v55  ;;  %v1918_v59 = vsel %vm7330_vm10, %v1917_v17, %v1913_v58  ;;  %v7363_v18 = vld [vmem:[#allocation26_spill] sm:$0xff]  ;;  %v4456_v17 = vunpack.c.h.bf16 %v6513_v42  ;;  %v7364_v58 = vld [vmem:[#allocation25_spill] sm:$0xff] }
 0x202   : > { %v1981_v2 = vrot.slane %v1206_v8, %v5621_v6  ;;  %v1923_v9 = vsel %vm7329_vm11, %v1922_v34, %v1918_v59  ;;  %v1932_v52 = vrot.slane %v6468_v32, %v7363_v18  ;;  %v1937_v34 = vrot.slane %v6463_v29, %v7364_v58 }
 0x203   : > { %2840 = vadd.xlane.f32.xlu1 %v2645_v43  ;;  %v2434_v43 = vmul.f32 %v6146_v21, %v4543_v48  ;;  %v4547_v42 = vunpack.c.l.bf16 %v6599_v41 }
 0x204   : > { %v1982_v11 = vsel %vm1414_vm7, %v1981_v2, %v1977_v47  ;;  %2868 = vadd.xlane.f32.xlu0 %v2659_v51  ;;  %v1212_v57 = vpop.xlane.xlu1 %1211  ;;  %v7362_v51 = vld [vmem:[#allocation30_spill] sm:$0xff]  ;;  %v2563_v2 = vsub.f32 %v6330_v14, %v2435_v35 }
 0x205   : > { %v1210_v15 = vpop.xlane.xlu0 %1209  ;;  %v1927_v12 = vrot.slane %v7362_v51, %v5702_v10  ;;  %v1996_v55 = vrot.slane %v1212_v57, %v5647_v0  ;;  %v1987_v25 = vsel %vm1421_vm8, %v1986_v3, %v1982_v11  ;;  %v2562_v32 = vsub.f32 %v6340_v31, %v2434_v43 }
 0x206   : > { %v1991_v62 = vrot.slane %v1210_v15, %v5672_v7  ;;  %v2661_v57 = vmul.f32 %v4484_v61, %v2533_v56  ;;  %v1224_v15 = vadd.s32 %v1223_v39, %v7365_v23  ;;  %v2691_v51 = vmul.f32 %v4544_v49, %v2563_v2  ;;  %v7367_v2 = vld [vmem:[#allocation29_spill] sm:$0xff] }
 0x207   : > { %2898 = vadd.xlane.f32.xlu1 %v2674_v50  ;;  %v2406_v50 = vmul.f32 %v6146_v21, %v4487_v38  ;;  %v1928_v44 = vsel %vm1449_vm12, %v1927_v12, %v1923_v9  ;;  %v4516_v21 = vunpack.c.h.bf16 %v6528_v36  ;;  %v6630_v36 = vld [vmem:[%s5288_s26 + $0x318] sm:$0xff]   ;;  %v2690_v59 = vmul.f32 %v4543_v48, %v2562_v32 }
 0x208   : > { %v1992_v13 = vsel %vm1428_vm9, %v1991_v62, %v1987_v25  ;;  %2870 = vadd.xlane.f32.xlu0 %v2660_v46  ;;  %v1216_v8 = vpop.xlane.xlu1 %1215  ;;  %v1933_v47 = vsel %vm1456_vm13, %v1932_v52, %v1928_v44  ;;  %v6621_v46 = vld [vmem:[#allocation7] ss:$0 sm:$0xff]  ;;  %v4488_v9 = vunpack.c.h.bf16 %v6571_v54  ;;  %v4519_v54 = vunpack.c.l.bf16 %v6644_v20 }
 0x209   : > { %v1214_v63 = vpop.xlane.xlu0 %1213  ;;  %v2006_v14 = vrot.slane %v1216_v8, %v5702_v10  ;;  %v1997_v31 = vsel %vm7330_vm10, %v1996_v55, %v1992_v13  ;;  %v2391_v30 = vmul.f32 %v6621_v46, %v4456_v17  ;;  %v1938_v61 = vsel %vm1463_vm14, %v1937_v34, %v1933_v47  ;;  %v7366_v25 = vld [vmem:[#allocation27_spill] sm:$0xff] }
 0x20a   : > { %v2001_v3 = vrot.slane %v1214_v63, %v5707_v19  ;;  %v2436_v62 = vmul.f32 %v6621_v46, %v4547_v42  ;;  %v2421_v49 = vmul.f32 %v6621_v46, %v4516_v21  ;;  %v4459_v8 = vunpack.c.l.bf16 %v6630_v36 }
 0x20b   : > { %2842 = vadd.xlane.f32.xlu1 %v2646_v22  ;;  %v2534_v22 = vsub.f32 %v6221_v33, %v2406_v50  ;;  %v2519_v13 = vsub.f32 %v7366_v25, %v2391_v30  ;;  %vm1225_vm10 = vcmp.lt.s32.totalorder %v1224_v15, 20  ;;  %v2029_v32 = vsel %vm2028_vm15, %v1938_v61, %v7367_v2 }
 0x20c   : > { %v2002_v11 = vsel %vm7329_vm11, %v2001_v3, %v1997_v31  ;;  %2900 = vadd.xlane.f32.xlu0 %v2675_v27  ;;  %v1220_v29 = vpop.xlane.xlu1 %1219  ;;  %vm7331_vm11 = vcmask 1047559   ;;  %v2564_v39 = vsub.f32 %v6205_v40, %v2436_v62  ;;  %v4548_v34 = vunpack.c.h.bf16 %v6599_v41  ;;  %v6664_v41 = vld [vmem:[%s5288_s26 + $0x358] sm:$0xff]  }
 0x20d   : > { %v2016_v35 = vrot.slane %v1220_v29, %v7364_v58  ;;  %v1218_v43 = vpop.xlane.xlu0 %1217  ;;  %v2007_v27 = vsel %vm1449_vm12, %v2006_v14, %v2002_v11  ;;  %v2662_v63 = vmul.f32 %v4487_v38, %v2534_v22  ;;  %v2549_v3 = vsub.f32 %v6195_v53, %v2421_v49 }
 0x20e   : > { %v2011_v12 = vrot.slane %v1218_v43, %v7363_v18  ;;  %v2407_v47 = vmul.f32 %v6621_v46, %v4488_v9  ;;  %v2647_v11 = vmul.f32 %v4456_v17, %v2519_v13  ;;  %v2392_v40 = vmul.f32 %v6621_v46, %v4459_v8  ;;  %v6671_v43 = vld [vmem:[%s5288_s26 + $0x3d0] sm:$0xff]  }
 0x20f   : > { %2902 = vadd.xlane.f32.xlu1 %v2676_v16  ;;  %v2692_v15 = vmul.f32 %v4547_v42, %v2564_v39  ;;  %v2677_v17 = vmul.f32 %v4516_v21, %v2549_v3  ;;  %v2422_v61 = vmul.f32 %v6621_v46, %v4519_v54  ;;  %v7368_v42 = vld [vmem:[#allocation28_spill] sm:$0xff]  ;;  %v4460_v49 = vunpack.c.h.bf16 %v6630_v36 }
 0x210   : > { %v2012_v52 = vsel %vm1456_vm13, %v2011_v12, %v2007_v27  ;;  %2872 = vadd.xlane.f32.xlu0 %v2661_v57  ;;  %v2709_v55 = vpop.xlane.xlu1 %2708  ;;  %v2535_v22 = vsub.f32 %v7366_v25, %v2407_v47  ;;  %v4491_v12 = vunpack.c.l.bf16 %v6664_v41  ;;  %v2520_v27 = vsub.f32 %v7368_v42, %v2392_v40  ;;  %v6698_v40 = vld [vmem:[#allocation2] sm:$0x1] }
 0x211   : > { %v2017_v48 = vsel %vm1463_vm14, %v2016_v35, %v2012_v52  ;;  %v3101_v16 = vrot.slane %v2709_v55, %v5567_v24  ;;  %v2707_v56 = vpop.xlane.xlu0 %2706  ;;  %v2437_v35 = vmul.f32 %v6621_v46, %v4548_v34  ;;  %v4551_v25 = vunpack.c.l.bf16 %v6671_v43 }
 0x212   : > { %v3097_v50 = vrot.slane %v2707_v56, %v5540_v60  ;;  %v2031_v44 = vsel %vm7331_vm11, %v2017_v48, %v2029_v32  ;;  %v2663_v2 = vmul.f32 %v4488_v9, %v2535_v22  ;;  %v2550_v32 = vsub.f32 %v6221_v33, %v2422_v61 }
 0x213   : > { %2932 = vadd.xlane.f32.xlu1 %v2691_v51  ;;  %v6659_v38 = vsel %vm1225_vm10, %v2031_v44, -1e+30  ;;  %v2408_v36 = vmul.f32 %v6621_v46, %v4491_v12  ;;  %v2648_v3 = vmul.f32 %v4459_v8, %v2520_v27  ;;  %v2393_v47 = vmul.f32 %v6621_v46, %v4460_v49 }
 0x214   : > { %v3102_v14 = vsel %vm1365_vm0, %v3101_v16, %v3097_v50  ;;  %2930 = vadd.xlane.f32.xlu0 %v2690_v59  ;;  %v2713_v31 = vpop.xlane.xlu1 %2712  ;;  %v2035_v29 = vrot.slane %v6659_v38, 4  ;;  %v4862_v16 = vld [vmem:[%s5277_s15 + $0x18] sm:$0xff]  ;;  %v4520_v50 = vunpack.c.h.bf16 %v6644_v20  ;;  %v2438_v33 = vmul.f32 %v6621_v46, %v4551_v25  ;;  %v6696_v20 = vld [vmem:[%s5288_s26 + $0x320] sm:$0xff]  }
 0x215   : > { %v3111_v53 = vrot.slane %v2713_v31, %v5553_v5  ;;  %v2711_v57 = vpop.xlane.xlu0 %2710  ;;  %v2565_v56 = vsub.f32 %v4862_v16, %v2437_v35  ;;  %vm7369_vm10 = vcmask 786112   ;;  %vm7372_vm11 = vcmask 851712  }
 0x216   : > { %v3106_v30 = vrot.slane %v2711_v57, %v5548_v1  ;;  %v2036_v51 = vmax.f32 %v6659_v38, %v2035_v29  ;;  %v2423_v35 = vmul.f32 %v6621_v46, %v4520_v50 }
 0x217   : > { %2874 = vadd.xlane.f32.xlu1 %v2662_v63  ;;  %v2693_v29 = vmul.f32 %v4548_v34, %v2565_v56 }
 0x218   : > { %v3107_v59 = vsel %vm1372_vm1, %v3106_v30, %v3102_v14  ;;  %2844 = vadd.xlane.f32.xlu0 %v2647_v11  ;;  %v2717_v62 = vpop.xlane.xlu1 %2716  ;;  %v2037_v52 = vrot.slane %v2036_v51, 2  ;;  %v2678_v30 = vmul.f32 %v4519_v54, %v2550_v32 }
 0x219   : > { %v3121_v55 = vrot.slane %v2717_v62, %v5572_v26  ;;  %v3112_v13 = vsel %vm1379_vm2, %v3111_v53, %v3107_v59  ;;  %v2715_v21 = vpop.xlane.xlu0 %2714  ;;  %v2050_v53 = vsub.s32 0, %v7365_v23  ;;  %v6710_v59 = vld [vmem:[%s5277_s15 + $0x38] sm:$0xff]  ;;  %v4463_v62 = vunpack.c.l.bf16 %v6696_v20 }
 0x21a   : > { %v3116_v48 = vrot.slane %v2715_v21, %v5575_v28  ;;  %v2038_v63 = vmax.f32 %v2036_v51, %v2037_v52  ;;  %v4492_v51 = vunpack.c.h.bf16 %v6664_v41  ;;  %v2521_v34 = vsub.f32 %v6710_v59, %v2393_v47  ;;  %v4864_v52 = vld [vmem:[%s5277_s15 + $0x20] sm:$0xff]  ;;  %v6728_v47 = vld [vmem:[%s5288_s26 + $0x2e8] sm:$0xff]  }
 0x21b   : > { %2934 = vadd.xlane.f32.xlu1 %v2692_v15  ;;  %v2536_v15 = vsub.f32 %v7368_v42, %v2408_v36  ;;  %v4552_v21 = vunpack.c.h.bf16 %v6671_v43 }
 0x21c   : > { %v3117_v39 = vsel %vm1386_vm3, %v3116_v48, %v3112_v13  ;;  %2904 = vadd.xlane.f32.xlu0 %v2677_v17  ;;  %v2721_v44 = vpop.xlane.xlu1 %2720  ;;  %v2039_v14 = vrot.slane %v2038_v63, 1  ;;  %v6706_v17 = vld [vmem:[%s5288_s26 + $0x398] sm:$0xff]   ;;  %v2409_v32 = vmul.f32 %v6621_v46, %v4492_v51 }
 0x21d   : > { %v3131_v31 = vrot.slane %v2721_v44, %v5586_v37  ;;  %v3122_v11 = vsel %vm1393_vm4, %v3121_v55, %v3117_v39  ;;  %v2719_v9 = vpop.xlane.xlu0 %2718  ;;  %v2566_v55 = vsub.f32 %v4864_v52, %v2438_v33  ;;  %v4523_v48 = vunpack.c.l.bf16 %v6706_v17  ;;  %v6754_v52 = vld [vmem:[%s5277_s15 + $0x30] sm:$0xff] }
 0x21e   : > { %v3126_v8 = vrot.slane %v2719_v9, %v5593_v45  ;;  %v2040_v57 = vmax.f32 %v2038_v63, %v2039_v14  ;;  %v2664_v56 = vmul.f32 %v4491_v12, %v2536_v15  ;;  %v4865_v63 = vld [vmem:[%s5277_s15 + $0x28] sm:$0xff]  ;;  %v2649_v44 = vmul.f32 %v4460_v49, %v2521_v34 }
 0x21f   : > { %2876 = vadd.xlane.f32.xlu1 %v2663_v2  ;;  %v2551_v2 = vsub.f32 %v4865_v63, %v2423_v35  ;;  %v2694_v9 = vmul.f32 %v4551_v25, %v2566_v55  ;;  %v2424_v49 = vmul.f32 %v6621_v46, %v4523_v48  ;;  %v4435_v15 = vunpack.c.l.bf16 %v6728_v47  ;;  %v6743_v35 = vld [vmem:[%s5277_s15 + $0x40] sm:$0xff] }
 0x220   : > { %v3127_v22 = vsel %vm1400_vm5, %v3126_v8, %v3122_v11  ;;  %2846 = vadd.xlane.f32.xlu0 %v2648_v3  ;;  %v2725_v61 = vpop.xlane.xlu1 %2724  ;;  %v2041_v54 = vmax.f32 %v6698_v40, %v2040_v57  ;;  %v2394_v3 = vmul.f32 %v6621_v46, %v4463_v62  ;;  %v2439_v8 = vmul.f32 %v6621_v46, %v4552_v21 }
 0x221   : > { %v3141_v42 = vrot.slane %v2725_v61, %v5618_v4  ;;  %v3132_v27 = vsel %vm1407_vm6, %v3131_v31, %v3127_v22  ;;  %v2723_v41 = vpop.xlane.xlu0 %2722  ;;  %v2679_v57 = vmul.f32 %v4520_v50, %v2551_v2  ;;  %v2552_v55 = vsub.f32 %v6754_v52, %v2424_v49  ;;  %v6779_v49 = vld [vmem:[%s5288_s26 + $0x328] sm:$0xff]  }
 0x222   : > { %v3136_v13 = vrot.slane %v2723_v41, %v5621_v6  ;;  %v2051_v16 = vrot.slane %v2041_v54, %v2050_v53  ;;  %2064 = vst [vmem:[#allocation2] sm:$0x1] %v2041_v54  ;;  %v2522_v22 = vsub.f32 %v6743_v35, %v2394_v3  ;;  %v2042_v61 = vsub.f32 %v6698_v40, %v2041_v54  ;;  %v6765_v3 = vld [vmem:[%s5288_s26 + $0x3d8] sm:$0xff]  }
 0x223   : > { %2936 = vadd.xlane.f32.xlu1 %v2693_v29  ;;  %v2567_v41 = vsub.f32 %v4865_v63, %v2439_v8  ;;  %v2380_v54 = vmul.f32 %v6621_v46, %v4435_v15  ;;  %v4436_v8 = vunpack.c.h.bf16 %v6728_v47 }
 0x224   : > { %v3137_v36 = vsel %vm1414_vm7, %v3136_v13, %v3132_v27  ;;  %2906 = vadd.xlane.f32.xlu0 %v2678_v30  ;;  %v2729_v39 = vpop.xlane.xlu1 %2728  ;;  %v2053_v14 = vsub.f32 %v6659_v38, %v2051_v16  ;;  %v2537_v38 = vsub.f32 %v6710_v59, %v2409_v32  ;;  %v4464_v30 = vunpack.c.h.bf16 %v6696_v20  ;;  %v6750_v27 = vld [vmem:[%s5288_s26 + $0x360] sm:$0xff]  }
 0x225   : > { %v3151_v31 = vrot.slane %v2729_v39, %v5647_v0  ;;  %v3142_v12 = vsel %vm1421_vm8, %v3141_v42, %v3137_v36  ;;  %v2727_v11 = vpop.xlane.xlu0 %2726  ;;  %v4524_v16 = vunpack.c.h.bf16 %v6706_v17  ;;  %v2650_v63 = vmul.f32 %v4463_v62, %v2522_v22 }
 0x226   : > { %v3146_v33 = vrot.slane %v2727_v11, %v5672_v7  ;;  %v2054_v29 = vmul.f32 1.442695, %v2053_v14  ;;  %v2665_v13 = vmul.f32 %v4492_v51, %v2537_v38  ;;  %v2395_v40 = vmul.f32 %v6621_v46, %v4464_v30  ;;  %v6773_v11 = vld [vmem:[%s5277_s15 + $0x50] sm:$0xff] }
 0x227   : > { %2878 = vadd.xlane.f32.xlu1 %v2664_v56  ;;  %v4495_v32 = vunpack.c.l.bf16 %v6750_v27  ;;  %v2043_v36 = vmul.f32 1.442695, %v2042_v61  ;;  %v2695_v17 = vmul.f32 %v4552_v21, %v2567_v41  ;;  %v4496_v47 = vunpack.c.h.bf16 %v6750_v27 }
 0x228   : > { %v3147_v43 = vsel %vm1428_vm9, %v3146_v33, %v3142_v12  ;;  %2848 = vadd.xlane.f32.xlu0 %v2649_v44  ;;  %v2733_v25 = vpop.xlane.xlu1 %2732  ;;  %4819 = vpow2.f32 %v2054_v29  ;;  %v6769_v12 = vld [vmem:[%s5277_s15 + $0x48] sm:$0xff]  ;;  %v2425_v33 = vmul.f32 %v6621_v46, %v4524_v16  ;;  %v4467_v61 = vunpack.c.l.bf16 %v6779_v49 }
 0x229   : > { %v3161_v50 = vrot.slane %v2733_v25, %v5702_v10  ;;  %v3152_v34 = vsel %vm7369_vm10, %v3151_v31, %v3147_v43  ;;  %v2731_v42 = vpop.xlane.xlu0 %2730  ;;  %vm7370_vm10 = vcmask 851712   ;;  %v2680_v31 = vmul.f32 %v4523_v48, %v2552_v55 }
 0x22a   : > { %v3156_v20 = vrot.slane %v2731_v42, %v5707_v19  ;;  %v2523_v62 = vsub.f32 %v6769_v12, %v2395_v40  ;;  %v2410_v48 = vmul.f32 %v6621_v46, %v4495_v32  ;;  %4821 = vpow2.f32 %v2043_v36  ;;  %v6797_v40 = vld [vmem:[%s5288_s26 + $0x3a0] sm:$0xff]  }
 0x22b   : > { %2938 = vadd.xlane.f32.xlu1 %v2694_v9  ;;  %v2508_v9 = vsub.f32 %v6773_v11, %v2380_v54  ;;  %v2381_v42 = vmul.f32 %v6621_v46, %v4436_v8  ;;  %v2396_v36 = vmul.f32 %v6621_v46, %v4467_v61 }
 0x22c   : > { %v3157_v56 = vsel %vm7370_vm10, %v3156_v20, %v3152_v34  ;;  %2908 = vadd.xlane.f32.xlu0 %v2679_v57  ;;  %v2737_v2 = vpop.xlane.xlu1 %2736  ;;  %v4555_v57 = vunpack.c.l.bf16 %v6765_v3  ;;  %v2553_v34 = vsub.f32 %v6710_v59, %v2425_v33  ;;  %vm7371_vm10 = vcmask 786112  }
 0x22d   : > { %v3171_v39 = vrot.slane %v2737_v2, %v7364_v58  ;;  %v3162_v51 = vsel %vm1449_vm12, %v3161_v50, %v3157_v56  ;;  %v2735_v44 = vpop.xlane.xlu0 %2734  ;;  %v2651_v50 = vmul.f32 %v4464_v30, %v2523_v62  ;;  %v2636_v55 = vmul.f32 %v4435_v15, %v2508_v9 }
 0x22e   : > { %v3166_v14 = vrot.slane %v2735_v44, %v7363_v18  ;;  %v2440_v27 = vmul.f32 %v6621_v46, %v4555_v57  ;;  %v2411_v2 = vmul.f32 %v6621_v46, %v4496_v47  ;;  %v6805_v44 = vld [vmem:[%s5277_s15 + $0x58] sm:$0xff] }
 0x22f   : > { %2880 = vadd.xlane.f32.xlu1 %v2665_v13  ;;  %v2538_v13 = vsub.f32 %v6743_v35, %v2410_v48 }
 0x230   : > { %v3167_v29 = vsel %vm1456_vm13, %v3166_v14, %v3162_v51  ;;  %2850 = vadd.xlane.f32.xlu0 %v2650_v63  ;;  %v2741_v21 = vpop.xlane.xlu1 %2740  ;;  %v2681_v51 = vmul.f32 %v4524_v16, %v2553_v34  ;;  %v2509_v14 = vsub.f32 %v6805_v44, %v2381_v42  ;;  %v2568_v33 = vsub.f32 %v6754_v52, %v2440_v27 }
 0x231   : > { %v6785_v38 = vsel %vm1463_vm14, %v3171_v39, %v3167_v29  ;;  %v3180_v43 = vrot.slane %v2741_v21, %v5567_v24  ;;  %v2739_v25 = vpop.xlane.xlu0 %2738  ;;  %v4556_v39 = vunpack.c.h.bf16 %v6765_v3  ;;  %v2666_v9 = vmul.f32 %v4495_v32, %v2538_v13  ;;  %v6812_v29 = vld [vmem:[%s5288_s26 + $0x2f0] sm:$0xff]  }
 0x232   : > { %v3176_v22 = vrot.slane %v2739_v25, %v5540_v60  ;;  %v2637_v52 = vmul.f32 %v4436_v8, %v2509_v14  ;;  %v4468_v42 = vunpack.c.h.bf16 %v6779_v49  ;;  %v2696_v13 = vmul.f32 %v4555_v57, %v2568_v33  ;;  %v6827_v8 = vld [vmem:[%s5288_s26 + $0x368] sm:$0xff]  }
 0x233   : > { %2940 = vadd.xlane.f32.xlu1 %v2695_v17  ;;  %v4527_v17 = vunpack.c.l.bf16 %v6797_v40 }
 0x234   : > { %v3181_v20 = vsel %vm1365_vm0, %v3180_v43, %v3176_v22  ;;  %2910 = vadd.xlane.f32.xlu0 %v2680_v31  ;;  %v2745_v41 = vpop.xlane.xlu1 %2744  ;;  %v2539_v43 = vsub.f32 %v6769_v12, %v2411_v2  ;;  %v2524_v22 = vsub.f32 %v6773_v11, %v2396_v36  ;;  %v2045_v36 = vld [vmem:[#allocation3] sm:$0x1] }
 0x235   : > { %v4820_v54 = vpop.eup %4819  ;;  %v3190_v56 = vrot.slane %v2745_v41, %v5553_v5  ;;  %v2743_v30 = vpop.xlane.xlu0 %2742  ;;  %v2426_v32 = vmul.f32 %v6621_v46, %v4527_v17 }
 0x236   : > { %v3185_v63 = vrot.slane %v2743_v30, %v5548_v1  ;;  %v2056_v15 = vrot.slane %v4820_v54, 4 }
 0x237   : > { %2852 = vadd.xlane.f32.xlu1 %v2651_v50  ;;  %v2441_v50 = vmul.f32 %v6621_v46, %v4556_v39  ;;  %v2554_v57 = vsub.f32 %v6743_v35, %v2426_v32  ;;  %v4440_v32 = vunpack.c.h.bf16 %v6812_v29 }
 0x238   : > { %v3186_v31 = vsel %vm1372_vm1, %v3185_v63, %v3181_v20  ;;  %2822 = vadd.xlane.f32.xlu0 %v2636_v55  ;;  %v2749_v62 = vpop.xlane.xlu1 %2748  ;;  %v2057_v21 = vadd.f32 %v4820_v54, %v2056_v15  ;;  %v4439_v20 = vunpack.c.l.bf16 %v6812_v29  ;;  %v4822_v54 = vpop.eup %4821  ;;  %v2667_v63 = vmul.f32 %v4496_v47, %v2539_v43  ;;  %v6840_v43 = vld [vmem:[%s5288_s26 + $0x3e0] sm:$0xff]  }
 0x239   : > { %v3200_v3 = vrot.slane %v2749_v62, %v5572_v26  ;;  %v3191_v16 = vsel %vm1379_vm2, %v3190_v56, %v3186_v31  ;;  %v2747_v48 = vpop.xlane.xlu0 %2746  ;;  %v2652_v15 = vmul.f32 %v4467_v61, %v2524_v22  ;;  %v2397_v31 = vmul.f32 %v6621_v46, %v4468_v42 }
 0x23a   : > { %v3195_v25 = vrot.slane %v2747_v48, %v5575_v28  ;;  %v2058_v34 = vrot.slane %v2057_v21, 2  ;;  %v2382_v62 = vmul.f32 %v6621_v46, %v4439_v20  ;;  %v2046_v61 = vmul.f32 %v4822_v54, %v2045_v36 }
 0x23b   : > { %2912 = vadd.xlane.f32.xlu1 %v2681_v51  ;;  %v2569_v51 = vsub.f32 %v6710_v59, %v2441_v50  ;;  %v2682_v50 = vmul.f32 %v4527_v17, %v2554_v57 }
 0x23c   : > { %v3196_v41 = vsel %vm1386_vm3, %v3195_v25, %v3191_v16  ;;  %2882 = vadd.xlane.f32.xlu0 %v2666_v9  ;;  %v2753_v55 = vpop.xlane.xlu1 %2752  ;;  %v2059_v27 = vadd.f32 %v2058_v34, %v2057_v21  ;;  %v4528_v9 = vunpack.c.h.bf16 %v6797_v40  ;;  %v4499_v21 = vunpack.c.l.bf16 %v6827_v8 }
 0x23d   : > { %v3210_v56 = vrot.slane %v2753_v55, %v5586_v37  ;;  %v3201_v30 = vsel %vm1393_vm4, %v3200_v3, %v3196_v41  ;;  %v2751_v2 = vpop.xlane.xlu0 %2750  ;;  %v2697_v40 = vmul.f32 %v4556_v39, %v2569_v51  ;;  %v2525_v34 = vsub.f32 %v6805_v44, %v2397_v31 }
 0x23e   : > { %v3205_v49 = vrot.slane %v2751_v2, %v5593_v45  ;;  %v2060_v14 = vrot.slane %v2059_v27, 1  ;;  %v2412_v54 = vmul.f32 %v6621_v46, %v4499_v21  ;;  %v4559_v39 = vunpack.c.l.bf16 %v6840_v43 }
 0x23f   : > { %2824 = vadd.xlane.f32.xlu1 %v2637_v52  ;;  %v2427_v52 = vmul.f32 %v6621_v46, %v4528_v9  ;;  %v2653_v36 = vmul.f32 %v4468_v42, %v2525_v34 }
 0x240   : > { %v3206_v47 = vsel %vm1400_vm5, %v3205_v49, %v3201_v30  ;;  %2942 = vadd.xlane.f32.xlu0 %v2696_v13  ;;  %v2757_v33 = vpop.xlane.xlu1 %2756  ;;  %v2061_v3 = vadd.f32 %v2060_v14, %v2059_v27  ;;  %v6848_v13 = vld [vmem:[%s5277_s15 + $0x60] sm:$0xff] }
 0x241   : > { %v3220_v59 = vrot.slane %v2757_v33, %v5618_v4  ;;  %v3211_v16 = vsel %vm1407_vm6, %v3210_v56, %v3206_v47  ;;  %v2755_v48 = vpop.xlane.xlu0 %2754  ;;  %v2510_v27 = vsub.f32 %v6848_v13, %v2382_v62  ;;  %v6854_v56 = vld [vmem:[%s5288_s26 + $0x330] sm:$0xff]   ;;  %v2555_v49 = vsub.f32 %v6769_v12, %v2427_v52 }
 0x242   : > { %v3215_v25 = vrot.slane %v2755_v48, %v5621_v6  ;;  %v2062_v22 = vadd.f32 %v2061_v3, %v2046_v61  ;;  %v4471_v51 = vunpack.c.l.bf16 %v6854_v56  ;;  %v2540_v62 = vsub.f32 %v6773_v11, %v2412_v54  ;;  %v6869_v61 = vld [vmem:[%s5288_s26 + $0x3a8] sm:$0xff]   ;;  %v6885_v54 = vld [vmem:[%s5288_s26 + $0x2f8] sm:$0xff]  }
 0x243   : > { %2884 = vadd.xlane.f32.xlu1 %v2667_v63  ;;  %v4500_v63 = vunpack.c.h.bf16 %v6827_v8  ;;  %v2638_v31 = vmul.f32 %v4439_v20, %v2510_v27  ;;  %v2442_v47 = vmul.f32 %v6621_v46, %v4559_v39  ;;  %v6874_v48 = vld [vmem:[%s5277_s15 + $0x68] sm:$0xff] }
 0x244   : > { %v3216_v41 = vsel %vm1414_vm7, %v3215_v25, %v3211_v16  ;;  %2854 = vadd.xlane.f32.xlu0 %v2652_v15  ;;  %v2761_v55 = vpop.xlane.xlu1 %2760  ;;  %2063 = vst [vmem:[#allocation3] sm:$0x1] %v2062_v22  ;;  %v2383_v15 = vmul.f32 %v6621_v46, %v4440_v32  ;;  %v2683_v16 = vmul.f32 %v4528_v9, %v2555_v49 }
 0x245   : > { %v3230_v17 = vrot.slane %v2761_v55, %v5647_v0  ;;  %v3221_v30 = vsel %vm1421_vm8, %v3220_v59, %v3216_v41  ;;  %v2759_v29 = vpop.xlane.xlu0 %2758  ;;  %v2413_v59 = vmul.f32 %v6621_v46, %v4500_v63  ;;  %v2398_v25 = vmul.f32 %v6621_v46, %v4471_v51 }
 0x246   : > { %v3225_v2 = vrot.slane %v2759_v29, %v5672_v7  ;;  %v2511_v20 = vsub.f32 %v6874_v48, %v2383_v15  ;;  %v2668_v34 = vmul.f32 %v4499_v21, %v2540_v62  ;;  %v2570_v52 = vsub.f32 %v6743_v35, %v2442_v47  ;;  %v6898_v62 = vld [vmem:[%s5288_s26 + $0x370] sm:$0xff]  }
 0x247   : > { %2944 = vadd.xlane.f32.xlu1 %v2697_v40  ;;  %v4560_v40 = vunpack.c.h.bf16 %v6840_v43  ;;  %v4531_v41 = vunpack.c.l.bf16 %v6869_v61  ;;  %v2541_v43 = vsub.f32 %v6805_v44, %v2413_v59  ;;  %v2526_v21 = vsub.f32 %v6848_v13, %v2398_v25 }
 0x248   : > { %v3226_v14 = vsel %vm1428_vm9, %v3225_v2, %v3221_v30  ;;  %2914 = vadd.xlane.f32.xlu0 %v2682_v50  ;;  %v2765_v57 = vpop.xlane.xlu1 %2764  ;;  %v2639_v30 = vmul.f32 %v4440_v32, %v2511_v20  ;;  %v4472_v29 = vunpack.c.h.bf16 %v6854_v56  ;;  %v2698_v49 = vmul.f32 %v4559_v39, %v2570_v52 }
 0x249   : > { %v3240_v8 = vrot.slane %v2765_v57, %v5702_v10  ;;  %v3231_v42 = vsel %vm7371_vm10, %v3230_v17, %v3226_v14  ;;  %v2763_v33 = vpop.xlane.xlu0 %2762  ;;  %v2443_v35 = vmul.f32 %v6621_v46, %v4560_v40  ;;  %v2428_v15 = vmul.f32 %v6621_v46, %v4531_v41 }
 0x24a   : > { %v3235_v3 = vrot.slane %v2763_v33, %v5707_v19  ;;  %v4443_v14 = vunpack.c.l.bf16 %v6885_v54  ;;  %v2654_v39 = vmul.f32 %v4471_v51, %v2526_v21  ;;  %v2399_v33 = vmul.f32 %v6621_v46, %v4472_v29 }
 0x24b   : > { %2856 = vadd.xlane.f32.xlu1 %v2653_v36  ;;  %v2556_v20 = vsub.f32 %v6773_v11, %v2428_v15  ;;  %v4503_v25 = vunpack.c.l.bf16 %v6898_v62 }
 0x24c   : > { %v3236_v22 = vsel %vm7372_vm11, %v3235_v3, %v3231_v42  ;;  %2826 = vadd.xlane.f32.xlu0 %v2638_v31  ;;  %v2769_v50 = vpop.xlane.xlu1 %2768  ;;  %vm7373_vm11 = vcmask 1041409   ;;  %v2571_v42 = vsub.f32 %v6769_v12, %v2443_v35  ;;  %v4532_v3 = vunpack.c.h.bf16 %v6869_v61 }
 0x24d   : > { %v3250_v55 = vrot.slane %v2769_v50, %v7364_v58  ;;  %v3241_v9 = vsel %vm1449_vm12, %v3240_v8, %v3236_v22  ;;  %v2767_v27 = vpop.xlane.xlu0 %2766  ;;  %v2669_v8 = vmul.f32 %v4500_v63, %v2541_v43  ;;  %v6913_v63 = vld [vmem:[%s5288_s26 + $0x3e8] sm:$0xff]   ;;  %v4444_v61 = vunpack.c.h.bf16 %v6885_v54 }
 0x24e   : > { %v3245_v17 = vrot.slane %v2767_v27, %v7363_v18  ;;  %v2699_v50 = vmul.f32 %v4560_v40, %v2571_v42  ;;  %v2429_v52 = vmul.f32 %v6621_v46, %v4532_v3  ;;  %v6923_v43 = vld [vmem:[%s5277_s15 + $0x70] sm:$0xff]  ;;  %v2414_v54 = vmul.f32 %v6621_v46, %v4503_v25 }
 0x24f   : > { %2916 = vadd.xlane.f32.xlu1 %v2683_v16 }
 0x250   : > { %v3246_v2 = vsel %vm1456_vm13, %v3245_v17, %v3241_v9  ;;  %2886 = vadd.xlane.f32.xlu0 %v2668_v34  ;;  %v2773_v36 = vpop.xlane.xlu1 %2772  ;;  %v2527_v34 = vsub.f32 %v6874_v48, %v2399_v33  ;;  %v2684_v17 = vmul.f32 %v4531_v41, %v2556_v20  ;;  %v2557_v15 = vsub.f32 %v6805_v44, %v2429_v52 }
 0x251   : > { %v3251_v57 = vsel %vm1463_vm14, %v3250_v55, %v3246_v2  ;;  %v3259_v31 = vrot.slane %v2773_v36, %v5567_v24  ;;  %v2771_v32 = vpop.xlane.xlu0 %2770  ;;  %v4563_v55 = vunpack.c.l.bf16 %v6913_v63  ;;  %v6930_v2 = vld [vmem:[%s5288_s26 + $0x338] sm:$0xff]  }
 0x252   : > { %v6902_v56 = vsel %vm7373_vm11, %v3251_v57, %v6785_v38  ;;  %v3255_v47 = vrot.slane %v2771_v32, %v5540_v60  ;;  %v2384_v38 = vmul.f32 %v6621_v46, %v4443_v14  ;;  %v2655_v41 = vmul.f32 %v4472_v29, %v2527_v34 }
 0x253   : > { %2828 = vadd.xlane.f32.xlu1 %v2639_v30  ;;  %v2444_v57 = vmul.f32 %v6621_v46, %v4563_v55  ;;  %v4475_v42 = vunpack.c.l.bf16 %v6930_v2  ;;  %vm7374_vm11 = vcmask 851712  }
 0x254   : > { %v3260_v59 = vsel %vm1365_vm0, %v3259_v31, %v3255_v47  ;;  %2946 = vadd.xlane.f32.xlu0 %v2698_v49  ;;  %v2777_v16 = vpop.xlane.xlu1 %2776  ;;  %v2512_v30 = vsub.f32 %v6923_v43, %v2384_v38  ;;  %v2385_v49 = vmul.f32 %v6621_v46, %v4444_v61  ;;  %v4504_v31 = vunpack.c.h.bf16 %v6898_v62  ;;  %v6947_v62 = vld [vmem:[%s5277_s15 + $0x78] sm:$0xff] }
 0x255   : > { %v3269_v51 = vrot.slane %v2777_v16, %v5553_v5  ;;  %v2775_v12 = vpop.xlane.xlu0 %2774  ;;  %v6943_v16 = vld [vmem:[%s5288_s26 + $0x3b0] sm:$0xff]  }
 0x256   : > { %v3264_v22 = vrot.slane %v2775_v12, %v5548_v1  ;;  %v2513_v38 = vsub.f32 %v6947_v62, %v2385_v49  ;;  %v2415_v12 = vmul.f32 %v6621_v46, %v4504_v31 }
 0x257   : > { %2888 = vadd.xlane.f32.xlu1 %v2669_v8  ;;  %v2640_v8 = vmul.f32 %v4443_v14, %v2512_v30  ;;  %v2685_v14 = vmul.f32 %v4532_v3, %v2557_v15 }
 0x258   : > { %v3265_v9 = vsel %vm1372_vm1, %v3264_v22, %v3260_v59  ;;  %2858 = vadd.xlane.f32.xlu0 %v2654_v39  ;;  %v2781_v27 = vpop.xlane.xlu1 %2780  ;;  %v2542_v39 = vsub.f32 %v6848_v13, %v2414_v54  ;;  %v4564_v22 = vunpack.c.h.bf16 %v6913_v63  ;;  %v2641_v63 = vmul.f32 %v4444_v61, %v2513_v38 }
 0x259   : > { %v3279_v21 = vrot.slane %v2781_v27, %v5572_v26  ;;  %v3270_v40 = vsel %vm1379_vm2, %v3269_v51, %v3265_v9  ;;  %v2779_v35 = vpop.xlane.xlu0 %2778  ;;  %v2572_v51 = vsub.f32 %v6773_v11, %v2444_v57  ;;  %v2400_v9 = vmul.f32 %v6621_v46, %v4475_v42 }
 0x25a   : > { %v3274_v36 = vrot.slane %v2779_v35, %v5575_v28  ;;  %v2670_v52 = vmul.f32 %v4503_v25, %v2542_v39  ;;  %v4535_v27 = vunpack.c.l.bf16 %v6943_v16  ;;  %v2445_v25 = vmul.f32 %v6621_v46, %v4564_v22 }
 0x25b   : > { %2948 = vadd.xlane.f32.xlu1 %v2699_v50  ;;  %v2528_v15 = vsub.f32 %v6923_v43, %v2400_v9  ;;  %v4476_v61 = vunpack.c.h.bf16 %v6930_v2 }
 0x25c   : > { %v3275_v32 = vsel %vm1386_vm3, %v3274_v36, %v3270_v40  ;;  %2918 = vadd.xlane.f32.xlu0 %v2684_v17  ;;  %v2785_v47 = vpop.xlane.xlu1 %2784  ;;  %v6957_v17 = vld [vmem:[%s5288_s26 + $0x378] sm:$0xff]   ;;  %v2543_v40 = vsub.f32 %v6874_v48, %v2415_v12  ;;  %v6966_v36 = vld [vmem:[%s5288_s26 + $0x3f0] sm:$0xff]   ;;  %v2430_v57 = vmul.f32 %v6621_v46, %v4535_v27 }
 0x25d   : > { %v3289_v33 = vrot.slane %v2785_v47, %v5586_v37  ;;  %v3280_v59 = vsel %vm1393_vm4, %v3279_v21, %v3275_v32  ;;  %v2783_v29 = vpop.xlane.xlu0 %2782  ;;  %v2700_v21 = vmul.f32 %v4563_v55, %v2572_v51  ;;  %v4507_v35 = vunpack.c.l.bf16 %v6957_v17 }
 0x25e   : > { %v3284_v20 = vrot.slane %v2783_v29, %v5593_v45  ;;  %v4567_v39 = vunpack.c.l.bf16 %v6966_v36  ;;  %v2558_v51 = vsub.f32 %v6848_v13, %v2430_v57  ;;  %v2401_v12 = vmul.f32 %v6621_v46, %v4476_v61 }
 0x25f   : > { %2860 = vadd.xlane.f32.xlu1 %v2655_v41  ;;  %v2416_v29 = vmul.f32 %v6621_v46, %v4507_v35 }
 0x260   : > { %v3285_v50 = vsel %vm1400_vm5, %v3284_v20, %v3280_v59  ;;  %2830 = vadd.xlane.f32.xlu0 %v2640_v8  ;;  %v2789_v34 = vpop.xlane.xlu1 %2788  ;;  %v2573_v59 = vsub.f32 %v6805_v44, %v2445_v25  ;;  %v4536_v20 = vunpack.c.h.bf16 %v6943_v16  ;;  %v2446_v16 = vmul.f32 %v6621_v46, %v4567_v39 }
 0x261   : > { %v3299_v3 = vrot.slane %v2789_v34, %v5618_v4  ;;  %v3290_v11 = vsel %vm1407_vm6, %v3289_v33, %v3285_v50  ;;  %v2787_v30 = vpop.xlane.xlu0 %2786  ;;  %v2671_v33 = vmul.f32 %v4504_v31, %v2543_v40  ;;  %v6983_v50 = vld [vmem:[%s5288_s26 + $0x3b8] sm:$0xff]   ;;  %v4508_v40 = vunpack.c.h.bf16 %v6957_v17 }
 0x262   : > { %v3294_v54 = vrot.slane %v2787_v30, %v5621_v6  ;;  %v2701_v9 = vmul.f32 %v4564_v22, %v2573_v59  ;;  %v4568_v59 = vunpack.c.h.bf16 %v6966_v36 }
 0x263   : > { %2920 = vadd.xlane.f32.xlu1 %v2685_v14  ;;  %v2656_v14 = vmul.f32 %v4475_v42, %v2528_v15  ;;  %v2431_v42 = vmul.f32 %v6621_v46, %v4536_v20  ;;  %v2574_v15 = vsub.f32 %v6848_v13, %v2446_v16 }
 0x264   : > { %v3295_v49 = vsel %vm1414_vm7, %v3294_v54, %v3290_v11  ;;  %2890 = vadd.xlane.f32.xlu0 %v2670_v52  ;;  %v2793_v41 = vpop.xlane.xlu1 %2792  ;;  %v4539_v11 = vunpack.c.l.bf16 %v6983_v50 }
 0x265   : > { %v3309_v55 = vrot.slane %v2793_v41, %v5647_v0  ;;  %v3300_v32 = vsel %vm1421_vm8, %v3299_v3, %v3295_v49  ;;  %v2791_v47 = vpop.xlane.xlu0 %2790  ;;  %v2544_v3 = vsub.f32 %v6923_v43, %v2416_v29  ;;  %v4699_v29 = vld [vmem:[%s5288_s26 + $0x3f8] sm:$0xff]  }
 0x266   : > { %v3304_v8 = vrot.slane %v2791_v47, %v5672_v7  ;;  %v4572_v36 = vunpack.c.h.bf16 %v4699_v29 }
 0x267   : > { %2832 = vadd.xlane.f32.xlu1 %v2641_v63  ;;  %v2686_v63 = vmul.f32 %v4535_v27, %v2558_v51  ;;  %v2672_v57 = vmul.f32 %v4507_v35, %v2544_v3  ;;  %v2432_v27 = vmul.f32 %v6621_v46, %v4539_v11 }
 0x268   : > { %v3305_v2 = vsel %vm1428_vm9, %v3304_v8, %v3300_v32  ;;  %2950 = vadd.xlane.f32.xlu0 %v2700_v21  ;;  %v2797_v38 = vpop.xlane.xlu1 %2796  ;;  %v2529_v21 = vsub.f32 %v6947_v62, %v2401_v12  ;;  %v4540_v32 = vunpack.c.h.bf16 %v6983_v50 }
 0x269   : > { %v3319_v34 = vrot.slane %v2797_v38, %v5702_v10  ;;  %v3310_v31 = vsel %vm7371_vm10, %v3309_v55, %v3305_v2  ;;  %v2795_v44 = vpop.xlane.xlu0 %2794  ;;  %v2559_v55 = vsub.f32 %v6874_v48, %v2431_v42  ;;  %vm7375_vm10 = vcmask 1042434  }
 0x26a   : > { %v3314_v52 = vrot.slane %v2795_v44, %v5707_v19  ;;  %v2657_v8 = vmul.f32 %v4476_v61, %v2529_v21  ;;  %v2560_v61 = vsub.f32 %v6923_v43, %v2432_v27  ;;  %v2433_v50 = vmul.f32 %v6621_v46, %v4540_v32 }
 0x26b   : > { %2892 = vadd.xlane.f32.xlu1 %v2671_v33  ;;  %v2417_v33 = vmul.f32 %v6621_v46, %v4508_v40  ;;  %v2687_v12 = vmul.f32 %v4536_v20, %v2559_v55  ;;  %v2449_v42 = vmul.f32 %v6621_v46, %v4572_v36 }
 0x26c   : > { %v3315_v30 = vsel %vm7374_vm11, %v3314_v52, %v3310_v31  ;;  %2862 = vadd.xlane.f32.xlu0 %v2656_v14  ;;  %v2801_v54 = vpop.xlane.xlu1 %2800  ;;  %v2702_v14 = vmul.f32 %v4567_v39, %v2574_v15  ;;  %v2447_v52 = vmul.f32 %v6621_v46, %v4568_v59  ;;  %v4571_v39 = vunpack.c.l.bf16 %v4699_v29 }
 0x26d   : > { %v3329_v25 = vrot.slane %v2801_v54, %v7364_v58  ;;  %v3320_v22 = vsel %vm1449_vm12, %v3319_v34, %v3315_v30  ;;  %v2799_v49 = vpop.xlane.xlu0 %2798  ;;  %v2545_v44 = vsub.f32 %v6947_v62, %v2417_v33  ;;  %v2688_v20 = vmul.f32 %v4539_v11, %v2560_v61 }
 0x26e   : > { %v3324_v41 = vrot.slane %v2799_v49, %v7363_v18  ;;  %v2561_v3 = vsub.f32 %v6947_v62, %v2433_v50  ;;  %v2575_v21 = vsub.f32 %v6874_v48, %v2447_v52 }
 0x26f   : > { %2952 = vadd.xlane.f32.xlu1 %v2701_v9 }
 0x270   : > { %v3325_v17 = vsel %vm1456_vm13, %v3324_v41, %v3320_v22  ;;  %2922 = vadd.xlane.f32.xlu0 %v2686_v63  ;;  %v2805_v47 = vpop.xlane.xlu1 %2804  ;;  %v2673_v63 = vmul.f32 %v4508_v40, %v2545_v44  ;;  %v2689_v15 = vmul.f32 %v4540_v32, %v2561_v3  ;;  %v2703_v40 = vmul.f32 %v4568_v59, %v2575_v21 }
 0x271   : > { %v3330_v13 = vsel %vm1463_vm14, %v3329_v25, %v3325_v17  ;;  %v3338_v35 = vrot.slane %v2805_v47, %v5567_v24  ;;  %v2803_v2 = vpop.xlane.xlu0 %2802  ;;  %v2448_v25 = vmul.f32 %v6621_v46, %v4571_v39 }
 0x272   : > { %v3334_v38 = vrot.slane %v2803_v2, %v5540_v60  ;;  %v7011_v51 = vsel %vm7375_vm10, %v3330_v13, %v6902_v56 }
 0x273   : > { %2894 = vadd.xlane.f32.xlu1 %v2672_v57  ;;  %v2577_v57 = vsub.f32 %v6947_v62, %v2449_v42  ;;  %v2576_v48 = vsub.f32 %v6923_v43, %v2448_v25 }
 0x274   : > { %v3339_v34 = vsel %vm1365_vm0, %v3338_v35, %v3334_v38  ;;  %2864 = vadd.xlane.f32.xlu0 %v2657_v8  ;;  %v2809_v31 = vpop.xlane.xlu1 %2808 }
 0x275   : > { %v3348_v16 = vrot.slane %v2809_v31, %v5553_v5  ;;  %v2807_v56 = vpop.xlane.xlu0 %2806  ;;  %v2705_v33 = vmul.f32 %v4572_v36, %v2577_v57  ;;  %v2704_v29 = vmul.f32 %v4571_v39, %v2576_v48 }
 0x276   : > { %v3343_v9 = vrot.slane %v2807_v56, %v5548_v1 }
 0x277   : > { %2954 = vadd.xlane.f32.xlu1 %v2702_v14 }
 0x278   : > { %v3344_v30 = vsel %vm1372_vm1, %v3343_v9, %v3339_v34  ;;  %2924 = vadd.xlane.f32.xlu0 %v2687_v12  ;;  %v2813_v54 = vpop.xlane.xlu1 %2812 }
 0x279   : > { %v3358_v22 = vrot.slane %v2813_v54, %v5572_v26  ;;  %v3349_v49 = vsel %vm1379_vm2, %v3348_v16, %v3344_v30  ;;  %v2811_v41 = vpop.xlane.xlu0 %2810 }
 0x27a   : > { %v3353_v11 = vrot.slane %v2811_v41, %v5575_v28 }
 0x27b   : > { %2926 = vadd.xlane.f32.xlu1 %v2688_v20 }
 0x27c   : > { %v3354_v55 = vsel %vm1386_vm3, %v3353_v11, %v3349_v49  ;;  %2896 = vadd.xlane.f32.xlu0 %v2673_v63  ;;  %v2817_v27 = vpop.xlane.xlu1 %2816 }
 0x27d   : > { %v3368_v46 = vrot.slane %v2817_v27, %v5586_v37  ;;  %v3359_v17 = vsel %vm1393_vm4, %v3358_v22, %v3354_v55  ;;  %v2815_v47 = vpop.xlane.xlu0 %2814 }
 0x27e   : > { %v3363_v8 = vrot.slane %v2815_v47, %v5593_v45 }
 0x27f   : > { %2928 = vadd.xlane.f32.xlu1 %v2689_v15 }
 0x280   : > { %v3364_v32 = vsel %vm1400_vm5, %v3363_v8, %v3359_v17  ;;  %2956 = vadd.xlane.f32.xlu0 %v2703_v40  ;;  %v2821_v62 = vpop.xlane.xlu1 %2820 }
 0x281   : > { %v3378_v13 = vrot.slane %v2821_v62, %v5618_v4  ;;  %v3369_v59 = vsel %vm1407_vm6, %v3368_v46, %v3364_v32  ;;  %v2819_v35 = vpop.xlane.xlu0 %2818 }
 0x282   : > { %v3373_v43 = vrot.slane %v2819_v35, %v5621_v6 }
 0x283   : > { %2960 = vadd.xlane.f32.xlu1 %v2705_v33 }
 0x284   : > { %v3374_v2 = vsel %vm1414_vm7, %v3373_v43, %v3369_v59  ;;  %2958 = vadd.xlane.f32.xlu0 %v2704_v29  ;;  %v2837_v38 = vpop.xlane.xlu1 %2836 }
 0x285   : > { %v3417_v14 = vrot.slane %v2837_v38, %v5567_v24  ;;  %v2835_v12 = vpop.xlane.xlu0 %2834  ;;  %v7041_v61 = vsel %vm1421_vm8, %v3378_v13, %v3374_v2 }
 0x286   : > { %v3413_v50 = vrot.slane %v2835_v12, %v5540_v60 }
 0x288   : > { %v3418_v36 = vsel %vm1365_vm0, %v3417_v14, %v3413_v50  ;;  %v2867_v34 = vpop.xlane.xlu1 %2866 }
 0x289   : > { %v2839_v31 = vpop.xlane.xlu0 %2838  ;;  %v3492_v9 = vrot.slane %v2867_v34, %v5540_v60 }
 0x28a   : > { %v3422_v44 = vrot.slane %v2839_v31, %v5548_v1 }
 0x28c   : > { %v3423_v52 = vsel %vm1372_vm1, %v3422_v44, %v3418_v36  ;;  %v2841_v39 = vpop.xlane.xlu1 %2840 }
 0x28d   : > { %v3427_v16 = vrot.slane %v2841_v39, %v5553_v5  ;;  %v2869_v56 = vpop.xlane.xlu0 %2868 }
 0x28e   : > { %v3496_v20 = vrot.slane %v2869_v56, %v5567_v24 }
 0x28f   : > { %v3428_v3 = vsel %vm1379_vm2, %v3427_v16, %v3423_v52 }
 0x290   : > { %v3497_v42 = vsel %vm1365_vm0, %v3496_v20, %v3492_v9  ;;  %v2899_v30 = vpop.xlane.xlu1 %2898 }
 0x291   : > { %v2871_v54 = vpop.xlane.xlu0 %2870  ;;  %v3571_v41 = vrot.slane %v2899_v30, %v5540_v60 }
 0x292   : > { %v3501_v63 = vrot.slane %v2871_v54, %v5548_v1 }
 0x294   : > { %v3502_v21 = vsel %vm1372_vm1, %v3501_v63, %v3497_v42  ;;  %v2843_v25 = vpop.xlane.xlu1 %2842 }
 0x295   : > { %v3432_v22 = vrot.slane %v2843_v25, %v5575_v28  ;;  %v2901_v49 = vpop.xlane.xlu0 %2900 }
 0x296   : > { %v3575_v11 = vrot.slane %v2901_v49, %v5567_v24 }
 0x297   : > { %v3433_v15 = vsel %vm1386_vm3, %v3432_v22, %v3428_v3 }
 0x298   : > { %v3576_v57 = vsel %vm1365_vm0, %v3575_v11, %v3571_v41  ;;  %v2903_v55 = vpop.xlane.xlu1 %2902 }
 0x299   : > { %v3580_v27 = vrot.slane %v2903_v55, %v5548_v1  ;;  %v2873_v40 = vpop.xlane.xlu0 %2872 }
 0x29a   : > { %v3506_v48 = vrot.slane %v2873_v40, %v5553_v5 }
 0x29b   : > { %v3581_v46 = vsel %vm1372_vm1, %v3580_v27, %v3576_v57 }
 0x29c   : > { %v3507_v17 = vsel %vm1379_vm2, %v3506_v48, %v3502_v21  ;;  %v2933_v47 = vpop.xlane.xlu1 %2932 }
 0x29d   : > { %v3654_v8 = vrot.slane %v2933_v47, %v5567_v24  ;;  %v2931_v33 = vpop.xlane.xlu0 %2930 }
 0x29e   : > { %v3650_v32 = vrot.slane %v2931_v33, %v5540_v60 }
 0x2a0   : > { %v3655_v62 = vsel %vm1365_vm0, %v3654_v8, %v3650_v32  ;;  %v2875_v29 = vpop.xlane.xlu1 %2874  ;;  %vm7376_vm0 = vcmask 786112  }
 0x2a1   : > { %v3511_v13 = vrot.slane %v2875_v29, %v5575_v28  ;;  %v2845_v59 = vpop.xlane.xlu0 %2844  ;;  %vm7382_vm10 = vmmov %vm7376_vm0 }
 0x2a2   : > { %v3437_v35 = vrot.slane %v2845_v59, %v5572_v26 }
 0x2a3   : > { %v3512_v43 = vsel %vm1386_vm3, %v3511_v13, %v3507_v17 }
 0x2a4   : > { %v3438_v2 = vsel %vm1393_vm4, %v3437_v35, %v3433_v15  ;;  %v2935_v38 = vpop.xlane.xlu1 %2934 }
 0x2a5   : > { %v3659_v14 = vrot.slane %v2935_v38, %v5548_v1  ;;  %v2905_v12 = vpop.xlane.xlu0 %2904 }
 0x2a6   : > { %v3585_v24 = vrot.slane %v2905_v12, %v5553_v5 }
 0x2a7   : > { %v3660_v60 = vsel %vm1372_vm1, %v3659_v14, %v3655_v62  ;;  %vm7377_vm1 = vmmov %vm7374_vm11  ;;  %vm7381_vm11 = vcmask 1044484  }
 0x2a8   : > { %v3586_v50 = vsel %vm1379_vm2, %v3585_v24, %v3581_v46  ;;  %v2877_v36 = vpop.xlane.xlu1 %2876 }
 0x2a9   : > { %v3516_v34 = vrot.slane %v2877_v36, %v5572_v26  ;;  %v2847_v31 = vpop.xlane.xlu0 %2846 }
 0x2aa   : > { %v3442_v44 = vrot.slane %v2847_v31, %v5593_v45 }
 0x2ab   : > { %v3517_v52 = vsel %vm1393_vm4, %v3516_v34, %v3512_v43 }
 0x2ac   : > { %v3443_v39 = vsel %vm1400_vm5, %v3442_v44, %v3438_v2  ;;  %v2937_v16 = vpop.xlane.xlu1 %2936 }
 0x2ad   : > { %v3664_v1 = vrot.slane %v2937_v16, %v5553_v5  ;;  %v2907_v56 = vpop.xlane.xlu0 %2906 }
 0x2ae   : > { %v3590_v9 = vrot.slane %v2907_v56, %v5575_v28 }
 0x2af   : > { %v3665_v20 = vsel %vm1379_vm2, %v3664_v1, %v3660_v60  ;;  %vm7378_vm2 = vcmask 1043459  }
 0x2b0   : > { %v3591_v3 = vsel %vm1386_vm3, %v3590_v9, %v3586_v50  ;;  %v2879_v42 = vpop.xlane.xlu1 %2878 }
 0x2b1   : > { %v3521_v30 = vrot.slane %v2879_v42, %v5593_v45  ;;  %v2849_v54 = vpop.xlane.xlu0 %2848 }
 0x2b2   : > { %v3447_v63 = vrot.slane %v2849_v54, %v5586_v37 }
 0x2b3   : > { %v3522_v21 = vsel %vm1400_vm5, %v3521_v30, %v3517_v52 }
 0x2b4   : > { %v3448_v25 = vsel %vm1407_vm6, %v3447_v63, %v3443_v39  ;;  %v2939_v22 = vpop.xlane.xlu1 %2938 }
 0x2b5   : > { %v3669_v5 = vrot.slane %v2939_v22, %v5575_v28  ;;  %v2909_v49 = vpop.xlane.xlu0 %2908 }
 0x2b6   : > { %v3595_v41 = vrot.slane %v2909_v49, %v5572_v26 }
 0x2b7   : > { %v3670_v11 = vsel %vm1386_vm3, %v3669_v5, %v3665_v20  ;;  %vm7379_vm3 = vmmov %vm7376_vm0 }
 0x2b8   : > { %v3596_v15 = vsel %vm1393_vm4, %v3595_v41, %v3591_v3  ;;  %v2881_v57 = vpop.xlane.xlu1 %2880 }
 0x2b9   : > { %v3526_v55 = vrot.slane %v2881_v57, %v5586_v37  ;;  %v2851_v27 = vpop.xlane.xlu0 %2850 }
 0x2ba   : > { %v3452_v40 = vrot.slane %v2851_v27, %v5621_v6 }
 0x2bb   : > { %v3527_v48 = vsel %vm1407_vm6, %v3526_v55, %v3522_v21 }
 0x2bc   : > { %v3453_v46 = vsel %vm1414_vm7, %v3452_v40, %v3448_v25  ;;  %v2941_v17 = vpop.xlane.xlu1 %2940 }
 0x2bd   : > { %v3674_v28 = vrot.slane %v2941_v17, %v5572_v26  ;;  %v2911_v47 = vpop.xlane.xlu0 %2910 }
 0x2be   : > { %v3600_v8 = vrot.slane %v2911_v47, %v5593_v45 }
 0x2bf   : > { %v7097_v33 = vsel %vm1393_vm4, %v3674_v28, %v3670_v11  ;;  %vm7380_vm4 = vmmov %vm7377_vm1 }
 0x2c0   : > { %v7100_v32 = vsel %vm1400_vm5, %v3600_v8, %v3596_v15  ;;  %v2853_v62 = vpop.xlane.xlu1 %2852 }
 0x2c1   : > { %v3457_v29 = vrot.slane %v2853_v62, %v5618_v4  ;;  %v2823_v13 = vpop.xlane.xlu0 %2822 }
 0x2c2   : > { %v3383_v59 = vrot.slane %v2823_v13, %v5672_v7 }
 0x2c3   : > { %v3458_v35 = vsel %vm1421_vm8, %v3457_v29, %v3453_v46 }
 0x2c4   : > { %v3384_v26 = vsel %vm1428_vm9, %v3383_v59, %v7041_v61  ;;  %v7107_v43 = vpop.xlane.xlu1 %2912 }
 0x2c5   : > { %v2883_v2 = vpop.xlane.xlu0 %2882 }
 0x2c6   : > { %v3531_v38 = vrot.slane %v2883_v2, %v5621_v6 }
 0x2c8   : > { %v7111_v14 = vsel %vm1414_vm7, %v3531_v38, %v3527_v48  ;;  %v2825_v12 = vpop.xlane.xlu1 %2824 }
 0x2c9   : > { %v7113_v24 = vpop.xlane.xlu0 %2942  ;;  %v3388_v30 = vrot.slane %v2825_v12, %v5647_v0  ;;  %v3605_v12 = vrot.slane %v7107_v43, %v5586_v37 }
 0x2cb   : > { %v3389_v5 = vsel %vm7376_vm0, %v3388_v30, %v3384_v26  ;;  %vm7383_vm0 = vmmov %vm7377_vm1 }
 0x2cc   : > { %v7115_v60 = vpop.xlane.xlu1 %2884 }
 0x2cd   : > { %v2855_v50 = vpop.xlane.xlu0 %2854 }
 0x2ce   : > { %v3462_v17 = vrot.slane %v2855_v50, %v5672_v7  ;;  %v3536_v50 = vrot.slane %v7115_v60, %v5618_v4 }
 0x2d0   : > { %v7117_v36 = vpop.xlane.xlu1 %2944  ;;  %v3463_v13 = vsel %vm1428_vm9, %v3462_v17, %v3458_v35 }
 0x2d1   : > { %v7119_v34 = vpop.xlane.xlu0 %2914 }
 0x2d4   : > { %v2857_v31 = vpop.xlane.xlu1 %2856 }
 0x2d5   : > { %v2827_v61 = vpop.xlane.xlu0 %2826  ;;  %v3467_v28 = vrot.slane %v2857_v31, %v5647_v0 }
 0x2d6   : > { %v3393_v54 = vrot.slane %v2827_v61, %v5707_v19 }
 0x2d8   : > { %v7121_v44 = vpop.xlane.xlu1 %2916  ;;  %v3394_v49 = vsel %vm7377_vm1, %v3393_v54, %v3389_v5  ;;  %vm7384_vm1 = vmmov %vm7379_vm3 }
 0x2d9   : > { %v2887_v52 = vpop.xlane.xlu0 %2886 }
 0x2da   : > { %v3541_v35 = vrot.slane %v2887_v52, %v5672_v7  ;;  %v2963_v52 = vstv %s7165_s10 }
 0x2dc   : > { %v2829_v39 = vpop.xlane.xlu1 %2828 }
 0x2dd   : > { %v7123_v16 = vpop.xlane.xlu0 %2946  ;;  %v3398_v21 = vrot.slane %v2829_v39, %v5702_v10 }
 0x2df   : > { %v3399_v11 = vsel %vm1449_vm12, %v3398_v21, %v3394_v49 }
 0x2e0   : > { %v7125_v1 = vpop.xlane.xlu1 %2888 }
 0x2e1   : > { %v2859_v56 = vpop.xlane.xlu0 %2858  ;;  %v3546_v43 = vrot.slane %v7125_v1, %v5647_v0 }
 0x2e2   : > { %v3472_v8 = vrot.slane %v2859_v56, %v5707_v19  ;;  %v3610_v56 = vrot.slane %v7119_v34, %v5621_v6  ;;  %v3537_v34 = vsel %vm1421_vm8, %v3536_v50, %v7111_v14  ;;  %v2964_v50 = vadd.s32 %v2963_v52, %v7365_v23 }
 0x2e4   : > { %v7127_v9 = vpop.xlane.xlu1 %2948 }
 0x2e5   : > { %v7129_v20 = vpop.xlane.xlu0 %2918  ;;  %v3694_v17 = vrot.slane %v7127_v9, %v5618_v4 }
 0x2e6   : > { %v3620_v1 = vrot.slane %v7129_v20, %v5672_v7 }
 0x2e8   : > { %v2861_v3 = vpop.xlane.xlu1 %2860 }
 0x2e9   : > { %v2831_v42 = vpop.xlane.xlu0 %2830  ;;  %v3477_v29 = vrot.slane %v2861_v3, %v5702_v10 }
 0x2ea   : > { %v3403_v22 = vrot.slane %v2831_v42, %v7363_v18  ;;  %v3615_v42 = vrot.slane %v7121_v44, %v5618_v4  ;;  %v3679_v44 = vrot.slane %v7113_v24, %v5593_v45  ;;  %v3689_v45 = vrot.slane %v7123_v16, %v5621_v6 }
 0x2ec   : > { %v7133_v63 = vpop.xlane.xlu1 %2920  ;;  %v3404_v55 = vsel %vm1456_vm13, %v3403_v22, %v3399_v11  ;;  %v3606_v22 = vsel %vm1407_vm6, %v3605_v12, %v7100_v32  ;;  %v3684_v32 = vrot.slane %v7117_v36, %v5586_v37 }
 0x2ed   : > { %v2891_v25 = vpop.xlane.xlu0 %2890  ;;  %v3625_v49 = vrot.slane %v7133_v63, %v5647_v0  ;;  %v3611_v14 = vsel %vm1414_vm7, %v3610_v56, %v3606_v22 }
 0x2ee   : > { %v3551_v30 = vrot.slane %v2891_v25, %v5707_v19  ;;  %v3542_v25 = vsel %vm1428_vm9, %v3541_v35, %v3537_v34  ;;  %v3735_v34 = vld [vmem:[#allocation2] sm:$0x1] }
 0x2ef   : > { %v3547_v11 = vsel %vm7382_vm10, %v3546_v43, %v3542_v25 }
 0x2f0   : > { %v2833_v41 = vpop.xlane.xlu1 %2832  ;;  %v3552_v24 = vsel %vm7383_vm0, %v3551_v30, %v3547_v11 }
 0x2f1   : > { %v3408_v15 = vrot.slane %v2833_v41, %v7364_v58  ;;  %v7141_v57 = vpop.xlane.xlu0 %2950 }
 0x2f3   : > { %v3409_v27 = vsel %vm1463_vm14, %v3408_v15, %v3404_v55  ;;  %v3616_v55 = vsel %vm1421_vm8, %v3615_v42, %v3611_v14 }
 0x2f4   : > { %v3728_v40 = vsel %vm7378_vm2, %v3409_v27, %v7011_v51  ;;  %v2893_v48 = vpop.xlane.xlu1 %2892  ;;  %v3468_v51 = vsel %vm7379_vm3, %v3467_v28, %v3463_v13  ;;  %vm7385_vm2 = vmmov %vm7383_vm0 }
 0x2f5   : > { %v2863_v46 = vpop.xlane.xlu0 %2862  ;;  %v3473_v2 = vsel %vm7380_vm4, %v3472_v8, %v3468_v51  ;;  %v3556_v5 = vrot.slane %v2893_v48, %v5702_v10  ;;  %v3699_v8 = vrot.slane %v7141_v57, %v5672_v7 }
 0x2f6   : > { %v3482_v59 = vrot.slane %v2863_v46, %v7363_v18  ;;  %v3478_v31 = vsel %vm1449_vm12, %v3477_v29, %v3473_v2  ;;  %v3680_v46 = vsel %vm1400_vm5, %v3679_v44, %v7097_v33  ;;  %vm7386_vm5 = vcmask 1045509  }
 0x2f7   : > { %v3557_v37 = vsel %vm1449_vm12, %v3556_v5, %v3552_v24  ;;  %v3685_v28 = vsel %vm1407_vm6, %v3684_v32, %v3680_v46  ;;  %vm7387_vm6 = vmmov %vm7384_vm1 }
 0x2f8   : > { %v7149_v47 = vpop.xlane.xlu1 %2952  ;;  %v3483_v39 = vsel %vm1456_vm13, %v3482_v59, %v3478_v31 }
 0x2f9   : > { %v2923_v62 = vpop.xlane.xlu0 %2922  ;;  %v3704_v33 = vrot.slane %v7149_v47, %v5647_v0 }
 0x2fa   : > { %v3630_v20 = vrot.slane %v2923_v62, %v5707_v19 }
 0x2fc   : > { %v2895_v26 = vpop.xlane.xlu1 %2894 }
 0x2fd   : > { %v2865_v38 = vpop.xlane.xlu0 %2864  ;;  %v3561_v41 = vrot.slane %v2895_v26, %v7363_v18  ;;  %v3690_v26 = vsel %vm1414_vm7, %v3689_v45, %v3685_v28  ;;  %vm7388_vm7 = vmmov %vm7383_vm0  ;;  %v3746_v45 = vld [vmem:[#allocation3] sm:$0x1] }
 0x2fe   : > { %v3487_v61 = vrot.slane %v2865_v38, %v7364_v58  ;;  %v3695_v57 = vsel %vm1421_vm8, %v3694_v17, %v3690_v26  ;;  %vm2965_vm8 = vcmp.lt.s32.totalorder %v2964_v50, 20 }
 0x2ff   : > { %v3562_v16 = vsel %vm1456_vm13, %v3561_v41, %v3557_v37  ;;  %v3700_v0 = vsel %vm1428_vm9, %v3699_v8, %v3695_v57 }
 0x300   : > { %v3488_v60 = vsel %vm1463_vm14, %v3487_v61, %v3483_v39  ;;  %v2955_v3 = vpop.xlane.xlu1 %2954  ;;  %v3705_v61 = vsel %vm7387_vm6, %v3704_v33, %v3700_v0 }
 0x301   : > { %v3729_v54 = vsel %vm7381_vm11, %v3488_v60, %v3728_v40  ;;  %v2925_v21 = vpop.xlane.xlu0 %2924  ;;  %v3621_v40 = vsel %vm1428_vm9, %v3620_v1, %v3616_v55  ;;  %v3709_v2 = vrot.slane %v2955_v3, %v5707_v19  ;;  %vm7389_vm9 = vcmask 1047559  }
 0x302   : > { %v3635_v63 = vrot.slane %v2925_v21, %v5702_v10  ;;  %v3626_v6 = vsel %vm7384_vm1, %v3625_v49, %v3621_v40 }
 0x303   : > { %v3631_v62 = vsel %vm7385_vm2, %v3630_v20, %v3626_v6  ;;  %v3710_v39 = vsel %vm7388_vm7, %v3709_v2, %v3705_v61 }
 0x304   : > { %v2927_v15 = vpop.xlane.xlu1 %2926  ;;  %v3636_v59 = vsel %vm1449_vm12, %v3635_v63, %v3631_v62 }
 0x305   : > { %v2897_v27 = vpop.xlane.xlu0 %2896  ;;  %v3640_v36 = vrot.slane %v2927_v15, %v7363_v18 }
 0x306   : > { %v3566_v48 = vrot.slane %v2897_v27, %v7364_v58 }
 0x307   : > { %v3641_v7 = vsel %vm1456_vm13, %v3640_v36, %v3636_v59 }
 0x308   : > { %v3567_v29 = vsel %vm1463_vm14, %v3566_v48, %v3562_v16  ;;  %v2929_v13 = vpop.xlane.xlu1 %2928 }
 0x309   : > { %v3730_v4 = vsel %vm7386_vm5, %v3567_v29, %v3729_v54  ;;  %v3645_v9 = vrot.slane %v2929_v13, %v7364_v58  ;;  %v2957_v51 = vpop.xlane.xlu0 %2956 }
 0x30a   : > { %v3714_v12 = vrot.slane %v2957_v51, %v5702_v10 }
 0x30b   : > { %v3646_v38 = vsel %vm1463_vm14, %v3645_v9, %v3641_v7 }
 0x30c   : > { %v3731_v47 = vsel %vm2028_vm15, %v3646_v38, %v3730_v4  ;;  %v2961_v31 = vpop.xlane.xlu1 %2960  ;;  %v3715_v43 = vsel %vm1449_vm12, %v3714_v12, %v3710_v39 }
 0x30d   : > { %v2959_v35 = vpop.xlane.xlu0 %2958  ;;  %v3724_v19 = vrot.slane %v2961_v31, %v7364_v58 }
 0x30e   : > { %v3719_v56 = vrot.slane %v2959_v35, %v7363_v18 }
 0x310   : > { %v3720_v10 = vsel %vm1456_vm13, %v3719_v56, %v3715_v43 }
 0x311   : > { %v3725_v60 = vsel %vm1463_vm14, %v3724_v19, %v3720_v10 }
 0x312   : > { %v3732_v3 = vsel %vm7389_vm9, %v3725_v60, %v3731_v47 }
 0x313   : > { %v3734_v42 = vsel %vm2965_vm8, %v3732_v3, -1e+30 }
 0x314   : > { %v3736_v30 = vrot.slane %v3734_v42, 4 }
 0x316   : > { %v3737_v54 = vmax.f32 %v3734_v42, %v3736_v30 }
 0x318   : > { %v3738_v21 = vrot.slane %v3737_v54, 2 }
 0x31a   : > { %v3739_v52 = vmax.f32 %v3737_v54, %v3738_v21 }
 0x31c   : > { %v3740_v22 = vrot.slane %v3739_v52, 1 }
 0x31e   : > { %v3741_v58 = vmax.f32 %v3739_v52, %v3740_v22 }
 0x320   : > { %v3742_v1 = vmax.f32 %v3735_v34, %v3741_v58 }
 0x322   : > { %v3752_v18 = vrot.slane %v3742_v1, %v2050_v53  ;;  %3765 = vst [vmem:[#allocation2] sm:$0x1] %v3742_v1  ;;  %v3743_v25 = vsub.f32 %v3735_v34, %v3742_v1 }
 0x324   : > { %v3754_v5 = vsub.f32 %v3734_v42, %v3752_v18  ;;  %v3744_v49 = vmul.f32 1.442695, %v3743_v25 }
 0x326   : > { %v3755_v44 = vmul.f32 1.442695, %v3754_v5 }
 0x328   : > { %4823 = vpow2.f32 %v3755_v44 }
 0x329   : > { %4825 = vpow2.f32 %v3744_v49 }
 0x335   : > { %v4824_v41 = vpop.eup %4823 }
 0x336   : > { %v3757_v32 = vrot.slane %v4824_v41, 4  ;;  %v4826_v15 = vpop.eup %4825 }
 0x337   : > { %v3747_v24 = vmul.f32 %v4826_v15, %v3746_v45 }
 0x338   : > { %v3758_v14 = vadd.f32 %v4824_v41, %v3757_v32 }
 0x33a   : > { %v3759_v11 = vrot.slane %v3758_v14, 2 }
 0x33c   : > { %v3760_v20 = vadd.f32 %v3759_v11, %v3758_v14 }
 0x33e   : > { %v3761_v55 = vrot.slane %v3760_v20, 1 }
 0x340   : > { %v3762_v63 = vadd.f32 %v3761_v55, %v3760_v20  ;;  %3769 = sbr.rel (%p4054_p6) target bundleno = 863 (0x35f), region = 52 }
 0x342   : > { %v3763_v27 = vadd.f32 %v3762_v63, %v3747_v24 }
 0x344   : > { %3764 = vst [vmem:[#allocation3] sm:$0x1] %v3763_v27 }
 0x345   : > { %v3770_v40 = vld [vmem:[#allocation2] sm:$0x1] }
 0x34b   : > { %v3771_v23 = vld [vmem:[#allocation3] sm:$0x1] }
 0x34c   : > { %4875 = vlog2.f32 %v3771_v23 }
 0x359   : > { %v4876_v53 = vpop.eup %4875 }
 0x35a   : > { %v3773_v37 = vmul.f32 0.6931472, %v4876_v53 }
 0x35c   : > { %v3774_v36 = vadd.f32 %v3773_v37, %v3770_v40 }
 0x35e   : > { %3775 = vst [vmem:[%s286_s4] sm:$0x1] %v3774_v36 }
 0x35f PF: > { %s4055_s29 = sshll.u32 %s5045_s19, 4  ;;  %s7390_s9 = sld [smem:[#allocation33_spill]] }
 0x360   : > { %s3789_s1 = sshll.u32 %s286_s4, 4  ;;  %s3777_s12 = scalar_lea.sflag [#allocation6], %s5274_s5  ;;  %s3790_s1 = int_to_ptr.vmem [resolvable:$true] %s3789_s1 }
 0x361   : > { %s4929_s24 = scalar_lea.vmem %s3790_s1, 16  ;;  %p7391_p12 = scmp.ne.s32.totalorder %s7345_s11, 0 }
 0x362   : > { %p4930_p7 = scmp.ne.s32.totalorder %s3790_s1, %s4929_s24  ;;  %s5071_s17 = smov [#allocation10]  }
 0x363   : > { %s4933_s28 = sshll.u32 %s5071_s17, 4  ;;  %s4934_s28 = int_to_ptr.vmem [resolvable:$false] %s4933_s28 }
 0x364   : > { %p4931_p13 = pnand %p4930_p7, %p7391_p12  ;;  %s4935_s3 = scalar_lea.vmem %s4934_s28, 32 }
 0x365   : > { %s3787_s18 = scalar_lea.hbm %s7390_s9, %s4055_s29  ;;  %p4936_p1 = scmp.lt.s32.totalorder %s3790_s1, %s4934_s28 }
 0x366   : > { %p4932_p9 = pneg %p4931_p13  ;;  %p4937_p11 = scmp.lt.s32.totalorder %s4935_s3, %s4929_s24 }
 0x368   : > { %p4938_p0 = por %p4937_p11, %p4936_p1 }
 0x36a   : > { %p4939_p5 = pnand %p4938_p0, %p4932_p9 }
 0x36c   : > { %4942 = shalt.err (!%p4939_p5)
}
 0x36d   : > { %s4943_s19 = scalar_lea.hbm %s3787_s18, 16  ;;  %s4947_s30 = scalar_lea.hbm %s7390_s9, 32 }
 0x36e   : > { %p4944_p8 = scmp.ne.s32.totalorder %s3787_s18, %s4943_s19  ;;  %p4948_p10 = scmp.lt.s32.totalorder %s3787_s18, %s7390_s9 }
 0x36f   : > { %p4949_p2 = scmp.lt.s32.totalorder %s4947_s30, %s4943_s19 }
 0x370   : > { %p4945_p3 = pnand %p4944_p8, %p7391_p12 }
 0x371   : > { %p4950_p6 = por %p4949_p2, %p4948_p10 }
 0x372   : > { %p4946_p4 = pneg %p4945_p3 }
 0x374   : > { %p4951_p7 = pnand %p4950_p6, %p4946_p4 }
 0x376   : > { %4954 = shalt.err (!%p4951_p7)
}
 0x377   : > { %4707 = dma.vmem_to_hbm [thread:$0]  (%p7391_p12), %s3790_s1, 16, %s3787_s18, %s3777_s12  }
 0x378 PF: > { %s7392_s0 = sld [smem:[#allocation17_spill]]  ;;  %p4719_p13 = scmp.ge.s32.totalorder %s5057_s22, 2 }
 0x379   : > { %s7393_s27 = sld [smem:[#allocation23_spill]] }
 0x37e   : > { %s3801_s26 = sand.u32 1, %s7392_s0  }
 0x37f   : > { %p7394_p9 = scmp.ne.s32.totalorder %s7393_s27, 0  ;;  %s3802_s4 = scalar_lea.sflag [#allocation6], %s3801_s26 }
 0x381   : > { %p4714_p1 = pnand %p4719_p13, %p7394_p9 }
 0x383   : > { %p4715_p11 = pneg %p4714_p1 }
 0x385   : > { %5012 = dma.done.wait (%p4715_p11), %s3802_s4, 16  }
 0x386   : > { %5014 = vsyncadd (%p4715_p11), %s3802_s4, 4294967280  ;;  %s20_s22 = sadd.s32 1, %s5057_s22   ;;  %s7395_s23 = sld [smem:[#allocation22_spill]] }
 0x387   : > { %p17_p0 = scmp.ge.s32.totalorder %s20_s22, 6   ;;  %s7396_s11 = sld [smem:[#allocation18_spill]] }
 0x388   : > { %s7397_s17 = sld [smem:[#allocation21_spill]]  ;;  %s7400_s12 = smov %s5021_s13 }
 0x389   : > { %s7398_s10 = sld [smem:[#allocation19_spill]]  ;;  %s7401_s13 = smov %s5025_s14 }
 0x38a   : > { %s7399_s29 = sld [smem:[#allocation20_spill]]  ;;  %s7403_s15 = smov %s5033_s16 }
 0x38b   : > { %s7405_s18 = smov %s5049_s20  ;;  %s7406_s19 = smov %s5053_s21 }
 0x38c   : > { %s7402_s14 = smov %s7395_s23  ;;  %19 = sbr.rel (!%p17_p0) target bundleno = 14 (0xe), region = 106 }
 0x38d   : > { %s7404_s16 = smov %s7396_s11 }
 0x38f   : > { %s7407_s20 = smov %s7398_s10 }
 0x390   : > { %s7408_s21 = smov %s7399_s29 }
 0x391   :  { %3806 = vsyncpa [#allocation5], 1 }
 0x392   :  { %3808 = vsyncpa [#allocation5 + $0x1], 1 }
 0x393   :  { %3809 = vsyncpa [#allocation8], 1 }
 0x394   :  { %3810 = vsyncpa [#allocation6], 1 }
 0x395   :  { %3812 = vsyncpa [#allocation6 + $0x1], 1 }

</bundles_post_ra>
